<compile_context>
chip_gen: v7x
topology: tpu7x:2x2x1
jax: 0.10.0
libtpu: 0.0.40
codegen_flags: <defaults>
</compile_context>

<pallas_src>
import jax
import jax.numpy as jnp
from jax.experimental import pallas as pl
from jax.experimental.pallas import tpu as pltpu


FLAT_IN = 1152      # 32*32 = 1024, padded so every conv1 tap slice stays in bounds
CONV1_LEN = 896     # 28 output rows on the 32-stride grid (7 * 128 lanes)
CONV2_LEN = 640     # 10x10 output grid embedded with strides (64, 2) (5 * 128 lanes)
OUT_PAD = 128       # lane-dense logits block (3 real logits + zero padding)


# ----------------------------- fused Pallas kernel (one sample per grid step) -----------------

def _net_kernel(x_ref, w1_ref, b1_ref, w2_ref, b2_ref,
                wf1_ref, bf1_ref, wf2_ref, bf2_ref, wf3_ref, bf3_ref,
                out_ref, c1, p1, c2, im1, im2):
    bf16 = jnp.bfloat16
    f32 = jnp.float32

    # Zero ONLY the scratch tails that are read past the written region (pool shift / im2col
    # overhang).  Unconditional on purpose: with parallel grid semantics every core must run
    # its own init, so this must not be gated on program_id.
    c1[:, pl.ds(CONV1_LEN, 128)] = jnp.zeros((8, 128), f32)
    p1[:, pl.ds(CONV1_LEN, 128)] = jnp.zeros((8, 128), bf16)
    c2[:, pl.ds(CONV2_LEN, 128)] = jnp.zeros((1, 128), f32)

    # ---- conv1 (4->8, 5x5, VALID): ONE MXU matmul via bf16 im2col ----
    # im1 row 4*t + ic  =  x[ic, 32*di + dj : ... + 896],  t = 5*di + dj  (matches w1m columns).
    for di in range(5):
        for dj in range(5):
            t = 5 * di + dj
            s = 32 * di + dj
            im1[pl.ds(4 * t, 4), :] = x_ref[:, pl.ds(s, CONV1_LEN)]      # (4, 896) bf16
    acc1 = jnp.dot(w1_ref[...], im1[...], preferred_element_type=f32)    # (8,100)x(100,896)
    acc1 = jnp.maximum(acc1 + b1_ref[...], 0.0)                          # bias (8,1) bcast + ReLU
    c1[:, pl.ds(0, CONV1_LEN)] = acc1

    # ---- pool1: 2x2 / stride 2 on the 28x28 grid (row stride 32); max in f32, store bf16 ----
    m1 = jnp.maximum(
        jnp.maximum(c1[:, pl.ds(0, CONV1_LEN)], c1[:, pl.ds(1, CONV1_LEN)]),
        jnp.maximum(c1[:, pl.ds(32, CONV1_LEN)], c1[:, pl.ds(33, CONV1_LEN)]))
    p1[:, pl.ds(0, CONV1_LEN)] = m1.astype(bf16)     # valid at 64*i + 2*j, i, j < 14

    # ---- conv2 (8->1, 5x5, VALID) on the 14x14 pool grid: ONE MXU matmul via bf16 im2col ----
    for di in range(5):
        for dj in range(5):
            t = 5 * di + dj
            s = 64 * di + 2 * dj
            im2[pl.ds(8 * t, 8), :] = p1[:, pl.ds(s, CONV2_LEN)]         # (8, 640) bf16
    acc2 = jnp.dot(w2_ref[...], im2[...], preferred_element_type=f32)    # (1,200)x(200,640)
    acc2 = jnp.maximum(acc2 + b2_ref[...], 0.0)
    c2[:, pl.ds(0, CONV2_LEN)] = acc2

    # ---- pool2: 2x2 / stride 2 on the 10x10 grid (strides 64 / 2) ----
    m2 = jnp.maximum(
        jnp.maximum(c2[:, pl.ds(0, CONV2_LEN)], c2[:, pl.ds(2, CONV2_LEN)]),
        jnp.maximum(c2[:, pl.ds(64, CONV2_LEN)], c2[:, pl.ds(66, CONV2_LEN)]))
    # valid features sit at lanes 128*i + 4*j (i, j < 5); all other lanes hit zero rows of wf1.

    # ---- flatten + fc1 + ReLU + fc2 + ReLU + fc3, entirely VMEM-resident ----
    h = jnp.dot(m2.astype(bf16), wf1_ref[...], preferred_element_type=f32)
    h = jnp.maximum(h + bf1_ref[...], 0.0)                               # (1, 120)
    h = jnp.dot(h.astype(bf16), wf2_ref[...], preferred_element_type=f32)
    h = jnp.maximum(h + bf2_ref[...], 0.0)                               # (1, 84)
    h = jnp.dot(h.astype(bf16), wf3_ref[...], preferred_element_type=f32)
    out_ref[...] = (h + bf3_ref[...]).astype(out_ref.dtype)              # (1, 128) lane-dense


# ----------------------------- host wrapper (layout plumbing only) -----------------------------

def net_forward(params, x_nchw):
    N = x_nchw.shape[0]
    f32 = jnp.float32
    bf16 = jnp.bfloat16

    # Input: NCHW -> (N, C, H*W) flat with row stride 32, zero-padded on lanes, bf16 once here.
    xf = x_nchw.reshape(N, 4, 1024).astype(bf16)
    xf = jnp.pad(xf, ((0, 0), (0, 0), (0, FLAT_IN - 1024)))

    # Conv weights -> (OC, KH*KW*IC) bf16, column order (di, dj, ic) matching the im2col rows.
    w1m = jnp.transpose(params["conv1_w"], (0, 2, 3, 1)).reshape(8, 100).astype(bf16)
    w2m = jnp.transpose(params["conv2_w"], (0, 2, 3, 1)).reshape(1, 200).astype(bf16)
    b1c = params["conv1_b"].reshape(8, 1).astype(f32)
    b2c = params["conv2_b"].reshape(1, 1).astype(f32)

    # fc1 weight scatter-expanded onto the strided pool-2 grid: feature f = 5*i + j lives at
    # lane 128*i + 4*j of the pool-2 value; all other rows are zero.
    f_idx = jnp.arange(25)
    rows = 128 * (f_idx // 5) + 4 * (f_idx % 5)
    wf1 = jnp.zeros((CONV2_LEN, 120), f32).at[rows].set(params["fc1_w"].T).astype(bf16)
    wf2 = params["fc2_w"].T.astype(bf16)                                  # (120, 84)
    # fc3 weight/bias zero-padded to 128 output lanes so the final store is lane-dense.
    wf3 = jnp.zeros((84, OUT_PAD), f32).at[:, :3].set(params["fc3_w"].T).astype(bf16)
    bf1 = params["fc1_b"].reshape(1, 120).astype(f32)
    bf2 = params["fc2_b"].reshape(1, 84).astype(f32)
    bf3 = jnp.zeros((1, OUT_PAD), f32).at[:, :3].set(params["fc3_b"].reshape(1, 3))

    const = lambda i: (0, 0)   # weights/biases: single resident block for every grid step

    out = pl.pallas_call(
        _net_kernel,
        out_shape=jax.ShapeDtypeStruct((N, 1, OUT_PAD), f32),
        grid_spec=pltpu.PrefetchScalarGridSpec(
            num_scalar_prefetch=0,
            grid=(N,),
            in_specs=[
                pl.BlockSpec((None, 4, FLAT_IN), lambda i: (i, 0, 0)),   # x (per sample, bf16)
                pl.BlockSpec((8, 100), const),                           # conv1 weight (bf16)
                pl.BlockSpec((8, 1), const),                             # conv1 bias
                pl.BlockSpec((1, 200), const),                           # conv2 weight (bf16)
                pl.BlockSpec((1, 1), const),                             # conv2 bias
                pl.BlockSpec((CONV2_LEN, 120), const),                   # fc1 weight (expanded)
                pl.BlockSpec((1, 120), const),                           # fc1 bias
                pl.BlockSpec((120, 84), const),                          # fc2 weight
                pl.BlockSpec((1, 84), const),                            # fc2 bias
                pl.BlockSpec((84, OUT_PAD), const),                      # fc3 weight (padded)
                pl.BlockSpec((1, OUT_PAD), const),                       # fc3 bias (padded)
            ],
            out_specs=pl.BlockSpec((None, 1, OUT_PAD), lambda i: (i, 0, 0)),
            scratch_shapes=[
                pltpu.VMEM((8, 1024), f32),              # c1: conv1 output (ReLU'd)
                pltpu.VMEM((8, 1024), bf16),             # p1: pool1 output (bf16)
                pltpu.VMEM((1, 768), f32),               # c2: conv2 output (ReLU'd)
                pltpu.VMEM((100, CONV1_LEN), bf16),      # im2col for conv1
                pltpu.VMEM((200, CONV2_LEN), bf16),      # im2col for conv2
            ],
        ),
        compiler_params=pltpu.CompilerParams(dimension_semantics=("parallel",)),
    )(xf, w1m, b1c, w2m, b2c, wf1, bf1, wf2, bf2, wf3, bf3)
    return out[:, 0, :3]


# ----------------------------- params / reference ----------------------------------------------

def init_params(key):
    """Deterministic init with PyTorch default-like U(-1/sqrt(fan_in), 1/sqrt(fan_in))."""
    ks = jax.random.split(key, 10)

    def u(k, shape, fan_in):
        bound = 1.0 / jnp.sqrt(jnp.float32(fan_in))
        return jax.random.uniform(k, shape, jnp.float32, -bound, bound)

    return {
        "conv1_w": u(ks[0], (8, 4, 5, 5), 4 * 5 * 5),
        "conv1_b": u(ks[1], (8,), 4 * 5 * 5),
        "conv2_w": u(ks[2], (1, 8, 5, 5), 8 * 5 * 5),
        "conv2_b": u(ks[3], (1,), 8 * 5 * 5),
        "fc1_w": u(ks[4], (120, 25), 25),
        "fc1_b": u(ks[5], (120,), 25),
        "fc2_w": u(ks[6], (84, 120), 120),
        "fc2_b": u(ks[7], (84,), 120),
        "fc3_w": u(ks[8], (3, 84), 84),
        "fc3_b": u(ks[9], (3,), 84),
    }


def reference_forward(params, x_nchw):
    """Pure-JAX (XLA) reference with identical semantics, for correctness check."""
    dn = ("NCHW", "OIHW", "NCHW")
    y = jax.lax.conv_general_dilated(x_nchw, params["conv1_w"], (1, 1), "VALID",
                                     dimension_numbers=dn)
    y = jax.nn.relu(y + params["conv1_b"][None, :, None, None])
    y = jax.lax.reduce_window(y, -jnp.inf, jax.lax.max, (1, 1, 2, 2), (1, 1, 2, 2), "VALID")
    y = jax.lax.conv_general_dilated(y, params["conv2_w"], (1, 1), "VALID",
                                     dimension_numbers=dn)
    y = jax.nn.relu(y + params["conv2_b"][None, :, None, None])
    y = jax.lax.reduce_window(y, -jnp.inf, jax.lax.max, (1, 1, 2, 2), (1, 1, 2, 2), "VALID")
    y = y.reshape(y.shape[0], -1)
    y = jax.nn.relu(y @ params["fc1_w"].T + params["fc1_b"])
    y = jax.nn.relu(y @ params["fc2_w"].T + params["fc2_b"])
    y = y @ params["fc3_w"].T + params["fc3_b"]
    return y


if __name__ == "__main__":
    key = jax.random.PRNGKey(0)
    pkey, xkey = jax.random.split(key)
    params = init_params(pkey)
    # fc1 = Linear(25, 120) implies a 32x32 input (32 -> 28 -> 14 -> 10 -> 5; 1*5*5 = 25).
    x = jax.random.normal(xkey, (2, 4, 32, 32), jnp.float32)

    fwd = jax.jit(net_forward)
    out = jax.block_until_ready(fwd(params, x))
    assert out.shape == (2, 3), out.shape

    ref = reference_forward(params, x)
    assert jnp.allclose(out, ref, rtol=5e-2, atol=5e-2), (out, ref)

    print("KERNEL_OK")
</pallas_src>

<mosaic_0001>
module attributes {stable_mosaic.version = 11 : i64} {
  func.func @_net_kernel(%arg0: i32, %arg1: memref<1x4x1152xbf16, #tpu.memory_space<vmem>>, %arg2: memref<8x100xbf16, #tpu.memory_space<vmem>>, %arg3: memref<8x1xf32, #tpu.memory_space<vmem>>, %arg4: memref<1x200xbf16, #tpu.memory_space<vmem>>, %arg5: memref<1x1xf32, #tpu.memory_space<vmem>>, %arg6: memref<640x120xbf16, #tpu.memory_space<vmem>>, %arg7: memref<1x120xf32, #tpu.memory_space<vmem>>, %arg8: memref<120x84xbf16, #tpu.memory_space<vmem>>, %arg9: memref<1x84xf32, #tpu.memory_space<vmem>>, %arg10: memref<84x128xbf16, #tpu.memory_space<vmem>>, %arg11: memref<1x128xf32, #tpu.memory_space<vmem>>, %arg12: memref<1x1x128xf32, #tpu.memory_space<vmem>>, %arg13: memref<8x1024xf32, #tpu.memory_space<vmem>>, %arg14: memref<8x1024xbf16, #tpu.memory_space<vmem>>, %arg15: memref<1x768xf32, #tpu.memory_space<vmem>>, %arg16: memref<100x896xbf16, #tpu.memory_space<vmem>>, %arg17: memref<200x640xbf16, #tpu.memory_space<vmem>>) attributes {dimension_semantics = [#tpu.dimension_semantics<parallel>], iteration_bounds = array<i64: 2>, scalar_prefetch = 0 : i64, scratch_operands = 5 : i64, tpu.core_type = #tpu.core_type<tc>, window_params = [{transform_indices = @transform_0, window_bounds = array<i64: 1, 4, 1152>}, {pipeline_mode = #tpu.pipeline_mode<synchronous>, transform_indices = @transform_1, window_bounds = array<i64: 8, 100>}, {pipeline_mode = #tpu.pipeline_mode<synchronous>, transform_indices = @transform_2, window_bounds = array<i64: 8, 1>}, {pipeline_mode = #tpu.pipeline_mode<synchronous>, transform_indices = @transform_3, window_bounds = array<i64: 1, 200>}, {pipeline_mode = #tpu.pipeline_mode<synchronous>, transform_indices = @transform_4, window_bounds = array<i64: 1, 1>}, {pipeline_mode = #tpu.pipeline_mode<synchronous>, transform_indices = @transform_5, window_bounds = array<i64: 640, 120>}, {pipeline_mode = #tpu.pipeline_mode<synchronous>, transform_indices = @transform_6, window_bounds = array<i64: 1, 120>}, {pipeline_mode = #tpu.pipeline_mode<synchronous>, transform_indices = @transform_7, window_bounds = array<i64: 120, 84>}, {pipeline_mode = #tpu.pipeline_mode<synchronous>, transform_indices = @transform_8, window_bounds = array<i64: 1, 84>}, {pipeline_mode = #tpu.pipeline_mode<synchronous>, transform_indices = @transform_9, window_bounds = array<i64: 84, 128>}, {pipeline_mode = #tpu.pipeline_mode<synchronous>, transform_indices = @transform_10, window_bounds = array<i64: 1, 128>}, {transform_indices = @transform_11, window_bounds = array<i64: 1, 1, 128>}]} {
    %cst = arith.constant 0.000000e+00 : f32
    %0 = vector.broadcast %cst : f32 to vector<8x128xf32>
    %c0 = arith.constant 0 : index
    %c896 = arith.constant 896 : index
    %1 = vector.load %arg13[%c0, %c896] : memref<8x1024xf32, #tpu.memory_space<vmem>>, vector<8x128xf32>
    tpu.vector_store %arg13[%c0, %c896], %0 {strides = array<i32>} : memref<8x1024xf32, #tpu.memory_space<vmem>>, vector<8x128xf32>,
    %cst_0 = arith.constant 0.000000e+00 : bf16
    %2 = vector.broadcast %cst_0 : bf16 to vector<8x128xbf16>
    %c0_1 = arith.constant 0 : index
    %c896_2 = arith.constant 896 : index
    %3 = vector.load %arg14[%c0_1, %c896_2] : memref<8x1024xbf16, #tpu.memory_space<vmem>>, vector<8x128xbf16>
    tpu.vector_store %arg14[%c0_1, %c896_2], %2 {strides = array<i32>} : memref<8x1024xbf16, #tpu.memory_space<vmem>>, vector<8x128xbf16>,
    %cst_3 = arith.constant 0.000000e+00 : f32
    %4 = vector.broadcast %cst_3 : f32 to vector<1x128xf32>
    %c0_4 = arith.constant 0 : index
    %c640 = arith.constant 640 : index
    %5 = vector.load %arg15[%c0_4, %c640] : memref<1x768xf32, #tpu.memory_space<vmem>>, vector<1x128xf32>
    tpu.vector_store %arg15[%c0_4, %c640], %4 {strides = array<i32>} : memref<1x768xf32, #tpu.memory_space<vmem>>, vector<1x128xf32>,
    %c0_5 = arith.constant 0 : index
    %c0_6 = arith.constant 0 : index
    %c0_7 = arith.constant 0 : index
    %6 = vector.load %arg1[%c0_5, %c0_6, %c0_7] : memref<1x4x1152xbf16, #tpu.memory_space<vmem>>, vector<1x4x896xbf16>
    %7 = vector.shape_cast %6 : vector<1x4x896xbf16> to vector<4x896xbf16>
    %c0_8 = arith.constant 0 : index
    %c0_9 = arith.constant 0 : index
    %8 = vector.load %arg16[%c0_8, %c0_9] : memref<100x896xbf16, #tpu.memory_space<vmem>>, vector<4x896xbf16>
    tpu.vector_store %arg16[%c0_8, %c0_9], %7 {strides = array<i32>} : memref<100x896xbf16, #tpu.memory_space<vmem>>, vector<4x896xbf16>,
    %c0_10 = arith.constant 0 : index
    %c0_11 = arith.constant 0 : index
    %c1 = arith.constant 1 : index
    %9 = vector.load %arg1[%c0_10, %c0_11, %c1] : memref<1x4x1152xbf16, #tpu.memory_space<vmem>>, vector<1x4x896xbf16>
    %10 = vector.shape_cast %9 : vector<1x4x896xbf16> to vector<4x896xbf16>
    %c4 = arith.constant 4 : index
    %c0_12 = arith.constant 0 : index
    %11 = vector.load %arg16[%c4, %c0_12] : memref<100x896xbf16, #tpu.memory_space<vmem>>, vector<4x896xbf16>
    tpu.vector_store %arg16[%c4, %c0_12], %10 {strides = array<i32>} : memref<100x896xbf16, #tpu.memory_space<vmem>>, vector<4x896xbf16>,
    %c0_13 = arith.constant 0 : index
    %c0_14 = arith.constant 0 : index
    %c2 = arith.constant 2 : index
    %12 = vector.load %arg1[%c0_13, %c0_14, %c2] : memref<1x4x1152xbf16, #tpu.memory_space<vmem>>, vector<1x4x896xbf16>
    %13 = vector.shape_cast %12 : vector<1x4x896xbf16> to vector<4x896xbf16>
    %c8 = arith.constant 8 : index
    %c0_15 = arith.constant 0 : index
    %14 = vector.load %arg16[%c8, %c0_15] : memref<100x896xbf16, #tpu.memory_space<vmem>>, vector<4x896xbf16>
    tpu.vector_store %arg16[%c8, %c0_15], %13 {strides = array<i32>} : memref<100x896xbf16, #tpu.memory_space<vmem>>, vector<4x896xbf16>,
    %c0_16 = arith.constant 0 : index
    %c0_17 = arith.constant 0 : index
    %c3 = arith.constant 3 : index
    %15 = vector.load %arg1[%c0_16, %c0_17, %c3] : memref<1x4x1152xbf16, #tpu.memory_space<vmem>>, vector<1x4x896xbf16>
    %16 = vector.shape_cast %15 : vector<1x4x896xbf16> to vector<4x896xbf16>
    %c12 = arith.constant 12 : index
    %c0_18 = arith.constant 0 : index
    %17 = vector.load %arg16[%c12, %c0_18] : memref<100x896xbf16, #tpu.memory_space<vmem>>, vector<4x896xbf16>
    tpu.vector_store %arg16[%c12, %c0_18], %16 {strides = array<i32>} : memref<100x896xbf16, #tpu.memory_space<vmem>>, vector<4x896xbf16>,
    %c0_19 = arith.constant 0 : index
    %c0_20 = arith.constant 0 : index
    %c4_21 = arith.constant 4 : index
    %18 = vector.load %arg1[%c0_19, %c0_20, %c4_21] : memref<1x4x1152xbf16, #tpu.memory_space<vmem>>, vector<1x4x896xbf16>
    %19 = vector.shape_cast %18 : vector<1x4x896xbf16> to vector<4x896xbf16>
    %c16 = arith.constant 16 : index
    %c0_22 = arith.constant 0 : index
    %20 = vector.load %arg16[%c16, %c0_22] : memref<100x896xbf16, #tpu.memory_space<vmem>>, vector<4x896xbf16>
    tpu.vector_store %arg16[%c16, %c0_22], %19 {strides = array<i32>} : memref<100x896xbf16, #tpu.memory_space<vmem>>, vector<4x896xbf16>,
    %c0_23 = arith.constant 0 : index
    %c0_24 = arith.constant 0 : index
    %c32 = arith.constant 32 : index
    %21 = vector.load %arg1[%c0_23, %c0_24, %c32] : memref<1x4x1152xbf16, #tpu.memory_space<vmem>>, vector<1x4x896xbf16>
    %22 = vector.shape_cast %21 : vector<1x4x896xbf16> to vector<4x896xbf16>
    %c20 = arith.constant 20 : index
    %c0_25 = arith.constant 0 : index
    %23 = vector.load %arg16[%c20, %c0_25] : memref<100x896xbf16, #tpu.memory_space<vmem>>, vector<4x896xbf16>
    tpu.vector_store %arg16[%c20, %c0_25], %22 {strides = array<i32>} : memref<100x896xbf16, #tpu.memory_space<vmem>>, vector<4x896xbf16>,
    %c0_26 = arith.constant 0 : index
    %c0_27 = arith.constant 0 : index
    %c33 = arith.constant 33 : index
    %24 = vector.load %arg1[%c0_26, %c0_27, %c33] : memref<1x4x1152xbf16, #tpu.memory_space<vmem>>, vector<1x4x896xbf16>
    %25 = vector.shape_cast %24 : vector<1x4x896xbf16> to vector<4x896xbf16>
    %c24 = arith.constant 24 : index
    %c0_28 = arith.constant 0 : index
    %26 = vector.load %arg16[%c24, %c0_28] : memref<100x896xbf16, #tpu.memory_space<vmem>>, vector<4x896xbf16>
    tpu.vector_store %arg16[%c24, %c0_28], %25 {strides = array<i32>} : memref<100x896xbf16, #tpu.memory_space<vmem>>, vector<4x896xbf16>,
    %c0_29 = arith.constant 0 : index
    %c0_30 = arith.constant 0 : index
    %c34 = arith.constant 34 : index
    %27 = vector.load %arg1[%c0_29, %c0_30, %c34] : memref<1x4x1152xbf16, #tpu.memory_space<vmem>>, vector<1x4x896xbf16>
    %28 = vector.shape_cast %27 : vector<1x4x896xbf16> to vector<4x896xbf16>
    %c28 = arith.constant 28 : index
    %c0_31 = arith.constant 0 : index
    %29 = vector.load %arg16[%c28, %c0_31] : memref<100x896xbf16, #tpu.memory_space<vmem>>, vector<4x896xbf16>
    tpu.vector_store %arg16[%c28, %c0_31], %28 {strides = array<i32>} : memref<100x896xbf16, #tpu.memory_space<vmem>>, vector<4x896xbf16>,
    %c0_32 = arith.constant 0 : index
    %c0_33 = arith.constant 0 : index
    %c35 = arith.constant 35 : index
    %30 = vector.load %arg1[%c0_32, %c0_33, %c35] : memref<1x4x1152xbf16, #tpu.memory_space<vmem>>, vector<1x4x896xbf16>
    %31 = vector.shape_cast %30 : vector<1x4x896xbf16> to vector<4x896xbf16>
    %c32_34 = arith.constant 32 : index
    %c0_35 = arith.constant 0 : index
    %32 = vector.load %arg16[%c32_34, %c0_35] : memref<100x896xbf16, #tpu.memory_space<vmem>>, vector<4x896xbf16>
    tpu.vector_store %arg16[%c32_34, %c0_35], %31 {strides = array<i32>} : memref<100x896xbf16, #tpu.memory_space<vmem>>, vector<4x896xbf16>,
    %c0_36 = arith.constant 0 : index
    %c0_37 = arith.constant 0 : index
    %c36 = arith.constant 36 : index
    %33 = vector.load %arg1[%c0_36, %c0_37, %c36] : memref<1x4x1152xbf16, #tpu.memory_space<vmem>>, vector<1x4x896xbf16>
    %34 = vector.shape_cast %33 : vector<1x4x896xbf16> to vector<4x896xbf16>
    %c36_38 = arith.constant 36 : index
    %c0_39 = arith.constant 0 : index
    %35 = vector.load %arg16[%c36_38, %c0_39] : memref<100x896xbf16, #tpu.memory_space<vmem>>, vector<4x896xbf16>
    tpu.vector_store %arg16[%c36_38, %c0_39], %34 {strides = array<i32>} : memref<100x896xbf16, #tpu.memory_space<vmem>>, vector<4x896xbf16>,
    %c0_40 = arith.constant 0 : index
    %c0_41 = arith.constant 0 : index
    %c64 = arith.constant 64 : index
    %36 = vector.load %arg1[%c0_40, %c0_41, %c64] : memref<1x4x1152xbf16, #tpu.memory_space<vmem>>, vector<1x4x896xbf16>
    %37 = vector.shape_cast %36 : vector<1x4x896xbf16> to vector<4x896xbf16>
    %c40 = arith.constant 40 : index
    %c0_42 = arith.constant 0 : index
    %38 = vector.load %arg16[%c40, %c0_42] : memref<100x896xbf16, #tpu.memory_space<vmem>>, vector<4x896xbf16>
    tpu.vector_store %arg16[%c40, %c0_42], %37 {strides = array<i32>} : memref<100x896xbf16, #tpu.memory_space<vmem>>, vector<4x896xbf16>,
    %c0_43 = arith.constant 0 : index
    %c0_44 = arith.constant 0 : index
    %c65 = arith.constant 65 : index
    %39 = vector.load %arg1[%c0_43, %c0_44, %c65] : memref<1x4x1152xbf16, #tpu.memory_space<vmem>>, vector<1x4x896xbf16>
    %40 = vector.shape_cast %39 : vector<1x4x896xbf16> to vector<4x896xbf16>
    %c44 = arith.constant 44 : index
    %c0_45 = arith.constant 0 : index
    %41 = vector.load %arg16[%c44, %c0_45] : memref<100x896xbf16, #tpu.memory_space<vmem>>, vector<4x896xbf16>
    tpu.vector_store %arg16[%c44, %c0_45], %40 {strides = array<i32>} : memref<100x896xbf16, #tpu.memory_space<vmem>>, vector<4x896xbf16>,
    %c0_46 = arith.constant 0 : index
    %c0_47 = arith.constant 0 : index
    %c66 = arith.constant 66 : index
    %42 = vector.load %arg1[%c0_46, %c0_47, %c66] : memref<1x4x1152xbf16, #tpu.memory_space<vmem>>, vector<1x4x896xbf16>
    %43 = vector.shape_cast %42 : vector<1x4x896xbf16> to vector<4x896xbf16>
    %c48 = arith.constant 48 : index
    %c0_48 = arith.constant 0 : index
    %44 = vector.load %arg16[%c48, %c0_48] : memref<100x896xbf16, #tpu.memory_space<vmem>>, vector<4x896xbf16>
    tpu.vector_store %arg16[%c48, %c0_48], %43 {strides = array<i32>} : memref<100x896xbf16, #tpu.memory_space<vmem>>, vector<4x896xbf16>,
    %c0_49 = arith.constant 0 : index
    %c0_50 = arith.constant 0 : index
    %c67 = arith.constant 67 : index
    %45 = vector.load %arg1[%c0_49, %c0_50, %c67] : memref<1x4x1152xbf16, #tpu.memory_space<vmem>>, vector<1x4x896xbf16>
    %46 = vector.shape_cast %45 : vector<1x4x896xbf16> to vector<4x896xbf16>
    %c52 = arith.constant 52 : index
    %c0_51 = arith.constant 0 : index
    %47 = vector.load %arg16[%c52, %c0_51] : memref<100x896xbf16, #tpu.memory_space<vmem>>, vector<4x896xbf16>
    tpu.vector_store %arg16[%c52, %c0_51], %46 {strides = array<i32>} : memref<100x896xbf16, #tpu.memory_space<vmem>>, vector<4x896xbf16>,
    %c0_52 = arith.constant 0 : index
    %c0_53 = arith.constant 0 : index
    %c68 = arith.constant 68 : index
    %48 = vector.load %arg1[%c0_52, %c0_53, %c68] : memref<1x4x1152xbf16, #tpu.memory_space<vmem>>, vector<1x4x896xbf16>
    %49 = vector.shape_cast %48 : vector<1x4x896xbf16> to vector<4x896xbf16>
    %c56 = arith.constant 56 : index
    %c0_54 = arith.constant 0 : index
    %50 = vector.load %arg16[%c56, %c0_54] : memref<100x896xbf16, #tpu.memory_space<vmem>>, vector<4x896xbf16>
    tpu.vector_store %arg16[%c56, %c0_54], %49 {strides = array<i32>} : memref<100x896xbf16, #tpu.memory_space<vmem>>, vector<4x896xbf16>,
    %c0_55 = arith.constant 0 : index
    %c0_56 = arith.constant 0 : index
    %c96 = arith.constant 96 : index
    %51 = vector.load %arg1[%c0_55, %c0_56, %c96] : memref<1x4x1152xbf16, #tpu.memory_space<vmem>>, vector<1x4x896xbf16>
    %52 = vector.shape_cast %51 : vector<1x4x896xbf16> to vector<4x896xbf16>
    %c60 = arith.constant 60 : index
    %c0_57 = arith.constant 0 : index
    %53 = vector.load %arg16[%c60, %c0_57] : memref<100x896xbf16, #tpu.memory_space<vmem>>, vector<4x896xbf16>
    tpu.vector_store %arg16[%c60, %c0_57], %52 {strides = array<i32>} : memref<100x896xbf16, #tpu.memory_space<vmem>>, vector<4x896xbf16>,
    %c0_58 = arith.constant 0 : index
    %c0_59 = arith.constant 0 : index
    %c97 = arith.constant 97 : index
    %54 = vector.load %arg1[%c0_58, %c0_59, %c97] : memref<1x4x1152xbf16, #tpu.memory_space<vmem>>, vector<1x4x896xbf16>
    %55 = vector.shape_cast %54 : vector<1x4x896xbf16> to vector<4x896xbf16>
    %c64_60 = arith.constant 64 : index
    %c0_61 = arith.constant 0 : index
    %56 = vector.load %arg16[%c64_60, %c0_61] : memref<100x896xbf16, #tpu.memory_space<vmem>>, vector<4x896xbf16>
    tpu.vector_store %arg16[%c64_60, %c0_61], %55 {strides = array<i32>} : memref<100x896xbf16, #tpu.memory_space<vmem>>, vector<4x896xbf16>,
    %c0_62 = arith.constant 0 : index
    %c0_63 = arith.constant 0 : index
    %c98 = arith.constant 98 : index
    %57 = vector.load %arg1[%c0_62, %c0_63, %c98] : memref<1x4x1152xbf16, #tpu.memory_space<vmem>>, vector<1x4x896xbf16>
    %58 = vector.shape_cast %57 : vector<1x4x896xbf16> to vector<4x896xbf16>
    %c68_64 = arith.constant 68 : index
    %c0_65 = arith.constant 0 : index
    %59 = vector.load %arg16[%c68_64, %c0_65] : memref<100x896xbf16, #tpu.memory_space<vmem>>, vector<4x896xbf16>
    tpu.vector_store %arg16[%c68_64, %c0_65], %58 {strides = array<i32>} : memref<100x896xbf16, #tpu.memory_space<vmem>>, vector<4x896xbf16>,
    %c0_66 = arith.constant 0 : index
    %c0_67 = arith.constant 0 : index
    %c99 = arith.constant 99 : index
    %60 = vector.load %arg1[%c0_66, %c0_67, %c99] : memref<1x4x1152xbf16, #tpu.memory_space<vmem>>, vector<1x4x896xbf16>
    %61 = vector.shape_cast %60 : vector<1x4x896xbf16> to vector<4x896xbf16>
    %c72 = arith.constant 72 : index
    %c0_68 = arith.constant 0 : index
    %62 = vector.load %arg16[%c72, %c0_68] : memref<100x896xbf16, #tpu.memory_space<vmem>>, vector<4x896xbf16>
    tpu.vector_store %arg16[%c72, %c0_68], %61 {strides = array<i32>} : memref<100x896xbf16, #tpu.memory_space<vmem>>, vector<4x896xbf16>,
    %c0_69 = arith.constant 0 : index
    %c0_70 = arith.constant 0 : index
    %c100 = arith.constant 100 : index
    %63 = vector.load %arg1[%c0_69, %c0_70, %c100] : memref<1x4x1152xbf16, #tpu.memory_space<vmem>>, vector<1x4x896xbf16>
    %64 = vector.shape_cast %63 : vector<1x4x896xbf16> to vector<4x896xbf16>
    %c76 = arith.constant 76 : index
    %c0_71 = arith.constant 0 : index
    %65 = vector.load %arg16[%c76, %c0_71] : memref<100x896xbf16, #tpu.memory_space<vmem>>, vector<4x896xbf16>
    tpu.vector_store %arg16[%c76, %c0_71], %64 {strides = array<i32>} : memref<100x896xbf16, #tpu.memory_space<vmem>>, vector<4x896xbf16>,
    %c0_72 = arith.constant 0 : index
    %c0_73 = arith.constant 0 : index
    %c128 = arith.constant 128 : index
    %66 = vector.load %arg1[%c0_72, %c0_73, %c128] : memref<1x4x1152xbf16, #tpu.memory_space<vmem>>, vector<1x4x896xbf16>
    %67 = vector.shape_cast %66 : vector<1x4x896xbf16> to vector<4x896xbf16>
    %c80 = arith.constant 80 : index
    %c0_74 = arith.constant 0 : index
    %68 = vector.load %arg16[%c80, %c0_74] : memref<100x896xbf16, #tpu.memory_space<vmem>>, vector<4x896xbf16>
    tpu.vector_store %arg16[%c80, %c0_74], %67 {strides = array<i32>} : memref<100x896xbf16, #tpu.memory_space<vmem>>, vector<4x896xbf16>,
    %c0_75 = arith.constant 0 : index
    %c0_76 = arith.constant 0 : index
    %c129 = arith.constant 129 : index
    %69 = vector.load %arg1[%c0_75, %c0_76, %c129] : memref<1x4x1152xbf16, #tpu.memory_space<vmem>>, vector<1x4x896xbf16>
    %70 = vector.shape_cast %69 : vector<1x4x896xbf16> to vector<4x896xbf16>
    %c84 = arith.constant 84 : index
    %c0_77 = arith.constant 0 : index
    %71 = vector.load %arg16[%c84, %c0_77] : memref<100x896xbf16, #tpu.memory_space<vmem>>, vector<4x896xbf16>
    tpu.vector_store %arg16[%c84, %c0_77], %70 {strides = array<i32>} : memref<100x896xbf16, #tpu.memory_space<vmem>>, vector<4x896xbf16>,
    %c0_78 = arith.constant 0 : index
    %c0_79 = arith.constant 0 : index
    %c130 = arith.constant 130 : index
    %72 = vector.load %arg1[%c0_78, %c0_79, %c130] : memref<1x4x1152xbf16, #tpu.memory_space<vmem>>, vector<1x4x896xbf16>
    %73 = vector.shape_cast %72 : vector<1x4x896xbf16> to vector<4x896xbf16>
    %c88 = arith.constant 88 : index
    %c0_80 = arith.constant 0 : index
    %74 = vector.load %arg16[%c88, %c0_80] : memref<100x896xbf16, #tpu.memory_space<vmem>>, vector<4x896xbf16>
    tpu.vector_store %arg16[%c88, %c0_80], %73 {strides = array<i32>} : memref<100x896xbf16, #tpu.memory_space<vmem>>, vector<4x896xbf16>,
    %c0_81 = arith.constant 0 : index
    %c0_82 = arith.constant 0 : index
    %c131 = arith.constant 131 : index
    %75 = vector.load %arg1[%c0_81, %c0_82, %c131] : memref<1x4x1152xbf16, #tpu.memory_space<vmem>>, vector<1x4x896xbf16>
    %76 = vector.shape_cast %75 : vector<1x4x896xbf16> to vector<4x896xbf16>
    %c92 = arith.constant 92 : index
    %c0_83 = arith.constant 0 : index
    %77 = vector.load %arg16[%c92, %c0_83] : memref<100x896xbf16, #tpu.memory_space<vmem>>, vector<4x896xbf16>
    tpu.vector_store %arg16[%c92, %c0_83], %76 {strides = array<i32>} : memref<100x896xbf16, #tpu.memory_space<vmem>>, vector<4x896xbf16>,
    %c0_84 = arith.constant 0 : index
    %c0_85 = arith.constant 0 : index
    %c132 = arith.constant 132 : index
    %78 = vector.load %arg1[%c0_84, %c0_85, %c132] : memref<1x4x1152xbf16, #tpu.memory_space<vmem>>, vector<1x4x896xbf16>
    %79 = vector.shape_cast %78 : vector<1x4x896xbf16> to vector<4x896xbf16>
    %c96_86 = arith.constant 96 : index
    %c0_87 = arith.constant 0 : index
    %80 = vector.load %arg16[%c96_86, %c0_87] : memref<100x896xbf16, #tpu.memory_space<vmem>>, vector<4x896xbf16>
    tpu.vector_store %arg16[%c96_86, %c0_87], %79 {strides = array<i32>} : memref<100x896xbf16, #tpu.memory_space<vmem>>, vector<4x896xbf16>,
    %c0_88 = arith.constant 0 : index
    %c0_89 = arith.constant 0 : index
    %81 = vector.load %arg2[%c0_88, %c0_89] : memref<8x100xbf16, #tpu.memory_space<vmem>>, vector<8x100xbf16>
    %c0_90 = arith.constant 0 : index
    %c0_91 = arith.constant 0 : index
    %82 = vector.load %arg16[%c0_90, %c0_91] : memref<100x896xbf16, #tpu.memory_space<vmem>>, vector<100x896xbf16>
    %cst_92 = arith.constant dense<0.000000e+00> : vector<8x896xf32>
    %83 = tpu.matmul %81, %82, %cst_92 {dimension_numbers = #tpu.dot_dimension_numbers<[1], [0], [0], [1], [0, 0, 1, 1], [], []>} : vector<8x100xbf16>, vector<100x896xbf16>, vector<8x896xf32> -> vector<8x896xf32>
    %c0_93 = arith.constant 0 : index
    %c0_94 = arith.constant 0 : index
    %84 = vector.load %arg3[%c0_93, %c0_94] : memref<8x1xf32, #tpu.memory_space<vmem>>, vector<8x1xf32>
    %85 = vector.broadcast %84 : vector<8x1xf32> to vector<8x896xf32>
    %86 = arith.addf %83, %85 : vector<8x896xf32>
    %cst_95 = arith.constant 0.000000e+00 : f32
    %87 = vector.broadcast %cst_95 : f32 to vector<8x896xf32>
    %88 = arith.maximumf %86, %87 : vector<8x896xf32>
    %c0_96 = arith.constant 0 : index
    %c0_97 = arith.constant 0 : index
    %89 = vector.load %arg13[%c0_96, %c0_97] : memref<8x1024xf32, #tpu.memory_space<vmem>>, vector<8x896xf32>
    tpu.vector_store %arg13[%c0_96, %c0_97], %88 {strides = array<i32>} : memref<8x1024xf32, #tpu.memory_space<vmem>>, vector<8x896xf32>,
    %c0_98 = arith.constant 0 : index
    %c0_99 = arith.constant 0 : index
    %90 = vector.load %arg13[%c0_98, %c0_99] : memref<8x1024xf32, #tpu.memory_space<vmem>>, vector<8x896xf32>
    %c0_100 = arith.constant 0 : index
    %c1_101 = arith.constant 1 : index
    %91 = vector.load %arg13[%c0_100, %c1_101] : memref<8x1024xf32, #tpu.memory_space<vmem>>, vector<8x896xf32>
    %92 = arith.maximumf %90, %91 : vector<8x896xf32>
    %c0_102 = arith.constant 0 : index
    %c32_103 = arith.constant 32 : index
    %93 = vector.load %arg13[%c0_102, %c32_103] : memref<8x1024xf32, #tpu.memory_space<vmem>>, vector<8x896xf32>
    %c0_104 = arith.constant 0 : index
    %c33_105 = arith.constant 33 : index
    %94 = vector.load %arg13[%c0_104, %c33_105] : memref<8x1024xf32, #tpu.memory_space<vmem>>, vector<8x896xf32>
    %95 = arith.maximumf %93, %94 : vector<8x896xf32>
    %96 = arith.maximumf %92, %95 : vector<8x896xf32>
    %97 = arith.truncf %96 : vector<8x896xf32> to vector<8x896xbf16>
    %c0_106 = arith.constant 0 : index
    %c0_107 = arith.constant 0 : index
    %98 = vector.load %arg14[%c0_106, %c0_107] : memref<8x1024xbf16, #tpu.memory_space<vmem>>, vector<8x896xbf16>
    tpu.vector_store %arg14[%c0_106, %c0_107], %97 {strides = array<i32>} : memref<8x1024xbf16, #tpu.memory_space<vmem>>, vector<8x896xbf16>,
    %c0_108 = arith.constant 0 : index
    %c0_109 = arith.constant 0 : index
    %99 = vector.load %arg14[%c0_108, %c0_109] : memref<8x1024xbf16, #tpu.memory_space<vmem>>, vector<8x640xbf16>
    %c0_110 = arith.constant 0 : index
    %c0_111 = arith.constant 0 : index
    %100 = vector.load %arg17[%c0_110, %c0_111] : memref<200x640xbf16, #tpu.memory_space<vmem>>, vector<8x640xbf16>
    tpu.vector_store %arg17[%c0_110, %c0_111], %99 {strides = array<i32>} : memref<200x640xbf16, #tpu.memory_space<vmem>>, vector<8x640xbf16>,
    %c0_112 = arith.constant 0 : index
    %c2_113 = arith.constant 2 : index
    %101 = vector.load %arg14[%c0_112, %c2_113] : memref<8x1024xbf16, #tpu.memory_space<vmem>>, vector<8x640xbf16>
    %c8_114 = arith.constant 8 : index
    %c0_115 = arith.constant 0 : index
    %102 = vector.load %arg17[%c8_114, %c0_115] : memref<200x640xbf16, #tpu.memory_space<vmem>>, vector<8x640xbf16>
    tpu.vector_store %arg17[%c8_114, %c0_115], %101 {strides = array<i32>} : memref<200x640xbf16, #tpu.memory_space<vmem>>, vector<8x640xbf16>,
    %c0_116 = arith.constant 0 : index
    %c4_117 = arith.constant 4 : index
    %103 = vector.load %arg14[%c0_116, %c4_117] : memref<8x1024xbf16, #tpu.memory_space<vmem>>, vector<8x640xbf16>
    %c16_118 = arith.constant 16 : index
    %c0_119 = arith.constant 0 : index
    %104 = vector.load %arg17[%c16_118, %c0_119] : memref<200x640xbf16, #tpu.memory_space<vmem>>, vector<8x640xbf16>
    tpu.vector_store %arg17[%c16_118, %c0_119], %103 {strides = array<i32>} : memref<200x640xbf16, #tpu.memory_space<vmem>>, vector<8x640xbf16>,
    %c0_120 = arith.constant 0 : index
    %c6 = arith.constant 6 : index
    %105 = vector.load %arg14[%c0_120, %c6] : memref<8x1024xbf16, #tpu.memory_space<vmem>>, vector<8x640xbf16>
    %c24_121 = arith.constant 24 : index
    %c0_122 = arith.constant 0 : index
    %106 = vector.load %arg17[%c24_121, %c0_122] : memref<200x640xbf16, #tpu.memory_space<vmem>>, vector<8x640xbf16>
    tpu.vector_store %arg17[%c24_121, %c0_122], %105 {strides = array<i32>} : memref<200x640xbf16, #tpu.memory_space<vmem>>, vector<8x640xbf16>,
    %c0_123 = arith.constant 0 : index
    %c8_124 = arith.constant 8 : index
    %107 = vector.load %arg14[%c0_123, %c8_124] : memref<8x1024xbf16, #tpu.memory_space<vmem>>, vector<8x640xbf16>
    %c32_125 = arith.constant 32 : index
    %c0_126 = arith.constant 0 : index
    %108 = vector.load %arg17[%c32_125, %c0_126] : memref<200x640xbf16, #tpu.memory_space<vmem>>, vector<8x640xbf16>
    tpu.vector_store %arg17[%c32_125, %c0_126], %107 {strides = array<i32>} : memref<200x640xbf16, #tpu.memory_space<vmem>>, vector<8x640xbf16>,
    %c0_127 = arith.constant 0 : index
    %c64_128 = arith.constant 64 : index
    %109 = vector.load %arg14[%c0_127, %c64_128] : memref<8x1024xbf16, #tpu.memory_space<vmem>>, vector<8x640xbf16>
    %c40_129 = arith.constant 40 : index
    %c0_130 = arith.constant 0 : index
    %110 = vector.load %arg17[%c40_129, %c0_130] : memref<200x640xbf16, #tpu.memory_space<vmem>>, vector<8x640xbf16>
    tpu.vector_store %arg17[%c40_129, %c0_130], %109 {strides = array<i32>} : memref<200x640xbf16, #tpu.memory_space<vmem>>, vector<8x640xbf16>,
    %c0_131 = arith.constant 0 : index
    %c66_132 = arith.constant 66 : index
    %111 = vector.load %arg14[%c0_131, %c66_132] : memref<8x1024xbf16, #tpu.memory_space<vmem>>, vector<8x640xbf16>
    %c48_133 = arith.constant 48 : index
    %c0_134 = arith.constant 0 : index
    %112 = vector.load %arg17[%c48_133, %c0_134] : memref<200x640xbf16, #tpu.memory_space<vmem>>, vector<8x640xbf16>
    tpu.vector_store %arg17[%c48_133, %c0_134], %111 {strides = array<i32>} : memref<200x640xbf16, #tpu.memory_space<vmem>>, vector<8x640xbf16>,
    %c0_135 = arith.constant 0 : index
    %c68_136 = arith.constant 68 : index
    %113 = vector.load %arg14[%c0_135, %c68_136] : memref<8x1024xbf16, #tpu.memory_space<vmem>>, vector<8x640xbf16>
    %c56_137 = arith.constant 56 : index
    %c0_138 = arith.constant 0 : index
    %114 = vector.load %arg17[%c56_137, %c0_138] : memref<200x640xbf16, #tpu.memory_space<vmem>>, vector<8x640xbf16>
    tpu.vector_store %arg17[%c56_137, %c0_138], %113 {strides = array<i32>} : memref<200x640xbf16, #tpu.memory_space<vmem>>, vector<8x640xbf16>,
    %c0_139 = arith.constant 0 : index
    %c70 = arith.constant 70 : index
    %115 = vector.load %arg14[%c0_139, %c70] : memref<8x1024xbf16, #tpu.memory_space<vmem>>, vector<8x640xbf16>
    %c64_140 = arith.constant 64 : index
    %c0_141 = arith.constant 0 : index
    %116 = vector.load %arg17[%c64_140, %c0_141] : memref<200x640xbf16, #tpu.memory_space<vmem>>, vector<8x640xbf16>
    tpu.vector_store %arg17[%c64_140, %c0_141], %115 {strides = array<i32>} : memref<200x640xbf16, #tpu.memory_space<vmem>>, vector<8x640xbf16>,
    %c0_142 = arith.constant 0 : index
    %c72_143 = arith.constant 72 : index
    %117 = vector.load %arg14[%c0_142, %c72_143] : memref<8x1024xbf16, #tpu.memory_space<vmem>>, vector<8x640xbf16>
    %c72_144 = arith.constant 72 : index
    %c0_145 = arith.constant 0 : index
    %118 = vector.load %arg17[%c72_144, %c0_145] : memref<200x640xbf16, #tpu.memory_space<vmem>>, vector<8x640xbf16>
    tpu.vector_store %arg17[%c72_144, %c0_145], %117 {strides = array<i32>} : memref<200x640xbf16, #tpu.memory_space<vmem>>, vector<8x640xbf16>,
    %c0_146 = arith.constant 0 : index
    %c128_147 = arith.constant 128 : index
    %119 = vector.load %arg14[%c0_146, %c128_147] : memref<8x1024xbf16, #tpu.memory_space<vmem>>, vector<8x640xbf16>
    %c80_148 = arith.constant 80 : index
    %c0_149 = arith.constant 0 : index
    %120 = vector.load %arg17[%c80_148, %c0_149] : memref<200x640xbf16, #tpu.memory_space<vmem>>, vector<8x640xbf16>
    tpu.vector_store %arg17[%c80_148, %c0_149], %119 {strides = array<i32>} : memref<200x640xbf16, #tpu.memory_space<vmem>>, vector<8x640xbf16>,
    %c0_150 = arith.constant 0 : index
    %c130_151 = arith.constant 130 : index
    %121 = vector.load %arg14[%c0_150, %c130_151] : memref<8x1024xbf16, #tpu.memory_space<vmem>>, vector<8x640xbf16>
    %c88_152 = arith.constant 88 : index
    %c0_153 = arith.constant 0 : index
    %122 = vector.load %arg17[%c88_152, %c0_153] : memref<200x640xbf16, #tpu.memory_space<vmem>>, vector<8x640xbf16>
    tpu.vector_store %arg17[%c88_152, %c0_153], %121 {strides = array<i32>} : memref<200x640xbf16, #tpu.memory_space<vmem>>, vector<8x640xbf16>,
    %c0_154 = arith.constant 0 : index
    %c132_155 = arith.constant 132 : index
    %123 = vector.load %arg14[%c0_154, %c132_155] : memref<8x1024xbf16, #tpu.memory_space<vmem>>, vector<8x640xbf16>
    %c96_156 = arith.constant 96 : index
    %c0_157 = arith.constant 0 : index
    %124 = vector.load %arg17[%c96_156, %c0_157] : memref<200x640xbf16, #tpu.memory_space<vmem>>, vector<8x640xbf16>
    tpu.vector_store %arg17[%c96_156, %c0_157], %123 {strides = array<i32>} : memref<200x640xbf16, #tpu.memory_space<vmem>>, vector<8x640xbf16>,
    %c0_158 = arith.constant 0 : index
    %c134 = arith.constant 134 : index
    %125 = vector.load %arg14[%c0_158, %c134] : memref<8x1024xbf16, #tpu.memory_space<vmem>>, vector<8x640xbf16>
    %c104 = arith.constant 104 : index
    %c0_159 = arith.constant 0 : index
    %126 = vector.load %arg17[%c104, %c0_159] : memref<200x640xbf16, #tpu.memory_space<vmem>>, vector<8x640xbf16>
    tpu.vector_store %arg17[%c104, %c0_159], %125 {strides = array<i32>} : memref<200x640xbf16, #tpu.memory_space<vmem>>, vector<8x640xbf16>,
    %c0_160 = arith.constant 0 : index
    %c136 = arith.constant 136 : index
    %127 = vector.load %arg14[%c0_160, %c136] : memref<8x1024xbf16, #tpu.memory_space<vmem>>, vector<8x640xbf16>
    %c112 = arith.constant 112 : index
    %c0_161 = arith.constant 0 : index
    %128 = vector.load %arg17[%c112, %c0_161] : memref<200x640xbf16, #tpu.memory_space<vmem>>, vector<8x640xbf16>
    tpu.vector_store %arg17[%c112, %c0_161], %127 {strides = array<i32>} : memref<200x640xbf16, #tpu.memory_space<vmem>>, vector<8x640xbf16>,
    %c0_162 = arith.constant 0 : index
    %c192 = arith.constant 192 : index
    %129 = vector.load %arg14[%c0_162, %c192] : memref<8x1024xbf16, #tpu.memory_space<vmem>>, vector<8x640xbf16>
    %c120 = arith.constant 120 : index
    %c0_163 = arith.constant 0 : index
    %130 = vector.load %arg17[%c120, %c0_163] : memref<200x640xbf16, #tpu.memory_space<vmem>>, vector<8x640xbf16>
    tpu.vector_store %arg17[%c120, %c0_163], %129 {strides = array<i32>} : memref<200x640xbf16, #tpu.memory_space<vmem>>, vector<8x640xbf16>,
    %c0_164 = arith.constant 0 : index
    %c194 = arith.constant 194 : index
    %131 = vector.load %arg14[%c0_164, %c194] : memref<8x1024xbf16, #tpu.memory_space<vmem>>, vector<8x640xbf16>
    %c128_165 = arith.constant 128 : index
    %c0_166 = arith.constant 0 : index
    %132 = vector.load %arg17[%c128_165, %c0_166] : memref<200x640xbf16, #tpu.memory_space<vmem>>, vector<8x640xbf16>
    tpu.vector_store %arg17[%c128_165, %c0_166], %131 {strides = array<i32>} : memref<200x640xbf16, #tpu.memory_space<vmem>>, vector<8x640xbf16>,
    %c0_167 = arith.constant 0 : index
    %c196 = arith.constant 196 : index
    %133 = vector.load %arg14[%c0_167, %c196] : memref<8x1024xbf16, #tpu.memory_space<vmem>>, vector<8x640xbf16>
    %c136_168 = arith.constant 136 : index
    %c0_169 = arith.constant 0 : index
    %134 = vector.load %arg17[%c136_168, %c0_169] : memref<200x640xbf16, #tpu.memory_space<vmem>>, vector<8x640xbf16>
    tpu.vector_store %arg17[%c136_168, %c0_169], %133 {strides = array<i32>} : memref<200x640xbf16, #tpu.memory_space<vmem>>, vector<8x640xbf16>,
    %c0_170 = arith.constant 0 : index
    %c198 = arith.constant 198 : index
    %135 = vector.load %arg14[%c0_170, %c198] : memref<8x1024xbf16, #tpu.memory_space<vmem>>, vector<8x640xbf16>
    %c144 = arith.constant 144 : index
    %c0_171 = arith.constant 0 : index
    %136 = vector.load %arg17[%c144, %c0_171] : memref<200x640xbf16, #tpu.memory_space<vmem>>, vector<8x640xbf16>
    tpu.vector_store %arg17[%c144, %c0_171], %135 {strides = array<i32>} : memref<200x640xbf16, #tpu.memory_space<vmem>>, vector<8x640xbf16>,
    %c0_172 = arith.constant 0 : index
    %c200 = arith.constant 200 : index
    %137 = vector.load %arg14[%c0_172, %c200] : memref<8x1024xbf16, #tpu.memory_space<vmem>>, vector<8x640xbf16>
    %c152 = arith.constant 152 : index
    %c0_173 = arith.constant 0 : index
    %138 = vector.load %arg17[%c152, %c0_173] : memref<200x640xbf16, #tpu.memory_space<vmem>>, vector<8x640xbf16>
    tpu.vector_store %arg17[%c152, %c0_173], %137 {strides = array<i32>} : memref<200x640xbf16, #tpu.memory_space<vmem>>, vector<8x640xbf16>,
    %c0_174 = arith.constant 0 : index
    %c256 = arith.constant 256 : index
    %139 = vector.load %arg14[%c0_174, %c256] : memref<8x1024xbf16, #tpu.memory_space<vmem>>, vector<8x640xbf16>
    %c160 = arith.constant 160 : index
    %c0_175 = arith.constant 0 : index
    %140 = vector.load %arg17[%c160, %c0_175] : memref<200x640xbf16, #tpu.memory_space<vmem>>, vector<8x640xbf16>
    tpu.vector_store %arg17[%c160, %c0_175], %139 {strides = array<i32>} : memref<200x640xbf16, #tpu.memory_space<vmem>>, vector<8x640xbf16>,
    %c0_176 = arith.constant 0 : index
    %c258 = arith.constant 258 : index
    %141 = vector.load %arg14[%c0_176, %c258] : memref<8x1024xbf16, #tpu.memory_space<vmem>>, vector<8x640xbf16>
    %c168 = arith.constant 168 : index
    %c0_177 = arith.constant 0 : index
    %142 = vector.load %arg17[%c168, %c0_177] : memref<200x640xbf16, #tpu.memory_space<vmem>>, vector<8x640xbf16>
    tpu.vector_store %arg17[%c168, %c0_177], %141 {strides = array<i32>} : memref<200x640xbf16, #tpu.memory_space<vmem>>, vector<8x640xbf16>,
    %c0_178 = arith.constant 0 : index
    %c260 = arith.constant 260 : index
    %143 = vector.load %arg14[%c0_178, %c260] : memref<8x1024xbf16, #tpu.memory_space<vmem>>, vector<8x640xbf16>
    %c176 = arith.constant 176 : index
    %c0_179 = arith.constant 0 : index
    %144 = vector.load %arg17[%c176, %c0_179] : memref<200x640xbf16, #tpu.memory_space<vmem>>, vector<8x640xbf16>
    tpu.vector_store %arg17[%c176, %c0_179], %143 {strides = array<i32>} : memref<200x640xbf16, #tpu.memory_space<vmem>>, vector<8x640xbf16>,
    %c0_180 = arith.constant 0 : index
    %c262 = arith.constant 262 : index
    %145 = vector.load %arg14[%c0_180, %c262] : memref<8x1024xbf16, #tpu.memory_space<vmem>>, vector<8x640xbf16>
    %c184 = arith.constant 184 : index
    %c0_181 = arith.constant 0 : index
    %146 = vector.load %arg17[%c184, %c0_181] : memref<200x640xbf16, #tpu.memory_space<vmem>>, vector<8x640xbf16>
    tpu.vector_store %arg17[%c184, %c0_181], %145 {strides = array<i32>} : memref<200x640xbf16, #tpu.memory_space<vmem>>, vector<8x640xbf16>,
    %c0_182 = arith.constant 0 : index
    %c264 = arith.constant 264 : index
    %147 = vector.load %arg14[%c0_182, %c264] : memref<8x1024xbf16, #tpu.memory_space<vmem>>, vector<8x640xbf16>
    %c192_183 = arith.constant 192 : index
    %c0_184 = arith.constant 0 : index
    %148 = vector.load %arg17[%c192_183, %c0_184] : memref<200x640xbf16, #tpu.memory_space<vmem>>, vector<8x640xbf16>
    tpu.vector_store %arg17[%c192_183, %c0_184], %147 {strides = array<i32>} : memref<200x640xbf16, #tpu.memory_space<vmem>>, vector<8x640xbf16>,
    %c0_185 = arith.constant 0 : index
    %c0_186 = arith.constant 0 : index
    %149 = vector.load %arg4[%c0_185, %c0_186] : memref<1x200xbf16, #tpu.memory_space<vmem>>, vector<1x200xbf16>
    %c0_187 = arith.constant 0 : index
    %c0_188 = arith.constant 0 : index
    %150 = vector.load %arg17[%c0_187, %c0_188] : memref<200x640xbf16, #tpu.memory_space<vmem>>, vector<200x640xbf16>
    %cst_189 = arith.constant dense<0.000000e+00> : vector<1x640xf32>
    %151 = tpu.matmul %149, %150, %cst_189 {dimension_numbers = #tpu.dot_dimension_numbers<[1], [0], [0], [1], [0, 0, 1, 1], [], []>} : vector<1x200xbf16>, vector<200x640xbf16>, vector<1x640xf32> -> vector<1x640xf32>
    %c0_190 = arith.constant 0 : index
    %c0_191 = arith.constant 0 : index
    %152 = vector.load %arg5[%c0_190, %c0_191] : memref<1x1xf32, #tpu.memory_space<vmem>>, vector<1x1xf32>
    %153 = vector.broadcast %152 : vector<1x1xf32> to vector<1x640xf32>
    %154 = arith.addf %151, %153 : vector<1x640xf32>
    %cst_192 = arith.constant 0.000000e+00 : f32
    %155 = vector.broadcast %cst_192 : f32 to vector<1x640xf32>
    %156 = arith.maximumf %154, %155 : vector<1x640xf32>
    %c0_193 = arith.constant 0 : index
    %c0_194 = arith.constant 0 : index
    %157 = vector.load %arg15[%c0_193, %c0_194] : memref<1x768xf32, #tpu.memory_space<vmem>>, vector<1x640xf32>
    tpu.vector_store %arg15[%c0_193, %c0_194], %156 {strides = array<i32>} : memref<1x768xf32, #tpu.memory_space<vmem>>, vector<1x640xf32>,
    %c0_195 = arith.constant 0 : index
    %c0_196 = arith.constant 0 : index
    %158 = vector.load %arg15[%c0_195, %c0_196] : memref<1x768xf32, #tpu.memory_space<vmem>>, vector<1x640xf32>
    %c0_197 = arith.constant 0 : index
    %c2_198 = arith.constant 2 : index
    %159 = vector.load %arg15[%c0_197, %c2_198] : memref<1x768xf32, #tpu.memory_space<vmem>>, vector<1x640xf32>
    %160 = arith.maximumf %158, %159 : vector<1x640xf32>
    %c0_199 = arith.constant 0 : index
    %c64_200 = arith.constant 64 : index
    %161 = vector.load %arg15[%c0_199, %c64_200] : memref<1x768xf32, #tpu.memory_space<vmem>>, vector<1x640xf32>
    %c0_201 = arith.constant 0 : index
    %c66_202 = arith.constant 66 : index
    %162 = vector.load %arg15[%c0_201, %c66_202] : memref<1x768xf32, #tpu.memory_space<vmem>>, vector<1x640xf32>
    %163 = arith.maximumf %161, %162 : vector<1x640xf32>
    %164 = arith.maximumf %160, %163 : vector<1x640xf32>
    %165 = arith.truncf %164 : vector<1x640xf32> to vector<1x640xbf16>
    %c0_203 = arith.constant 0 : index
    %c0_204 = arith.constant 0 : index
    %166 = vector.load %arg6[%c0_203, %c0_204] : memref<640x120xbf16, #tpu.memory_space<vmem>>, vector<640x120xbf16>
    %cst_205 = arith.constant dense<0.000000e+00> : vector<1x120xf32>
    %167 = tpu.matmul %165, %166, %cst_205 {dimension_numbers = #tpu.dot_dimension_numbers<[1], [0], [0], [1], [0, 0, 1, 1], [], []>} : vector<1x640xbf16>, vector<640x120xbf16>, vector<1x120xf32> -> vector<1x120xf32>
    %c0_206 = arith.constant 0 : index
    %c0_207 = arith.constant 0 : index
    %168 = vector.load %arg7[%c0_206, %c0_207] : memref<1x120xf32, #tpu.memory_space<vmem>>, vector<1x120xf32>
    %169 = arith.addf %167, %168 : vector<1x120xf32>
    %cst_208 = arith.constant 0.000000e+00 : f32
    %170 = vector.broadcast %cst_208 : f32 to vector<1x120xf32>
    %171 = arith.maximumf %169, %170 : vector<1x120xf32>
    %172 = arith.truncf %171 : vector<1x120xf32> to vector<1x120xbf16>
    %c0_209 = arith.constant 0 : index
    %c0_210 = arith.constant 0 : index
    %173 = vector.load %arg8[%c0_209, %c0_210] : memref<120x84xbf16, #tpu.memory_space<vmem>>, vector<120x84xbf16>
    %cst_211 = arith.constant dense<0.000000e+00> : vector<1x84xf32>
    %174 = tpu.matmul %172, %173, %cst_211 {dimension_numbers = #tpu.dot_dimension_numbers<[1], [0], [0], [1], [0, 0, 1, 1], [], []>} : vector<1x120xbf16>, vector<120x84xbf16>, vector<1x84xf32> -> vector<1x84xf32>
    %c0_212 = arith.constant 0 : index
    %c0_213 = arith.constant 0 : index
    %175 = vector.load %arg9[%c0_212, %c0_213] : memref<1x84xf32, #tpu.memory_space<vmem>>, vector<1x84xf32>
    %176 = arith.addf %174, %175 : vector<1x84xf32>
    %cst_214 = arith.constant 0.000000e+00 : f32
    %177 = vector.broadcast %cst_214 : f32 to vector<1x84xf32>
    %178 = arith.maximumf %176, %177 : vector<1x84xf32>
    %179 = arith.truncf %178 : vector<1x84xf32> to vector<1x84xbf16>
    %c0_215 = arith.constant 0 : index
    %c0_216 = arith.constant 0 : index
    %180 = vector.load %arg10[%c0_215, %c0_216] : memref<84x128xbf16, #tpu.memory_space<vmem>>, vector<84x128xbf16>
    %cst_217 = arith.constant dense<0.000000e+00> : vector<1x128xf32>
    %181 = tpu.matmul %179, %180, %cst_217 {dimension_numbers = #tpu.dot_dimension_numbers<[1], [0], [0], [1], [0, 0, 1, 1], [], []>} : vector<1x84xbf16>, vector<84x128xbf16>, vector<1x128xf32> -> vector<1x128xf32>
    %c0_218 = arith.constant 0 : index
    %c0_219 = arith.constant 0 : index
    %182 = vector.load %arg11[%c0_218, %c0_219] : memref<1x128xf32, #tpu.memory_space<vmem>>, vector<1x128xf32>
    %183 = arith.addf %181, %182 : vector<1x128xf32>
    %c0_220 = arith.constant 0 : index
    %c0_221 = arith.constant 0 : index
    %c0_222 = arith.constant 0 : index
    %184 = vector.load %arg12[%c0_220, %c0_221, %c0_222] : memref<1x1x128xf32, #tpu.memory_space<vmem>>, vector<1x1x128xf32>
    %185 = vector.shape_cast %184 : vector<1x1x128xf32> to vector<1x128xf32>
    %186 = vector.shape_cast %183 : vector<1x128xf32> to vector<1x1x128xf32>
    tpu.vector_store %arg12[%c0_220, %c0_221, %c0_222], %186 {strides = array<i32>} : memref<1x1x128xf32, #tpu.memory_space<vmem>>, vector<1x1x128xf32>,
    return
  }
  func.func @transform_0(%arg0: i32) -> (i32, i32, i32) {
    %c0_i32 = arith.constant 0 : i32
    %c0_i32_0 = arith.constant 0 : i32
    %c0_i32_1 = arith.constant 0 : i32
    return %arg0, %c0_i32, %c0_i32_0 : i32, i32, i32
  }
  func.func @transform_1(%arg0: i32) -> (i32, i32) {
    %c0_i32 = arith.constant 0 : i32
    %c0_i32_0 = arith.constant 0 : i32
    %c0_i32_1 = arith.constant 0 : i32
    return %c0_i32, %c0_i32_0 : i32, i32
  }
  func.func @transform_2(%arg0: i32) -> (i32, i32) {
    %c0_i32 = arith.constant 0 : i32
    %c0_i32_0 = arith.constant 0 : i32
    %c0_i32_1 = arith.constant 0 : i32
    return %c0_i32, %c0_i32_0 : i32, i32
  }
  func.func @transform_3(%arg0: i32) -> (i32, i32) {
    %c0_i32 = arith.constant 0 : i32
    %c0_i32_0 = arith.constant 0 : i32
    %c0_i32_1 = arith.constant 0 : i32
    return %c0_i32, %c0_i32_0 : i32, i32
  }
  func.func @transform_4(%arg0: i32) -> (i32, i32) {
    %c0_i32 = arith.constant 0 : i32
    %c0_i32_0 = arith.constant 0 : i32
    %c0_i32_1 = arith.constant 0 : i32
    return %c0_i32, %c0_i32_0 : i32, i32
  }
  func.func @transform_5(%arg0: i32) -> (i32, i32) {
    %c0_i32 = arith.constant 0 : i32
    %c0_i32_0 = arith.constant 0 : i32
    %c0_i32_1 = arith.constant 0 : i32
    return %c0_i32, %c0_i32_0 : i32, i32
  }
  func.func @transform_6(%arg0: i32) -> (i32, i32) {
    %c0_i32 = arith.constant 0 : i32
    %c0_i32_0 = arith.constant 0 : i32
    %c0_i32_1 = arith.constant 0 : i32
    return %c0_i32, %c0_i32_0 : i32, i32
  }
  func.func @transform_7(%arg0: i32) -> (i32, i32) {
    %c0_i32 = arith.constant 0 : i32
    %c0_i32_0 = arith.constant 0 : i32
    %c0_i32_1 = arith.constant 0 : i32
    return %c0_i32, %c0_i32_0 : i32, i32
  }
  func.func @transform_8(%arg0: i32) -> (i32, i32) {
    %c0_i32 = arith.constant 0 : i32
    %c0_i32_0 = arith.constant 0 : i32
    %c0_i32_1 = arith.constant 0 : i32
    return %c0_i32, %c0_i32_0 : i32, i32
  }
  func.func @transform_9(%arg0: i32) -> (i32, i32) {
    %c0_i32 = arith.constant 0 : i32
    %c0_i32_0 = arith.constant 0 : i32
    %c0_i32_1 = arith.constant 0 : i32
    return %c0_i32, %c0_i32_0 : i32, i32
  }
  func.func @transform_10(%arg0: i32) -> (i32, i32) {
    %c0_i32 = arith.constant 0 : i32
    %c0_i32_0 = arith.constant 0 : i32
    %c0_i32_1 = arith.constant 0 : i32
    return %c0_i32, %c0_i32_0 : i32, i32
  }
  func.func @transform_11(%arg0: i32) -> (i32, i32, i32) {
    %c0_i32 = arith.constant 0 : i32
    %c0_i32_0 = arith.constant 0 : i32
    %c0_i32_1 = arith.constant 0 : i32
    return %arg0, %c0_i32, %c0_i32_0 : i32, i32, i32
  }
}

</mosaic_0001>

<bundles_post_ra>
// kernel: net_forward.1
= control target key start
LH: loop header
LB: loop body
LE: loop exit
PB: predicated region body
PF: predicated region fallthrough
CT: control target
= control target key end

     0   :  { %s6844_s0 = inlined_call_operand.vmem [shape: bf16[2,4,1152], index: 0, kind: input, shape index: {}]   ;;  %s6845_s1 = inlined_call_operand.vmem [shape: bf16[8,100], index: 1, kind: input, shape index: {}]   ;;  %s6846_s2 = inlined_call_operand.vmem [shape: f32[8,1], index: 2, kind: input, shape index: {}]   ;;  %s6847_s3 = inlined_call_operand.vmem [shape: bf16[1,200], index: 3, kind: input, shape index: {}]   ;;  %s6848_s4 = inlined_call_operand.<no memory space> [shape: f32[1,1], index: 4, kind: input, shape index: {}]   ;;  %s6849_s5 = inlined_call_operand.vmem [shape: bf16[640,120], index: 5, kind: input, shape index: {}]   ;;  %s6850_s6 = inlined_call_operand.vmem [shape: f32[1,120], index: 6, kind: input, shape index: {}]   ;;  %s6851_s7 = inlined_call_operand.vmem [shape: bf16[120,84], index: 7, kind: input, shape index: {}]   ;;  %s6852_s8 = inlined_call_operand.vmem [shape: f32[1,84], index: 8, kind: input, shape index: {}]   ;;  %s6853_s9 = inlined_call_operand.vmem [shape: bf16[84,128], index: 9, kind: input, shape index: {}]   ;;  %s6854_s10 = inlined_call_operand.vmem [shape: f32[1,128], index: 10, kind: input, shape index: {}]   ;;  %s6855_s11 = inlined_call_operand.hbm [shape: f32[2,1,128], index: 11, kind: output, shape index: {}]  }
   0x1   :  { %6903 = sst [smem:[#allocation11_spill]] %s6844_s0  ;;  %v16_v0 = vstv %s6848_s4 }
   0x2   :  { %17 = vst [vmem:[#allocation7] sm:$0x1] %v16_v0 }
   0x3   :  { %18 = vsyncpa [#allocation9], 0 }
   0x4   :  { %20 = vsyncpa [#allocation9 + $0x1], 0  ;;  %s5296_s19 = smov 0   ;;  %s5298_s20 = smov 0  }
   0x5   :  { %s5300_s21 = smov 0   ;;  %s5302_s22 = smov 0  }
   0x6 LB: > { %s5317_s4 = sadd.s32 4294967295, %s5202_s22   ;;  %s4534_s23 = sadd.s32 4294967294, %s5202_s22   ;;  %s5202_s22 = sphi %s5302_s22, %s6953_s22   ;;  %s5198_s21 = sphi %s5300_s21, %s6952_s21   ;;  %s5194_s20 = sphi %s5298_s20, %s6951_s20   ;;  %s5190_s19 = sphi %s5296_s19, %s6950_s19  }
   0x7   : > { %s5321_s24 = sadd.s32 1, %s5202_s22   ;;  %s269_s25 = sadd.s32 1, %s5198_s21 }
   0x8   : > { %s266_s26 = ssub.s32 %s5202_s22, %s5321_s24  ;;  %p279_p0 = scmp.ne.s32.totalorder %s5198_s21, %s5194_s20 }
   0x9   : > { %p267_p1 = scmp.eq.s32.totalorder %s266_s26, 0  ;;  %p280_p2 = scmp.eq.s32.totalorder %s5317_s4, 1 }
   0xa   : > { %p285_p3 = scmp.ne.s32.totalorder %s5194_s20, %s5190_s19  ;;  %p286_p4 = scmp.eq.s32.totalorder %s4534_s23, 1 }
   0xb   : > { %s5332_s27 = scalar_select %p267_p1, %s5198_s21, %s269_s25  }
   0xc   : > { %p5334_p5 = por %p280_p2, %p279_p0  ;;  %p5338_p6 = por %p286_p4, %p285_p3 }
   0xd   : > { %p4537_p7 = scmp.ge.s32.totalorder %s5202_s22, 1  ;;  %p342_p8 = scmp.lt.s32.totalorder %s5202_s22, 3 }
   0xf   : > { %p343_p9 = pnand %p4537_p7, %p342_p8 }
  0x10   : > { %p381_p10 = scmp.lt.s32.totalorder (!%p343_p9), %s5317_s4, 1  ;;  %v6898_v1 = vlaneseq (!%p343_p9)  ;;  %v5204_v2 = vmov (!%p343_p9), 1983009808   ;;  %s6906_s0 = sld [smem:[#allocation11_spill]] (!%p343_p9)  ;;  %v5224_v26 = vmov (!%p343_p9), 0   ;;  %vm482_vm0 = vcmask (!%p343_p9), 1043456  }
  0x11   : > { %346 = sbr.rel (%p343_p9) target bundleno = 2253 (0x8cd), region = 64  ;;  %v442_v3 = vunpack.c.l.s4 (!%p343_p9), %v5204_v2  ;;  %s6890_s16 = smov (!%p343_p9), 126   ;;  %2252 = vmatprep.mubr.bf16.mxu0 (!%p343_p9), %v5224_v26  ;;  %388 = vst [vmem:[#allocation3 + $0x1c] sm:$0xf] (!%p343_p9), %v5224_v26  ;;  %2293 = vmatprep.mubr.bf16.mxu1 (!%p343_p9), %v5224_v26  ;;  %vm546_vm1 = vcmask (!%p343_p9), 1031168   ;;  %vm484_vm2 = vcmask (!%p343_p9), 1039360  }
  0x12   : > { %v5347_v4 = vshrl.u32 (!%p343_p9), %v6898_v1, 7  ;;  %s6882_s17 = smov (!%p343_p9), 127   ;;  %s6888_s18 = smov (!%p343_p9), 125   ;;  %4960 = vset.pattern.permute.xlu0 (!%p343_p9), %v5224_v26  ;;  %4996 = vset.pattern.permute.xlu1 (!%p343_p9), %v5224_v26  ;;  %vm670_vm3 = vcmask (!%p343_p9), 1014784   ;;  %vm6897_vm4 = vcmask (!%p343_p9), 1022976   ;;  %vm732_vm5 = vcmask (!%p343_p9), 785408  }
  0x13   : > { %v443_v5 = vunpack.c.0.s8 (!%p343_p9), %v442_v3  ;;  %s6886_s23 = smov (!%p343_p9), 124   ;;  %s6856_s25 = smov (!%p343_p9), 96   ;;  %vm794_vm6 = vcmask (!%p343_p9), 777216   ;;  %vm856_vm7 = vcmask (!%p343_p9), 769024   ;;  %vm918_vm8 = vcmask (!%p343_p9), 760832  }
  0x14   : > { %s5210_s26 = smov (!%p343_p9), 95   ;;  %s6862_s13 = smov (!%p343_p9), 92   ;;  %vm980_vm9 = vcmask (!%p343_p9), 752640   ;;  %vm1042_vm10 = vcmask (!%p343_p9), 523264   ;;  %vm1104_vm11 = vcmask (!%p343_p9), 515072   ;;  %vm1166_vm12 = vcmask (!%p343_p9), 506880  }
  0x15   : > { %v5350_v6 = vsub.s32 (!%p343_p9), %v443_v5, %v5347_v4  ;;  %s6864_s14 = smov (!%p343_p9), 64   ;;  %vm1228_vm13 = vcmask (!%p343_p9), 498688   ;;  %vm6892_vm14 = vcmask (!%p343_p9), 490496   ;;  %vm6893_vm15 = vcmask (!%p343_p9), 261120  }
  0x18   : > { %s382_s30 = scalar_select %p381_p10, %s5317_s4, 1 }
  0x1a   : > { %s4892_s12 = smul.u32 18, %s382_s30  ;;  %s6858_s30 = smov 94  }
  0x1c   : > { %s5355_s15 = scalar_lea.vmem %s6906_s0, %s4892_s12  ;;  %s6860_s12 = smov 93  }
  0x1d   : > { %v499_v7 = vld [vmem:[%s5355_s15] sm:$0xff]  ;;  %v500_v19 = vld [vmem:[%s5355_s15 + $0x8] sm:$0xff]  ;;  %s6923_s0 = smov 125  }
  0x1e   : > { %v5359_v8 = vld [vmem:[%s5355_s15 + $0x2] sm:$0xff]  ;;  %v510_v9 = vrot.slane %v499_v7, %v5350_v6  ;;  %4539 = vst.sshfl [vmem:[#allocation5] sm:$0xf pattern:$0x76325410] %v499_v7  ;;  %v5364_v10 = vcombine.high %v499_v7, %v499_v7  ;;  %v440_v11 = vcombine.low %v499_v7, %v499_v7  ;;  %v455_v20 = vcombine.low %v500_v19, %v500_v19 }
  0x1f   : > { %4543 = vst.sshfl [vmem:[#allocation5 + $0x118] sm:$0xf pattern:$0x76325410] %v5359_v8  ;;  %v1661_v14 = vcombine.low %v5359_v8, %v5359_v8  ;;  %v1675_v15 = vrot.slane %v5359_v8, %v5350_v6  ;;  %v5413_v17 = vcombine.high %v5359_v8, %v5359_v8  ;;  %v5426_v21 = vrot.slane %v500_v19, %v5350_v6  ;;  %v395_v23 = vld [vmem:[%s5355_s15 + $0x8] sm:$0x3f] }
  0x20   : > { %533 = vrot.lane.b32.xlu1 %v510_v9, %s6890_s16  ;;  %472 = vrot.lane.b32.xlu0 %v510_v9, %s6882_s17  ;;  %v517_v12 = vrot.slane %v5364_v10, %v5350_v6  ;;  %v447_v13 = vrot.slane %v440_v11, %v5350_v6  ;;  %4540 = vst.sshfl [vmem:[#allocation5 + $0x8] sm:$0xf pattern:$0x76325410] %v5364_v10 }
  0x21   : > { %v1668_v16 = vrot.slane %v1661_v14, %v5350_v6  ;;  %v1736_v18 = vrot.slane %v5413_v17, %v5350_v6  ;;  %v5429_v22 = vrot.slane %v455_v20, %v5350_v6  ;;  %v413_v24 = vcombine.high %v395_v23, %v395_v23  ;;  %4541 = vst.sshfl [vmem:[#allocation5 + $0x10] sm:$0xf pattern:$0x76325410] %v395_v23 }
  0x22   : > { %v518_v25 = vcombine.high %v500_v19, %v500_v19  ;;  %4544 = vst.sshfl [vmem:[#allocation5 + $0x120] sm:$0xf pattern:$0x76325410] %v5413_v17 }
  0x23   : > { %4542 = vst.sshfl [vmem:[#allocation5 + $0x18] sm:$0x3 pattern:$0x76325410] %v413_v24 }
  0x24   : > { %597 = vrot.lane.b32.xlu1 %v510_v9, %s6888_s18  ;;  %657 = vrot.lane.b32.xlu0 %v510_v9, %s6886_s23  ;;  %v5456_v27 = vrot.slane %v518_v25, %v5350_v6  ;;  %v5565_v25 = vld [vmem:[%s5355_s15 + $0xa] sm:$0xff] }
  0x25   : > { %v5591_v17 = vrot.slane %v5565_v25, %v5350_v6 }
  0x28   : > { %535 = vrot.lane.b32.xlu1 %v517_v12, %s6890_s16  ;;  %470 = vrot.lane.b32.xlu0 %v447_v13, %s6882_s17 }
  0x2c   : > { %659 = vrot.lane.b32.xlu1 %v517_v12, %s6886_s23  ;;  %595 = vrot.lane.b32.xlu0 %v447_v13, %s6888_s18 }
  0x30   : > { %721 = vrot.lane.b32.xlu1 %v510_v9, %s6856_s25  ;;  %719 = vrot.lane.b32.xlu0 %v447_v13, %s6856_s25  ;;  %s6866_s25 = smov 63  }
  0x34   : > { %783 = vrot.lane.b32.xlu1 %v517_v12, %s5210_s26  ;;  %781 = vrot.lane.b32.xlu0 %v510_v9, %s5210_s26 }
  0x38   : > { %845 = vrot.lane.b32.xlu1 %v510_v9, %s6858_s30  ;;  %843 = vrot.lane.b32.xlu0 %v447_v13, %s6858_s30  ;;  %s6868_s30 = smov 62  }
  0x3c   : > { %907 = vrot.lane.b32.xlu1 %v517_v12, %s6860_s12  ;;  %905 = vrot.lane.b32.xlu0 %v510_v9, %s6860_s12  ;;  %s6870_s12 = smov 61  }
  0x40   : > { %969 = vrot.lane.b32.xlu1 %v510_v9, %s6862_s13  ;;  %967 = vrot.lane.b32.xlu0 %v447_v13, %s6862_s13  ;;  %s6872_s13 = smov 60  }
  0x44   : > { %1031 = vrot.lane.b32.xlu1 %v517_v12, %s6864_s14  ;;  %1029 = vrot.lane.b32.xlu0 %v510_v9, %s6864_s14  ;;  %s6884_s14 = smov 32  }
  0x48   : > { %1093 = vrot.lane.b32.xlu1 %v510_v9, %s6866_s25  ;;  %1091 = vrot.lane.b32.xlu0 %v447_v13, %s6866_s25  ;;  %s6878_s25 = smov 31  }
  0x4c   : > { %1155 = vrot.lane.b32.xlu1 %v517_v12, %s6868_s30  ;;  %1153 = vrot.lane.b32.xlu0 %v510_v9, %s6868_s30  ;;  %s6880_s30 = smov 30  }
  0x50   : > { %1217 = vrot.lane.b32.xlu1 %v510_v9, %s6870_s12  ;;  %1215 = vrot.lane.b32.xlu0 %v447_v13, %s6870_s12  ;;  %s6874_s12 = smov 29  }
  0x54   : > { %1279 = vrot.lane.b32.xlu1 %v517_v12, %s6872_s13  ;;  %1277 = vrot.lane.b32.xlu0 %v510_v9, %s6872_s13  ;;  %s6876_s13 = smov 28  }
  0x58   : > { %1341 = vrot.lane.b32.xlu1 %v510_v9, %s6884_s14  ;;  %1339 = vrot.lane.b32.xlu0 %v447_v13, %s6884_s14  ;;  %s6912_s14 = smov 64  }
  0x5c   : > { %1403 = vrot.lane.b32.xlu1 %v517_v12, %s6878_s25  ;;  %1401 = vrot.lane.b32.xlu0 %v510_v9, %s6878_s25  ;;  %s6909_s25 = smov 92  }
  0x60   : > { %1465 = vrot.lane.b32.xlu1 %v510_v9, %s6880_s30  ;;  %1463 = vrot.lane.b32.xlu0 %v447_v13, %s6880_s30  ;;  %s6910_s30 = smov 93  }
  0x64   : > { %1527 = vrot.lane.b32.xlu1 %v517_v12, %s6874_s12  ;;  %1525 = vrot.lane.b32.xlu0 %v510_v9, %s6874_s12  ;;  %s6907_s12 = smov 96  }
  0x68   : > { %1589 = vrot.lane.b32.xlu1 %v510_v9, %s6876_s13  ;;  %1587 = vrot.lane.b32.xlu0 %v447_v13, %s6876_s13  ;;  %s6908_s13 = smov 94  }
  0x6c   : > { %1693 = vrot.lane.b32.xlu1 %v1675_v15, %s6882_s17  ;;  %1691 = vrot.lane.b32.xlu0 %v1668_v16, %s6882_s17 }
  0x70   : > { %1754 = vrot.lane.b32.xlu1 %v1736_v18, %s6890_s16  ;;  %1752 = vrot.lane.b32.xlu0 %v1675_v15, %s6890_s16 }
  0x74   : > { %1815 = vrot.lane.b32.xlu1 %v1675_v15, %s6888_s18  ;;  %1813 = vrot.lane.b32.xlu0 %v1668_v16, %s6888_s18 }
  0x78   : > { %537 = vrot.lane.b32.xlu1 %v5426_v21, %s6890_s16  ;;  %474 = vrot.lane.b32.xlu0 %v5429_v22, %s6882_s17 }
  0x7c   : > { %1874 = vrot.lane.b32.xlu1 %v1675_v15, %s6886_s23  ;;  %599 = vrot.lane.b32.xlu0 %v5429_v22, %s6888_s18 }
  0x80   : > { %661 = vrot.lane.b32.xlu1 %v5426_v21, %s6886_s23  ;;  %1876 = vrot.lane.b32.xlu0 %v1736_v18, %s6886_s23 }
  0x84   : > { %785 = vrot.lane.b32.xlu1 %v5426_v21, %s5210_s26  ;;  %723 = vrot.lane.b32.xlu0 %v5429_v22, %s6907_s12 }
  0x88   : > { %476 = vrot.lane.b32.xlu1 %v5426_v21, %s6882_s17  ;;  %847 = vrot.lane.b32.xlu0 %v5429_v22, %s6908_s13  ;;  %s6911_s17 = smov 63  }
  0x8c   : > { %601 = vrot.lane.b32.xlu1 %v5426_v21, %s6888_s18  ;;  %539 = vrot.lane.b32.xlu0 %v5456_v27, %s6890_s16  ;;  %s6916_s18 = smov 60   ;;  %s6920_s16 = smov 29  }
  0x90   : > { %971 = vrot.lane.b32.xlu1 %v5429_v22, %s6909_s25  ;;  %909 = vrot.lane.b32.xlu0 %v5426_v21, %s6910_s30 }
  0x92   : > { %v534_v28 = vpop.permute.xlu1 %533  ;;  %v5466_v29 = vpop.permute.xlu0 %472 }
  0x93   : > { %v541_v34 = vrot.slane %v534_v28, 4  ;;  %v479_v35 = vrot.slane %v5466_v29, 4 }
  0x94   : > { %1095 = vrot.lane.b32.xlu1 %v5429_v22, %s6911_s17  ;;  %1033 = vrot.lane.b32.xlu0 %v5426_v21, %s6912_s14 }
  0x96   : > { %v5472_v30 = vpop.permute.xlu1 %597  ;;  %v658_v31 = vpop.permute.xlu0 %657 }
  0x97   : > { %v604_v44 = vrot.slane %v5472_v30, 4  ;;  %v665_v45 = vrot.slane %v658_v31, 4 }
  0x98   : > { %725 = vrot.lane.b32.xlu1 %v5426_v21, %s6907_s12  ;;  %663 = vrot.lane.b32.xlu0 %v5456_v27, %s6886_s23  ;;  %s6915_s23 = smov 32  }
  0x9a   : > { %v5478_v32 = vpop.permute.xlu1 %535  ;;  %v471_v33 = vpop.permute.xlu0 %470 }
  0x9b   : > { %v542_v36 = vrot.slane %v5478_v32, 4  ;;  %v478_v37 = vrot.slane %v471_v33, 4 }
  0x9c   : > { %849 = vrot.lane.b32.xlu1 %v5426_v21, %s6908_s13  ;;  %787 = vrot.lane.b32.xlu0 %v5456_v27, %s5210_s26  ;;  %s6913_s26 = smov 61   ;;  %s6914_s13 = smov 62  }
  0x9d   : > { %v545_v38 = vsel %vm482_vm0, %v541_v34, %v542_v36  ;;  %v483_v39 = vsel %vm482_vm0, %v478_v37, %v479_v35 }
  0x9e   : > { %v547_v40 = vsel %vm546_vm1, %v534_v28, %v545_v38  ;;  %v485_v41 = vsel %vm484_vm2, %v471_v33, %v483_v39  ;;  %v5494_v42 = vpop.permute.xlu1 %659  ;;  %v596_v43 = vpop.permute.xlu0 %595  ;;  %v1676_v39 = vcombine.low %v5565_v25, %v5565_v25 }
  0x9f   : > { %557 = vst [vmem:[#allocation5 + $0x1c] sm:$0x33] %v547_v40  ;;  %495 = vst [vmem:[#allocation5] sm:$0xcc] %v485_v41  ;;  %v666_v46 = vrot.slane %v5494_v42, 4  ;;  %v603_v47 = vrot.slane %v596_v43, 4 }
  0xa0   : > { %1219 = vrot.lane.b32.xlu1 %v5429_v22, %s6913_s26  ;;  %1157 = vrot.lane.b32.xlu0 %v5426_v21, %s6914_s13 }
  0xa1   : > { %v669_v48 = vsel %vm482_vm0, %v665_v45, %v666_v46  ;;  %v607_v49 = vsel %vm482_vm0, %v603_v47, %v604_v44 }
  0xa2   : > { %v671_v50 = vsel %vm670_vm3, %v658_v31, %v669_v48  ;;  %v609_v51 = vsel %vm6897_vm4, %v596_v43, %v607_v49  ;;  %v5510_v52 = vpop.permute.xlu1 %721  ;;  %v720_v53 = vpop.permute.xlu0 %719  ;;  %v1683_v49 = vrot.slane %v1676_v39, %v5350_v6 }
  0xa3   : > { %681 = vst [vmem:[#allocation5 + $0x38] sm:$0x33] %v671_v50  ;;  %619 = vst [vmem:[#allocation5 + $0x1c] sm:$0xcc] %v609_v51  ;;  %v728_v54 = vrot.slane %v5510_v52, 4  ;;  %v727_v55 = vrot.slane %v720_v53, 4 }
  0xa4   : > { %1343 = vrot.lane.b32.xlu1 %v5429_v22, %s6915_s23  ;;  %1281 = vrot.lane.b32.xlu0 %v5426_v21, %s6916_s18 }
  0xa5   : > { %v731_v56 = vsel %vm482_vm0, %v727_v55, %v728_v54 }
  0xa6   : > { %v733_v57 = vsel %vm732_vm5, %v720_v53, %v731_v56  ;;  %v5521_v58 = vpop.permute.xlu1 %783  ;;  %v782_v59 = vpop.permute.xlu0 %781 }
  0xa7   : > { %743 = vst [vmem:[#allocation5 + $0x38] sm:$0xcc] %v733_v57  ;;  %v790_v60 = vrot.slane %v5521_v58, 4  ;;  %v789_v61 = vrot.slane %v782_v59, 4 }
  0xa8   : > { %973 = vrot.lane.b32.xlu1 %v5426_v21, %s6909_s25  ;;  %911 = vrot.lane.b32.xlu0 %v5456_v27, %s6910_s30  ;;  %s6918_s25 = smov 31   ;;  %s6919_s30 = smov 28  }
  0xa9   : > { %v793_v62 = vsel %vm482_vm0, %v789_v61, %v790_v60 }
  0xaa   : > { %v795_v63 = vsel %vm794_vm6, %v782_v59, %v793_v62  ;;  %v5532_v0 = vpop.permute.xlu1 %845  ;;  %v844_v2 = vpop.permute.xlu0 %843  ;;  %v5003_v3 = vld [vmem:[#allocation5 + $0x4] ss:$28 sps:$4 sm:$0xff]  }
  0xab   : > { %v5005_v5 = vld [vmem:[#allocation5] ss:$28 sps:$4 sm:$0xff]   ;;  %805 = vst [vmem:[#allocation5 + $0x54] sm:$0x33] %v795_v63  ;;  %v852_v7 = vrot.slane %v5532_v0, 4  ;;  %v851_v8 = vrot.slane %v844_v2, 4  ;;  %2220 = vmatprep.subr.bf16.mxu0 %v5003_v3 }
  0xac   : > { %1097 = vrot.lane.b32.xlu1 %v5426_v21, %s6911_s17  ;;  %1035 = vrot.lane.b32.xlu0 %v5456_v27, %s6912_s14  ;;  %s6917_s17 = smov 30  }
  0xad   : > { %v855_v9 = vsel %vm482_vm0, %v851_v8, %v852_v7  ;;  %2221 = vmatpush1.bf16.msra.mxu0 %v5005_v5  ;;  %v1616_v5 = vld [vmem:[%s5355_s15 + $0xa] sm:$0x3f]  ;;  %s6924_s15 = smov 124  }
  0xae   : > { %v857_v10 = vsel %vm856_vm7, %v844_v2, %v855_v9  ;;  %v5543_v11 = vpop.permute.xlu1 %907  ;;  %v906_v12 = vpop.permute.xlu0 %905  ;;  %v1634_v9 = vcombine.high %v1616_v5, %v1616_v5  ;;  %4545 = vst.sshfl [vmem:[#allocation5 + $0x128] sm:$0xf pattern:$0x76325410] %v1616_v5 }
  0xaf   : > { %867 = vst [vmem:[#allocation5 + $0x54] sm:$0xcc] %v857_v10  ;;  %v914_v13 = vrot.slane %v5543_v11, 4  ;;  %v913_v14 = vrot.slane %v906_v12, 4 }
  0xb0   : > { %1467 = vrot.lane.b32.xlu1 %v5429_v22, %s6917_s17  ;;  %1405 = vrot.lane.b32.xlu0 %v5426_v21, %s6918_s25  ;;  %4546 = vst.sshfl [vmem:[#allocation5 + $0x130] sm:$0x3 pattern:$0x76325410] %v1634_v9 }
  0xb1   : > { %v917_v15 = vsel %vm482_vm0, %v913_v14, %v914_v13 }
  0xb2   : > { %v919_v16 = vsel %vm918_vm8, %v906_v12, %v917_v15  ;;  %v5554_v18 = vpop.permute.xlu1 %969  ;;  %v968_v19 = vpop.permute.xlu0 %967 }
  0xb3   : > { %929 = vst [vmem:[#allocation5 + $0x70] sm:$0x33] %v919_v16  ;;  %v976_v20 = vrot.slane %v5554_v18, 4  ;;  %v975_v23 = vrot.slane %v968_v19, 4 }
  0xb4   : > { %1591 = vrot.lane.b32.xlu1 %v5429_v22, %s6919_s30  ;;  %1529 = vrot.lane.b32.xlu0 %v5426_v21, %s6920_s16 }
  0xb5   : > { %v979_v24 = vsel %vm482_vm0, %v975_v23, %v976_v20 }
  0xb6   : > { %v981_v28 = vsel %vm980_vm9, %v968_v19, %v979_v24  ;;  %v5568_v31 = vpop.permute.xlu1 %1031  ;;  %v1030_v33 = vpop.permute.xlu0 %1029  ;;  %v5006_v34 = vld [vmem:[#allocation5 + $0x3c] ss:$28 sps:$4 sm:$0xff]   ;;  %v1737_v24 = vcombine.high %v5565_v25, %v5565_v25 }
  0xb7   : > { %v5008_v37 = vld [vmem:[#allocation5 + $0x38] ss:$28 sps:$4 sm:$0xff]   ;;  %991 = vst [vmem:[#allocation5 + $0x70] sm:$0xcc] %v981_v28  ;;  %v1038_v38 = vrot.slane %v5568_v31, 4  ;;  %v1037_v22 = vrot.slane %v1030_v33, 4  ;;  %2222 = vmatprep.subr.bf16.mxu0 %v5006_v34 }
  0xb8   : > { %1221 = vrot.lane.b32.xlu1 %v5426_v21, %s6913_s26  ;;  %1159 = vrot.lane.b32.xlu0 %v5456_v27, %s6914_s13  ;;  %s6922_s26 = smov 127   ;;  %v1751_v25 = vrot.slane %v1737_v24, %v5350_v6 }
  0xb9   : > { %v1041_v40 = vsel %vm482_vm0, %v1037_v22, %v1038_v38  ;;  %2223 = vmatpush1.bf16.msra.mxu0 %v5008_v37 }
  0xba   : > { %v1043_v41 = vsel %vm1042_vm10, %v1030_v33, %v1041_v40  ;;  %v5582_v43 = vpop.permute.xlu1 %1093  ;;  %v1092_v45 = vpop.permute.xlu0 %1091 }
  0xbb   : > { %1053 = vst [vmem:[#allocation5 + $0x8c] sm:$0x33] %v1043_v41  ;;  %v1100_v47 = vrot.slane %v5582_v43, 4  ;;  %v1099_v48 = vrot.slane %v1092_v45, 4 }
  0xbc   : > { %1345 = vrot.lane.b32.xlu1 %v5426_v21, %s6915_s23  ;;  %1283 = vrot.lane.b32.xlu0 %v5456_v27, %s6916_s18  ;;  %s6921_s23 = smov 126  }
  0xbd   : > { %v1103_v50 = vsel %vm482_vm0, %v1099_v48, %v1100_v47 }
  0xbe   : > { %v1105_v51 = vsel %vm1104_vm11, %v1092_v45, %v1103_v50  ;;  %v5598_v53 = vpop.permute.xlu1 %1155  ;;  %v1154_v55 = vpop.permute.xlu0 %1153 }
  0xbf   : > { %1115 = vst [vmem:[#allocation5 + $0x8c] sm:$0xcc] %v1105_v51  ;;  %v1162_v56 = vrot.slane %v5598_v53, 4  ;;  %v1161_v57 = vrot.slane %v1154_v55, 4 }
  0xc0   : > { %1756 = vrot.lane.b32.xlu1 %v5591_v17, %s6921_s23  ;;  %1695 = vrot.lane.b32.xlu0 %v1683_v49, %s6922_s26 }
  0xc1   : > { %v1165_v59 = vsel %vm482_vm0, %v1161_v57, %v1162_v56 }
  0xc2   : > { %v1167_v61 = vsel %vm1166_vm12, %v1154_v55, %v1165_v59  ;;  %v5608_v62 = vpop.permute.xlu1 %1217  ;;  %v1216_v63 = vpop.permute.xlu0 %1215 }
  0xc3   : > { %1177 = vst [vmem:[#allocation5 + $0xa8] sm:$0x33] %v1167_v61  ;;  %v1224_v2 = vrot.slane %v5608_v62, 4  ;;  %v1223_v3 = vrot.slane %v1216_v63, 4 }
  0xc4   : > { %1407 = vrot.lane.b32.xlu1 %v5456_v27, %s6918_s25  ;;  %1817 = vrot.lane.b32.xlu0 %v1683_v49, %s6923_s0 }
  0xc5   : > { %v1227_v8 = vsel %vm482_vm0, %v1223_v3, %v1224_v2 }
  0xc6   : > { %v1229_v10 = vsel %vm1228_vm13, %v1216_v63, %v1227_v8  ;;  %v5619_v12 = vpop.permute.xlu1 %1279  ;;  %v1278_v14 = vpop.permute.xlu0 %1277  ;;  %v5010_v15 = vld [vmem:[#allocation5 + $0x74] ss:$28 sps:$4 sm:$0xff]  }
  0xc7   : > { %v5012_v16 = vld [vmem:[#allocation5 + $0x70] ss:$28 sps:$4 sm:$0xff]   ;;  %1239 = vst [vmem:[#allocation5 + $0xa8] sm:$0xcc] %v1229_v10  ;;  %v1286_v19 = vrot.slane %v5619_v12, 4  ;;  %v1285_v23 = vrot.slane %v1278_v14, 4  ;;  %2224 = vmatprep.subr.bf16.mxu0 %v5010_v15 }
  0xc8   : > { %1531 = vrot.lane.b32.xlu1 %v5456_v27, %s6920_s16  ;;  %1469 = vrot.lane.b32.xlu0 %v5426_v21, %s6917_s17  ;;  %s5230_s16 = smov 56   ;;  %s379_s17 = sand.u32 1, %s5194_s20  }
  0xc9   : > { %v1289_v28 = vsel %vm482_vm0, %v1285_v23, %v1286_v19  ;;  %2225 = vmatpush1.bf16.msra.mxu0 %v5012_v16 }
  0xca   : > { %v1291_v33 = vsel %vm6892_vm14, %v1278_v14, %v1289_v28  ;;  %v5632_v34 = vpop.permute.xlu1 %1341  ;;  %v1340_v37 = vpop.permute.xlu0 %1339  ;;  %vm6894_vm14 = vcmask 252928  }
  0xcb   : > { %1301 = vst [vmem:[#allocation5 + $0xc4] sm:$0x33] %v1291_v33  ;;  %v1348_v27 = vrot.slane %v5632_v34, 4  ;;  %v1347_v22 = vrot.slane %v1340_v37, 4 }
  0xcc   : > { %1878 = vrot.lane.b32.xlu1 %v5591_v17, %s6924_s15  ;;  %1593 = vrot.lane.b32.xlu0 %v5426_v21, %s6919_s30  ;;  %s5228_s30 = smov 120  }
  0xcd   : > { %v1351_v39 = vsel %vm482_vm0, %v1347_v22, %v1348_v27 }
  0xce   : > { %v1353_v40 = vsel %vm6893_vm15, %v1340_v37, %v1351_v39  ;;  %v5644_v41 = vpop.permute.xlu1 %1403  ;;  %v1402_v45 = vpop.permute.xlu0 %1401  ;;  %vm6895_vm15 = vcmask 244736  }
  0xcf   : > { %1363 = vst [vmem:[#allocation5 + $0xc4] sm:$0xcc] %v1353_v40  ;;  %v1410_v48 = vrot.slane %v5644_v41, 4  ;;  %v1409_v49 = vrot.slane %v1402_v45, 4 }
  0xd0   : > { %1758 = vrot.lane.b32.xlu1 %v1751_v25, %s6921_s23  ;;  %1697 = vrot.lane.b32.xlu0 %v5591_v17, %s6922_s26 }
  0xd1   : > { %v1413_v6 = vsel %vm482_vm0, %v1409_v49, %v1410_v48 }
  0xd2   : > { %v1415_v21 = vsel %vm6894_vm14, %v1402_v45, %v1413_v6  ;;  %v5654_v50 = vpop.permute.xlu1 %1465  ;;  %v1464_v51 = vpop.permute.xlu0 %1463  ;;  %vm6896_vm14 = vcmask 236544  }
  0xd3   : > { %1425 = vst [vmem:[#allocation5 + $0xe0] sm:$0x33] %v1415_v21  ;;  %v1472_v55 = vrot.slane %v5654_v50, 4  ;;  %v1471_v57 = vrot.slane %v1464_v51, 4 }
  0xd4   : > { %1880 = vrot.lane.b32.xlu1 %v1751_v25, %s6924_s15  ;;  %1819 = vrot.lane.b32.xlu0 %v5591_v17, %s6923_s0  ;;  %v1954_v17 = vld [vmem:[%s6846_s2] sm:$0xff] }
  0xd5   : > { %v1475_v59 = vsel %vm482_vm0, %v1471_v57, %v1472_v55 }
  0xd6   : > { %v1477_v61 = vsel %vm6895_vm15, %v1464_v51, %v1475_v59  ;;  %v5664_v63 = vpop.permute.xlu1 %1527  ;;  %v1526_v3 = vpop.permute.xlu0 %1525  ;;  %v5014_v5 = vld [vmem:[#allocation5 + $0xac] ss:$28 sps:$4 sm:$0xff]   ;;  %vm1600_vm15 = vcmask 228352  }
  0xd7   : > { %v5016_v8 = vld [vmem:[#allocation5 + $0xa8] ss:$28 sps:$4 sm:$0xff]   ;;  %1487 = vst [vmem:[#allocation5 + $0xe0] sm:$0xcc] %v1477_v61  ;;  %v1534_v9 = vrot.slane %v5664_v63, 4  ;;  %v1533_v10 = vrot.slane %v1526_v3, 4  ;;  %2226 = vmatprep.subr.bf16.mxu0 %v5014_v5 }
  0xd8   : > { %1957 = vperm.xlu0 %4960, %v1954_v17   ;;  %2227 = vmatpush1.bf16.msra.mxu0 %v5016_v8 }
  0xd9   : > { %v1537_v14 = vsel %vm482_vm0, %v1533_v10, %v1534_v9 }
  0xda   : > { %v1539_v15 = vsel %vm6896_vm14, %v1526_v3, %v1537_v14  ;;  %v5674_v16 = vpop.permute.xlu1 %1589  ;;  %v1588_v23 = vpop.permute.xlu0 %1587  ;;  %vm2198_vm14 = vcmask 1041408  }
  0xdb   : > { %1549 = vst [vmem:[#allocation5 + $0xfc] sm:$0x33] %v1539_v15  ;;  %v1596_v24 = vrot.slane %v5674_v16, 4  ;;  %v1595_v28 = vrot.slane %v1588_v23, 4 }
  0xdd   : > { %v1599_v33 = vsel %vm482_vm0, %v1595_v28, %v1596_v24 }
  0xde   : > { %v1601_v37 = vsel %vm1600_vm15, %v1588_v23, %v1599_v33  ;;  %v5681_v22 = vpop.permute.xlu1 %1693  ;;  %v1692_v25 = vpop.permute.xlu0 %1691 }
  0xdf   : > { %1611 = vst [vmem:[#allocation5 + $0xfc] sm:$0xcc] %v1601_v37  ;;  %v1700_v39 = vrot.slane %v5681_v22, 4  ;;  %v1699_v40 = vrot.slane %v1692_v25, 4 }
  0xe1   : > { %v1703_v45 = vsel %vm482_vm0, %v1699_v40, %v1700_v39 }
  0xe2   : > { %v1704_v49 = vsel %vm484_vm2, %v1692_v25, %v1703_v45  ;;  %v5688_v6 = vpop.permute.xlu1 %1754  ;;  %v1753_v21 = vpop.permute.xlu0 %1752 }
  0xe3   : > { %1714 = vst [vmem:[#allocation5 + $0x118] sm:$0xcc] %v1704_v49  ;;  %v1761_v51 = vrot.slane %v5688_v6, 4  ;;  %v1760_v57 = vrot.slane %v1753_v21, 4 }
  0xe5   : > { %v1764_v59 = vsel %vm482_vm0, %v1760_v57, %v1761_v51 }
  0xe6   : > { %v1765_v61 = vsel %vm546_vm1, %v1753_v21, %v1764_v59  ;;  %v5695_v3 = vpop.permute.xlu1 %1815  ;;  %v1814_v5 = vpop.permute.xlu0 %1813  ;;  %v5017_v8 = vld [vmem:[#allocation5 + $0xe4] ss:$28 sps:$4 sm:$0xff]  }
  0xe7   : > { %v5019_v10 = vld [vmem:[#allocation5 + $0xe0] ss:$28 sps:$4 sm:$0xff]   ;;  %1775 = vst [vmem:[#allocation5 + $0x134] sm:$0x33] %v1765_v61  ;;  %v1822_v17 = vrot.slane %v5695_v3, 4  ;;  %v1821_v14 = vrot.slane %v1814_v5, 4  ;;  %2228 = vmatprep.subr.bf16.mxu0 %v5017_v8 }
  0xe8   : > { %2229 = vmatpush1.bf16.msra.mxu0 %v5019_v10 }
  0xe9   : > { %v1825_v15 = vsel %vm482_vm0, %v1821_v14, %v1822_v17 }
  0xea   : > { %v1826_v23 = vsel %vm6897_vm4, %v1814_v5, %v1825_v15  ;;  %v5702_v28 = vpop.permute.xlu1 %537  ;;  %v475_v33 = vpop.permute.xlu0 %474 }
  0xeb   : > { %1836 = vst [vmem:[#allocation5 + $0x134] sm:$0xcc] %v1826_v23  ;;  %v543_v37 = vrot.slane %v5702_v28, 4  ;;  %v480_v25 = vrot.slane %v475_v33, 4 }
  0xed   : > { %v548_v40 = vsel %vm482_vm0, %v542_v36, %v543_v37  ;;  %v486_v45 = vsel %vm482_vm0, %v479_v35, %v480_v25 }
  0xee   : > { %v549_v49 = vsel %vm546_vm1, %v5478_v32, %v548_v40  ;;  %v487_v21 = vsel %vm484_vm2, %v5466_v29, %v486_v45  ;;  %v1875_v57 = vpop.permute.xlu1 %1874  ;;  %v5717_v59 = vpop.permute.xlu0 %599 }
  0xef   : > { %558 = vst [vmem:[#allocation5 + $0x24] sm:$0x33] %v549_v49  ;;  %496 = vst [vmem:[#allocation5 + $0x8] sm:$0xcc] %v487_v21  ;;  %v605_v61 = vrot.slane %v5717_v59, 4  ;;  %v1882_v5 = vrot.slane %v1875_v57, 4 }
  0xf1   : > { %v610_v36 = vsel %vm482_vm0, %v604_v44, %v605_v61 }
  0xf2   : > { %v611_v35 = vsel %vm6897_vm4, %v5472_v30, %v610_v36  ;;  %v5725_v8 = vpop.permute.xlu1 %661  ;;  %v5727_v32 = vpop.permute.xlu0 %1876  ;;  %v5020_v29 = vld [vmem:[#allocation5 + $0x11c] ss:$28 sps:$4 sm:$0xff]  }
  0xf3   : > { %v5022_v10 = vld [vmem:[#allocation5 + $0x118] ss:$28 sps:$4 sm:$0xff]   ;;  %620 = vst [vmem:[#allocation5 + $0x24] sm:$0xcc] %v611_v35  ;;  %v667_v14 = vrot.slane %v5725_v8, 4  ;;  %v1883_v15 = vrot.slane %v5727_v32, 4  ;;  %2230 = vmatprep.subr.bf16.mxu0 %v5020_v29 }
  0xf4   : > { %2231 = vmatpush1.bf16.msra.mxu0 %v5022_v10 }
  0xf5   : > { %v672_v44 = vsel %vm482_vm0, %v666_v46, %v667_v14  ;;  %v1886_v30 = vsel %vm482_vm0, %v1882_v5, %v1883_v15 }
  0xf6   : > { %v673_v23 = vsel %vm670_vm3, %v5494_v42, %v672_v44  ;;  %v1887_v40 = vsel %vm670_vm3, %v1875_v57, %v1886_v30  ;;  %v5742_v45 = vpop.permute.xlu1 %785  ;;  %v5744_v49 = vpop.permute.xlu0 %723  ;;  %v1903_v10 = vld [vmem:[#allocation5 + $0x8] sm:$0xff] }
  0xf7   : > { %682 = vst [vmem:[#allocation5 + $0x40] sm:$0x33] %v673_v23  ;;  %1897 = vst [vmem:[#allocation5 + $0x150] sm:$0x33] %v1887_v40  ;;  %v791_v21 = vrot.slane %v5742_v45, 4  ;;  %v729_v46 = vrot.slane %v5744_v49, 4 }
  0xf9   : > { %v796_v5 = vsel %vm482_vm0, %v790_v60, %v791_v21  ;;  %v734_v42 = vsel %vm482_vm0, %v728_v54, %v729_v46 }
  0xfa   : > { %v797_v57 = vsel %vm794_vm6, %v5521_v58, %v796_v5  ;;  %v735_v36 = vsel %vm732_vm5, %v5510_v52, %v734_v42  ;;  %v477_v35 = vpop.permute.xlu1 %476  ;;  %v5762_v29 = vpop.permute.xlu0 %847  ;;  %v1907_v44 = vld [vmem:[#allocation5 + $0x24] sm:$0xff] }
  0xfb   : > { %v5023_v30 = vld [vmem:[#allocation5 + $0xc] ss:$28 sps:$4 sm:$0xff]   ;;  %806 = vst [vmem:[#allocation5 + $0x5c] sm:$0x33] %v797_v57  ;;  %744 = vst [vmem:[#allocation5 + $0x40] sm:$0xcc] %v735_v36  ;;  %v4549_v40 = vcombine.low %v1903_v10, %v1907_v44 }
  0xfc   : > { %v481_v60 = vrot.slane %v477_v35, 4  ;;  %v853_v23 = vrot.slane %v5762_v29, 4  ;;  %2261 = vmatprep.subr.bf16.mxu1 %v5023_v30 }
  0xfd   : > { %2262 = vmatpush1.bf16.msra.mxu1 %v4549_v40 }
  0xfe   : > { %v488_v54 = vsel %vm482_vm0, %v480_v25, %v481_v60  ;;  %v490_v58 = vsel %vm484_vm2, %v477_v35, %v481_v60  ;;  %v858_v52 = vsel %vm482_vm0, %v852_v7, %v853_v23  ;;  %v602_v57 = vpop.permute.xlu1 %601  ;;  %v540_v36 = vpop.permute.xlu0 %539  ;;  %v1950_v10 = vld [vmem:[#allocation5 + $0x150] sm:$0x33] }
  0xff   : > { %v489_v5 = vsel %vm484_vm2, %v475_v33, %v488_v54  ;;  %498 = vst [vmem:[#allocation5 + $0x18] sm:$0xc] %v490_v58  ;;  %v859_v42 = vsel %vm856_vm7, %v5532_v0, %v858_v52  ;;  %v606_v25 = vrot.slane %v602_v57, 4  ;;  %v544_v35 = vrot.slane %v540_v36, 4 }
 0x100   : > { %497 = vst [vmem:[#allocation5 + $0x10] sm:$0xcc] %v489_v5  ;;  %868 = vst [vmem:[#allocation5 + $0x5c] sm:$0xcc] %v859_v42  ;;  %v4590_v44 = vcombine.high %v1950_v10, %v1950_v10  ;;  %v4589_v30 = vcombine.low %v1950_v10, %v1950_v10 }
 0x101   : > { %v612_v60 = vsel %vm482_vm0, %v605_v61, %v606_v25  ;;  %v614_v7 = vsel %vm6897_vm4, %v602_v57, %v606_v25  ;;  %v550_v33 = vsel %vm482_vm0, %v543_v37, %v544_v35  ;;  %v552_v0 = vsel %vm546_vm1, %v540_v36, %v544_v35 }
 0x102   : > { %4596 = vmatprep.subr.msk.bf16.mxu0 %vm2198_vm14, %v4590_v44  ;;  %v613_v40 = vsel %vm6897_vm4, %v5717_v59, %v612_v60  ;;  %622 = vst [vmem:[#allocation5 + $0x34] sm:$0xc] %v614_v7  ;;  %v551_v54 = vsel %vm546_vm1, %v5702_v28, %v550_v33  ;;  %560 = vst [vmem:[#allocation5 + $0x34] sm:$0x3] %v552_v0  ;;  %v5786_v58 = vpop.permute.xlu1 %971  ;;  %v5788_v61 = vpop.permute.xlu0 %909  ;;  %v2200_v52 = vsel %vm2198_vm14, %v4589_v30, 0  ;;  %vm2194_vm4 = vcmask 818176  }
 0x103   : > { %621 = vst [vmem:[#allocation5 + $0x2c] sm:$0xcc] %v613_v40  ;;  %559 = vst [vmem:[#allocation5 + $0x2c] sm:$0x33] %v551_v54  ;;  %v977_v37 = vrot.slane %v5786_v58, 4  ;;  %v915_v5 = vrot.slane %v5788_v61, 4  ;;  %2233 = vmatpush1.bf16.msra.mxu0 %v2200_v52 }
 0x104   : > { %v5796_v59 = vld [vmem:[%s6845_s1] sm:$0xf] }
 0x105   : > { %v982_v28 = vsel %vm482_vm0, %v976_v20, %v977_v37  ;;  %v920_v42 = vsel %vm482_vm0, %v914_v13, %v915_v5 }
 0x106   : > { %v983_v57 = vsel %vm980_vm9, %v5554_v18, %v982_v28  ;;  %v921_v36 = vsel %vm918_vm8, %v5543_v11, %v920_v42  ;;  %4597 = vmatmul.mubr.msk.bf16.vlgmr.msra.gmra.mrb[0].mxu0 %vm2194_vm4, %v5796_v59  ;;  %v5814_v10 = vpop.permute.xlu1 %1095  ;;  %v5816_v25 = vpop.permute.xlu0 %1033 }
 0x107   : > { %v5027_v20 = vld [vmem:[#allocation5 + $0x44] ss:$28 sps:$4 sm:$0xff]   ;;  %992 = vst [vmem:[#allocation5 + $0x78] sm:$0xcc] %v983_v57  ;;  %930 = vst [vmem:[#allocation5 + $0x78] sm:$0x33] %v921_v36  ;;  %2334 = vmatprep.mubr.bf16.mxu0 %v5224_v26 }
 0x108   : > { %v5029_v35 = vld [vmem:[#allocation5 + $0x40] ss:$28 sps:$4 sm:$0xff]   ;;  %v1101_v44 = vrot.slane %v5814_v10, 4  ;;  %v1039_v13 = vrot.slane %v5816_v25, 4  ;;  %2263 = vmatprep.subr.bf16.mxu1 %v5027_v20 }
 0x109   : > { %2264 = vmatpush1.bf16.msra.mxu1 %v5029_v35 }
 0x10a   : > { %v1106_v11 = vsel %vm482_vm0, %v1100_v47, %v1101_v44  ;;  %v1044_v18 = vsel %vm482_vm0, %v1038_v38, %v1039_v13  ;;  %v726_v7 = vpop.permute.xlu1 %725  ;;  %v664_v33 = vpop.permute.xlu0 %663  ;;  %v5031_v0 = vld [vmem:[#allocation5 + $0x10] ss:$28 sps:$4 sm:$0xff]  }
 0x10b   : > { %v1107_v30 = vsel %vm1104_vm11, %v5582_v43, %v1106_v11  ;;  %v1045_v60 = vsel %vm1042_vm10, %v5568_v31, %v1044_v18  ;;  %v5033_v40 = vld [vmem:[#allocation5 + $0x14] ss:$28 sps:$4 sm:$0xff]   ;;  %v730_v47 = vrot.slane %v726_v7, 4  ;;  %v668_v54 = vrot.slane %v664_v33, 4 }
 0x10c   : > { %1116 = vst [vmem:[#allocation5 + $0x94] sm:$0xcc] %v1107_v30  ;;  %1054 = vst [vmem:[#allocation5 + $0x94] sm:$0x33] %v1045_v60  ;;  %2302 = vmatprep.subr.bf16.mxu0 %v5033_v40 }
 0x10d   : > { %v736_v38 = vsel %vm482_vm0, %v729_v46, %v730_v47  ;;  %v738_v52 = vsel %vm732_vm5, %v726_v7, %v730_v47  ;;  %v674_v43 = vsel %vm482_vm0, %v667_v14, %v668_v54  ;;  %v676_v31 = vsel %vm670_vm3, %v664_v33, %v668_v54  ;;  %2303 = vmatpush1.bf16.msra.mxu0 %v5031_v0 }
 0x10e   : > { %v737_v28 = vsel %vm732_vm5, %v5744_v49, %v736_v38  ;;  %746 = vst [vmem:[#allocation5 + $0x50] sm:$0xc] %v738_v52  ;;  %v675_v42 = vsel %vm670_vm3, %v5725_v8, %v674_v43  ;;  %684 = vst [vmem:[#allocation5 + $0x50] sm:$0x3] %v676_v31  ;;  %v850_v57 = vpop.permute.xlu1 %849  ;;  %v788_v36 = vpop.permute.xlu0 %787 }
 0x10f   : > { %745 = vst [vmem:[#allocation5 + $0x48] sm:$0xcc] %v737_v28  ;;  %683 = vst [vmem:[#allocation5 + $0x48] sm:$0x33] %v675_v42  ;;  %v854_v46 = vrot.slane %v850_v57, 4  ;;  %v792_v20 = vrot.slane %v788_v36, 4 }
 0x111   : > { %v860_v14 = vsel %vm482_vm0, %v853_v23, %v854_v46  ;;  %v862_v35 = vsel %vm856_vm7, %v850_v57, %v854_v46  ;;  %v798_v49 = vsel %vm482_vm0, %v791_v21, %v792_v20  ;;  %v800_v11 = vsel %vm794_vm6, %v788_v36, %v792_v20 }
 0x112   : > { %v861_v8 = vsel %vm856_vm7, %v5762_v29, %v860_v14  ;;  %870 = vst [vmem:[#allocation5 + $0x6c] sm:$0xc] %v862_v35  ;;  %v799_v18 = vsel %vm794_vm6, %v5742_v45, %v798_v49  ;;  %808 = vst [vmem:[#allocation5 + $0x6c] sm:$0x3] %v800_v11  ;;  %v5859_v30 = vpop.permute.xlu1 %1219  ;;  %v5861_v60 = vpop.permute.xlu0 %1157  ;;  %vm6925_vm6 = vcmask 261120   ;;  %vm6926_vm7 = vcmask 490496  }
 0x113   : > { %v5034_v23 = vld [vmem:[#allocation5 + $0x7c] ss:$28 sps:$4 sm:$0xff]   ;;  %869 = vst [vmem:[#allocation5 + $0x64] sm:$0xcc] %v861_v8  ;;  %807 = vst [vmem:[#allocation5 + $0x64] sm:$0x33] %v799_v18 }
 0x114   : > { %v5036_v7 = vld [vmem:[#allocation5 + $0x78] ss:$28 sps:$4 sm:$0xff]   ;;  %v1225_v21 = vrot.slane %v5859_v30, 4  ;;  %v1163_v33 = vrot.slane %v5861_v60, 4  ;;  %2265 = vmatprep.subr.bf16.mxu1 %v5034_v23 }
 0x115   : > { %2266 = vmatpush1.bf16.msra.mxu1 %v5036_v7 }
 0x116   : > { %v1230_v45 = vsel %vm482_vm0, %v1224_v2, %v1225_v21  ;;  %v1168_v29 = vsel %vm482_vm0, %v1162_v56, %v1163_v33  ;;  %v5879_v47 = vpop.permute.xlu1 %1343  ;;  %v5881_v54 = vpop.permute.xlu0 %1281 }
 0x117   : > { %v1231_v0 = vsel %vm1228_vm13, %v5608_v62, %v1230_v45  ;;  %v1169_v40 = vsel %vm1166_vm12, %v5598_v53, %v1168_v29  ;;  %v1349_v2 = vrot.slane %v5879_v47, 4  ;;  %v1287_v38 = vrot.slane %v5881_v54, 4 }
 0x118   : > { %1240 = vst [vmem:[#allocation5 + $0xb0] sm:$0xcc] %v1231_v0  ;;  %1178 = vst [vmem:[#allocation5 + $0xb0] sm:$0x33] %v1169_v40 }
 0x119   : > { %v1354_v56 = vsel %vm482_vm0, %v1348_v27, %v1349_v2  ;;  %v1292_v53 = vsel %vm482_vm0, %v1286_v19, %v1287_v38 }
 0x11a   : > { %v1355_v62 = vsel %vm6925_vm6, %v5632_v34, %v1354_v56  ;;  %v1293_v52 = vsel %vm6926_vm7, %v5619_v12, %v1292_v53  ;;  %v974_v43 = vpop.permute.xlu1 %973  ;;  %v912_v31 = vpop.permute.xlu0 %911  ;;  %v5037_v28 = vld [vmem:[#allocation5 + $0x48] ss:$28 sps:$4 sm:$0xff]  }
 0x11b   : > { %v5039_v42 = vld [vmem:[#allocation5 + $0x4c] ss:$28 sps:$4 sm:$0xff]   ;;  %1364 = vst [vmem:[#allocation5 + $0xcc] sm:$0xcc] %v1355_v62  ;;  %1302 = vst [vmem:[#allocation5 + $0xcc] sm:$0x33] %v1293_v52 }
 0x11c   : > { %v978_v57 = vrot.slane %v974_v43, 4  ;;  %v916_v27 = vrot.slane %v912_v31, 4  ;;  %2304 = vmatprep.subr.bf16.mxu0 %v5039_v42 }
 0x11d   : > { %2305 = vmatpush1.bf16.msra.mxu0 %v5037_v28 }
 0x11e   : > { %v984_v36 = vsel %vm482_vm0, %v977_v37, %v978_v57  ;;  %v986_v19 = vsel %vm980_vm9, %v974_v43, %v978_v57  ;;  %v922_v34 = vsel %vm482_vm0, %v915_v5, %v916_v27  ;;  %v924_v12 = vsel %vm918_vm8, %v912_v31, %v916_v27  ;;  %v1098_v14 = vpop.permute.xlu1 %1097  ;;  %v1036_v35 = vpop.permute.xlu0 %1035 }
 0x11f   : > { %v985_v46 = vsel %vm980_vm9, %v5786_v58, %v984_v36  ;;  %994 = vst [vmem:[#allocation5 + $0x88] sm:$0xc] %v986_v19  ;;  %v923_v20 = vsel %vm918_vm8, %v5788_v61, %v922_v34  ;;  %932 = vst [vmem:[#allocation5 + $0x88] sm:$0x3] %v924_v12  ;;  %v1102_v37 = vrot.slane %v1098_v14, 4  ;;  %v1040_v49 = vrot.slane %v1036_v35, 4 }
 0x120   : > { %993 = vst [vmem:[#allocation5 + $0x80] sm:$0xcc] %v985_v46  ;;  %931 = vst [vmem:[#allocation5 + $0x80] sm:$0x33] %v923_v20  ;;  %vm6927_vm8 = vcmask 244736   ;;  %vm6928_vm9 = vcmask 252928  }
 0x121   : > { %v1108_v5 = vsel %vm482_vm0, %v1101_v44, %v1102_v37  ;;  %v1110_v11 = vsel %vm1104_vm11, %v1098_v14, %v1102_v37  ;;  %v1046_v58 = vsel %vm482_vm0, %v1039_v13, %v1040_v49  ;;  %v1048_v8 = vsel %vm1042_vm10, %v1036_v35, %v1040_v49 }
 0x122   : > { %v1109_v61 = vsel %vm1104_vm11, %v5814_v10, %v1108_v5  ;;  %1118 = vst [vmem:[#allocation5 + $0xa4] sm:$0xc] %v1110_v11  ;;  %v1047_v18 = vsel %vm1042_vm10, %v5816_v25, %v1046_v58  ;;  %1056 = vst [vmem:[#allocation5 + $0xa4] sm:$0x3] %v1048_v8  ;;  %v5923_v23 = vpop.permute.xlu1 %1467  ;;  %v5925_v7 = vpop.permute.xlu0 %1405  ;;  %v5040_v44 = vld [vmem:[#allocation5 + $0xb4] ss:$28 sps:$4 sm:$0xff]  }
 0x123   : > { %v5042_v45 = vld [vmem:[#allocation5 + $0xb0] ss:$28 sps:$4 sm:$0xff]   ;;  %1117 = vst [vmem:[#allocation5 + $0x9c] sm:$0xcc] %v1109_v61  ;;  %1055 = vst [vmem:[#allocation5 + $0x9c] sm:$0x33] %v1047_v18  ;;  %2267 = vmatprep.subr.bf16.mxu1 %v5040_v44 }
 0x124   : > { %v1473_v13 = vrot.slane %v5923_v23, 4  ;;  %v1411_v29 = vrot.slane %v5925_v7, 4  ;;  %2268 = vmatpush1.bf16.msra.mxu1 %v5042_v45  ;;  %vm6929_vm11 = vcmask 236544  }
 0x126   : > { %v1478_v10 = vsel %vm482_vm0, %v1472_v55, %v1473_v13  ;;  %v1416_v25 = vsel %vm482_vm0, %v1410_v48, %v1411_v29  ;;  %v5943_v56 = vpop.permute.xlu1 %1591  ;;  %v5945_v53 = vpop.permute.xlu0 %1529 }
 0x127   : > { %v1479_v0 = vsel %vm6927_vm8, %v5654_v50, %v1478_v10  ;;  %v1417_v40 = vsel %vm6928_vm9, %v5644_v41, %v1416_v25  ;;  %v1597_v55 = vrot.slane %v5943_v56, 4  ;;  %v1535_v62 = vrot.slane %v5945_v53, 4 }
 0x128   : > { %1488 = vst [vmem:[#allocation5 + $0xe8] sm:$0xcc] %v1479_v0  ;;  %1426 = vst [vmem:[#allocation5 + $0xe8] sm:$0x33] %v1417_v40 }
 0x129   : > { %v1602_v48 = vsel %vm482_vm0, %v1596_v24, %v1597_v55  ;;  %v1540_v41 = vsel %vm482_vm0, %v1534_v9, %v1535_v62 }
 0x12a   : > { %v1603_v50 = vsel %vm1600_vm15, %v5674_v16, %v1602_v48  ;;  %v1541_v52 = vsel %vm6929_vm11, %v5664_v63, %v1540_v41  ;;  %v1222_v43 = vpop.permute.xlu1 %1221  ;;  %v1160_v31 = vpop.permute.xlu0 %1159  ;;  %v5043_v28 = vld [vmem:[#allocation5 + $0x80] ss:$28 sps:$4 sm:$0xff]   ;;  %vm6933_vm11 = vmmov %vm6928_vm9 }
 0x12b   : > { %v5045_v42 = vld [vmem:[#allocation5 + $0x84] ss:$28 sps:$4 sm:$0xff]   ;;  %1612 = vst [vmem:[#allocation5 + $0x104] sm:$0xcc] %v1603_v50  ;;  %1550 = vst [vmem:[#allocation5 + $0x104] sm:$0x33] %v1541_v52 }
 0x12c   : > { %v1226_v57 = vrot.slane %v1222_v43, 4  ;;  %v1164_v24 = vrot.slane %v1160_v31, 4  ;;  %2306 = vmatprep.subr.bf16.mxu0 %v5045_v42 }
 0x12d   : > { %2307 = vmatpush1.bf16.msra.mxu0 %v5043_v28 }
 0x12e   : > { %v1232_v27 = vsel %vm482_vm0, %v1225_v21, %v1226_v57  ;;  %v1234_v9 = vsel %vm1228_vm13, %v1222_v43, %v1226_v57  ;;  %v1170_v16 = vsel %vm482_vm0, %v1163_v33, %v1164_v24  ;;  %v1172_v63 = vsel %vm1166_vm12, %v1160_v31, %v1164_v24  ;;  %v1346_v34 = vpop.permute.xlu1 %1345  ;;  %v1284_v12 = vpop.permute.xlu0 %1283 }
 0x12f   : > { %v1233_v36 = vsel %vm1228_vm13, %v5859_v30, %v1232_v27  ;;  %1242 = vst [vmem:[#allocation5 + $0xc0] sm:$0xc] %v1234_v9  ;;  %v1171_v19 = vsel %vm1166_vm12, %v5861_v60, %v1170_v16  ;;  %1180 = vst [vmem:[#allocation5 + $0xc0] sm:$0x3] %v1172_v63  ;;  %v1350_v21 = vrot.slane %v1346_v34, 4  ;;  %v1288_v46 = vrot.slane %v1284_v12, 4 }
 0x130   : > { %1241 = vst [vmem:[#allocation5 + $0xb8] sm:$0xcc] %v1233_v36  ;;  %1179 = vst [vmem:[#allocation5 + $0xb8] sm:$0x33] %v1171_v19 }
 0x131   : > { %v1356_v33 = vsel %vm482_vm0, %v1349_v2, %v1350_v21  ;;  %v1358_v20 = vsel %vm6925_vm6, %v1346_v34, %v1350_v21  ;;  %v1294_v30 = vsel %vm482_vm0, %v1287_v38, %v1288_v46  ;;  %vm6930_vm13 = vmmov %vm6926_vm7 }
 0x132   : > { %v1296_v14 = vsel %vm6930_vm13, %v1284_v12, %v1288_v46  ;;  %vm6931_vm7 = vmmov %vm6925_vm6  ;;  %1366 = vst [vmem:[#allocation5 + $0xdc] sm:$0xc] %v1358_v20  ;;  %v5987_v37 = vpop.permute.xlu1 %1756  ;;  %v5989_v49 = vpop.permute.xlu0 %1695  ;;  %v5046_v2 = vld [vmem:[#allocation5 + $0xec] ss:$28 sps:$4 sm:$0xff]   ;;  %vm6934_vm6 = vcmask 1022976  }
 0x133   : > { %v1357_v60 = vsel %vm6931_vm7, %v5879_v47, %v1356_v33  ;;  %vm6932_vm8 = vmmov %vm6930_vm13  ;;  %1304 = vst [vmem:[#allocation5 + $0xdc] sm:$0x3] %v1296_v14  ;;  %v5048_v5 = vld [vmem:[#allocation5 + $0xe8] ss:$28 sps:$4 sm:$0xff]   ;;  %v1762_v38 = vrot.slane %v5987_v37, 4  ;;  %v1701_v11 = vrot.slane %v5989_v49, 4  ;;  %2269 = vmatprep.subr.bf16.mxu1 %v5046_v2 }
 0x134   : > { %v1295_v35 = vsel %vm6932_vm8, %v5881_v54, %v1294_v30  ;;  %1365 = vst [vmem:[#allocation5 + $0xd4] sm:$0xcc] %v1357_v60  ;;  %2270 = vmatpush1.bf16.msra.mxu1 %v5048_v5  ;;  %vm6935_vm13 = vcmask 236544   ;;  %vm6936_vm7 = vcmask 244736  }
 0x135   : > { %1303 = vst [vmem:[#allocation5 + $0xd4] sm:$0x33] %v1295_v35  ;;  %v1766_v47 = vsel %vm482_vm0, %v1761_v51, %v1762_v38  ;;  %v1705_v54 = vsel %vm482_vm0, %v1700_v39, %v1701_v11  ;;  %vm6937_vm8 = vmmov %vm6935_vm13 }
 0x136   : > { %v1767_v58 = vsel %vm546_vm1, %v5688_v6, %v1766_v47  ;;  %v1706_v8 = vsel %vm484_vm2, %v5681_v22, %v1705_v54  ;;  %v1408_v61 = vpop.permute.xlu1 %1407  ;;  %v6005_v18 = vpop.permute.xlu0 %1817 }
 0x137   : > { %1776 = vst [vmem:[#allocation5 + $0x13c] sm:$0x33] %v1767_v58  ;;  %1715 = vst [vmem:[#allocation5 + $0x120] sm:$0xcc] %v1706_v8  ;;  %v1412_v44 = vrot.slane %v1408_v61, 4  ;;  %v1823_v51 = vrot.slane %v6005_v18, 4 }
 0x139   : > { %v1418_v45 = vsel %vm482_vm0, %v1411_v29, %v1412_v44  ;;  %v1420_v39 = vsel %vm6928_vm9, %v1408_v61, %v1412_v44  ;;  %v1827_v22 = vsel %vm482_vm0, %v1822_v17, %v1823_v51  ;;  %vm6938_vm9 = vmmov %vm6936_vm7  ;;  %v6900_v61 = vmov 0.0   ;;  %v5059_v44 = vld [vmem:[#allocation5 + $0x18] ss:$28 sps:$4 sm:$0xff]  }
 0x13a   : > { %v1419_v6 = vsel %vm6933_vm11, %v5925_v7, %v1418_v45  ;;  %1428 = vst [vmem:[#allocation5 + $0xf8] sm:$0x3] %v1420_v39  ;;  %v1828_v10 = vsel %vm6934_vm6, %v5695_v3, %v1827_v22  ;;  %v1532_v25 = vpop.permute.xlu1 %1531  ;;  %v1470_v0 = vpop.permute.xlu0 %1469  ;;  %vm6940_vm11 = vmmov %vm6934_vm6  ;;  %v5064_v39 = vld [vmem:[#allocation5 + $0x50] ss:$28 sps:$4 sm:$0xff]  }
 0x13b   : > { %1427 = vst [vmem:[#allocation5 + $0xf0] sm:$0x33] %v1419_v6  ;;  %1837 = vst [vmem:[#allocation5 + $0x13c] sm:$0xcc] %v1828_v10  ;;  %v1536_v29 = vrot.slane %v1532_v25, 4  ;;  %v1474_v41 = vrot.slane %v1470_v0, 4 }
 0x13c   : > { %v5049_v40 = vld [vmem:[#allocation5 + $0xb8] ss:$28 sps:$4 sm:$0xff]  }
 0x13d   : > { %v5051_v48 = vld [vmem:[#allocation5 + $0xbc] ss:$28 sps:$4 sm:$0xff]   ;;  %v1542_v17 = vsel %vm482_vm0, %v1535_v62, %v1536_v29  ;;  %v1544_v50 = vsel %vm6935_vm13, %v1532_v25, %v1536_v29  ;;  %v1480_v7 = vsel %vm482_vm0, %v1473_v13, %v1474_v41  ;;  %v1482_v3 = vsel %vm6936_vm7, %v1470_v0, %v1474_v41  ;;  %v5067_v25 = vld [vmem:[#allocation5 + $0x88] ss:$28 sps:$4 sm:$0xff]  }
 0x13e   : > { %2308 = vmatprep.subr.bf16.mxu0 %v5051_v48  ;;  %v1543_v52 = vsel %vm6937_vm8, %v5945_v53, %v1542_v17  ;;  %1552 = vst [vmem:[#allocation5 + $0x114] sm:$0x3] %v1544_v50  ;;  %v1481_v43 = vsel %vm6938_vm9, %v5923_v23, %v1480_v7  ;;  %1490 = vst [vmem:[#allocation5 + $0xf8] sm:$0xc] %v1482_v3  ;;  %v1879_v31 = vpop.permute.xlu1 %1878  ;;  %v1594_v28 = vpop.permute.xlu0 %1593  ;;  %v1943_v16 = vld [vmem:[#allocation5 + $0x120] sm:$0xff]  ;;  %vm6941_vm13 = vcmask 490496  }
 0x13f   : > { %2309 = vmatpush1.bf16.msra.mxu0 %v5049_v40  ;;  %1551 = vst [vmem:[#allocation5 + $0x10c] sm:$0x33] %v1543_v52  ;;  %1489 = vst [vmem:[#allocation5 + $0xf0] sm:$0xcc] %v1481_v43  ;;  %v1884_v62 = vrot.slane %v1879_v31, 4  ;;  %v1598_v42 = vrot.slane %v1594_v28, 4 }
 0x140   : > { %v5068_v0 = vld [vmem:[#allocation5 + $0xc0] ss:$28 sps:$4 sm:$0xff]   ;;  %vm2752_vm7 = vcmask 474112   ;;  %vm2779_vm8 = vcmask 457728   ;;  %vm6942_vm9 = vmmov %vm6941_vm13 }
 0x141   : > { %v1888_v13 = vsel %vm482_vm0, %v1883_v15, %v1884_v62  ;;  %v1604_v57 = vsel %vm482_vm0, %v1597_v55, %v1598_v42  ;;  %v1606_v53 = vsel %vm1600_vm15, %v1594_v28, %v1598_v42 }
 0x142   : > { %v1889_v23 = vsel %vm670_vm3, %v5727_v32, %v1888_v13  ;;  %v1605_v24 = vsel %vm1600_vm15, %v5943_v56, %v1604_v57  ;;  %1614 = vst [vmem:[#allocation5 + $0x114] sm:$0xc] %v1606_v53  ;;  %v1759_v27 = vpop.permute.xlu1 %1758  ;;  %v1698_v9 = vpop.permute.xlu0 %1697  ;;  %v1947_v63 = vld [vmem:[#allocation5 + $0x13c] sm:$0xff]  ;;  %vm6939_vm15 = vmmov %vm6934_vm6  ;;  %vm5226_vm6 = vmmov 0  }
 0x143   : > { %v5052_v36 = vld [vmem:[#allocation5 + $0x124] ss:$28 sps:$4 sm:$0xff]   ;;  %1898 = vst [vmem:[#allocation5 + $0x158] sm:$0x33] %v1889_v23  ;;  %1613 = vst [vmem:[#allocation5 + $0x10c] sm:$0xcc] %v1605_v24  ;;  %v4584_v34 = vcombine.low %v1943_v16, %v1947_v63 }
 0x144   : > { %v1763_v15 = vrot.slane %v1759_v27, 4  ;;  %v1702_v19 = vrot.slane %v1698_v9, 4  ;;  %2271 = vmatprep.subr.bf16.mxu1 %v5052_v36 }
 0x145   : > { %2272 = vmatpush1.bf16.msra.mxu1 %v4584_v34 }
 0x146   : > { %v1768_v55 = vsel %vm482_vm0, %v1762_v38, %v1763_v15  ;;  %v1770_v12 = vsel %vm546_vm1, %v1759_v27, %v1763_v15  ;;  %v1707_v32 = vsel %vm482_vm0, %v1701_v11, %v1702_v19  ;;  %v1709_v56 = vsel %vm484_vm2, %v1698_v9, %v1702_v19  ;;  %v1881_v33 = vpop.permute.xlu1 %1880  ;;  %v1820_v20 = vpop.permute.xlu0 %1819 }
 0x147   : > { %v1769_v21 = vsel %vm546_vm1, %v5987_v37, %v1768_v55  ;;  %1778 = vst [vmem:[#allocation5 + $0x14c] sm:$0x3] %v1770_v12  ;;  %v1708_v46 = vsel %vm484_vm2, %v5989_v49, %v1707_v32  ;;  %1717 = vst [vmem:[#allocation5 + $0x130] sm:$0xc] %v1709_v56  ;;  %v1885_v30 = vrot.slane %v1881_v33, 4  ;;  %v1824_v14 = vrot.slane %v1820_v20, 4 }
 0x148   : > { %1777 = vst [vmem:[#allocation5 + $0x144] sm:$0x33] %v1769_v21  ;;  %1716 = vst [vmem:[#allocation5 + $0x128] sm:$0xcc] %v1708_v46 }
 0x149   : > { %v1890_v60 = vsel %vm482_vm0, %v1884_v62, %v1885_v30  ;;  %v1892_v35 = vsel %vm670_vm3, %v1881_v33, %v1885_v30  ;;  %v1829_v2 = vsel %vm482_vm0, %v1823_v51, %v1824_v14  ;;  %v1831_v37 = vsel %vm6939_vm15, %v1820_v20, %v1824_v14  ;;  %v5069_v40 = vld [vmem:[#allocation5 + $0xf8] ss:$28 sps:$4 sm:$0xff]   ;;  %vm6943_vm15 = vmmov %vm6942_vm9 }
 0x14a   : > { %v1891_v5 = vsel %vm670_vm3, %v1879_v31, %v1890_v60  ;;  %1900 = vst [vmem:[#allocation5 + $0x168] sm:$0x3] %v1892_v35  ;;  %v1830_v49 = vsel %vm6940_vm11, %v6005_v18, %v1829_v2  ;;  %1839 = vst [vmem:[#allocation5 + $0x14c] sm:$0xc] %v1831_v37  ;;  %v1951_v38 = vld [vmem:[#allocation5 + $0x158] sm:$0x33] }
 0x14b   : > { %v5055_v11 = vld [vmem:[#allocation5 + $0xf0] ss:$28 sps:$4 sm:$0xff]   ;;  %1899 = vst [vmem:[#allocation5 + $0x160] sm:$0x33] %v1891_v5  ;;  %1838 = vst [vmem:[#allocation5 + $0x144] sm:$0xcc] %v1830_v49  ;;  %v4592_v47 = vcombine.high %v1951_v38, %v1951_v38  ;;  %v4591_v58 = vcombine.low %v1951_v38, %v1951_v38 }
 0x14c   : > { %v5057_v54 = vld [vmem:[#allocation5 + $0xf4] ss:$28 sps:$4 sm:$0xff]   ;;  %vm6944_vm11 = vmmov %vm6942_vm9 }
 0x14d   : > { %4598 = vmatprep.subr.msk.bf16.mxu1 %vm2198_vm14, %v4592_v47  ;;  %2310 = vmatprep.subr.bf16.mxu0 %v5057_v54  ;;  %v2206_v8 = vsel %vm2198_vm14, %v4591_v58, 0 }
 0x14e   : > { %2274 = vmatpush1.bf16.msra.mxu1 %v2206_v8  ;;  %2311 = vmatpush1.bf16.msra.mxu0 %v5055_v11 }
 0x14f   : > { %4818 = vmatprep.subr.bf16.mxu1 %v6900_v61 }
 0x151   : > { %4599 = vmatmul.mubr.msk.bf16.vlgmr.msra.gmra.mrb[0].mxu1 %vm2194_vm4, %v5796_v59  ;;  %v5070_v48 = vld [vmem:[#allocation5 + $0x130] ss:$28 sps:$4 sm:$0xff]   ;;  %v5071_v29 = vld [vmem:[#allocation5 + $0x168] ss:$0 sps:$4 sm:$0x33]  }
 0x152   : > { %4819 = vmatpush3.bf16.msra.mxu1 %v5059_v44  ;;  %v5061_v18 = vld [vmem:[#allocation5 + $0x128] ss:$28 sps:$4 sm:$0xff]   ;;  %4832 = vmatprep.mubr.msk.bf16.mxu1 %vm5226_vm6, %v6900_v61  ;;  %v2218_v41 = vsel %vm2198_vm14, %v5071_v29, 0 }
 0x153   : > { %v5063_v51 = vld [vmem:[#allocation5 + $0x12c] ss:$28 sps:$4 sm:$0xff]   ;;  %4820 = vmatprep.subr.bf16.mxu1 %v6900_v61  ;;  %v1952_v45 = vld [vmem:[#allocation5 + $0x160] sm:$0x33] }
 0x154   : > { %2312 = vmatprep.subr.bf16.mxu0 %v5063_v51  ;;  %v4594_v22 = vcombine.high %v1952_v45, %v1952_v45  ;;  %v4593_v6 = vcombine.low %v1952_v45, %v1952_v45 }
 0x155   : > { %2313 = vmatpush1.bf16.msra.mxu0 %v5061_v18 }
 0x156   : > { %4821 = vmatpush3.bf16.msra.mxu1 %v5064_v39  ;;  %4600 = vmatprep.subr.msk.bf16.mxu0 %vm2198_vm14, %v4594_v22  ;;  %v2212_v10 = vsel %vm2198_vm14, %v4593_v6, 0 }
 0x157   : > { %4822 = vmatprep.subr.bf16.mxu1 %v6900_v61  ;;  %v1958_v17 = vpop.permute.xlu0 %1957 }
 0x159   : > { %2315 = vmatpush1.bf16.msra.mxu0 %v2212_v10 }
 0x15a   : > { %4823 = vmatpush3.bf16.msra.mxu1 %v5067_v25 }
 0x15b   : > { %4824 = vmatprep.subr.bf16.mxu1 %v6900_v61 }
 0x15c   : > { %4601 = vmatmul.mubr.msk.bf16.vlgmr.msra.gmra.mrb[4].mxu0 %vm2194_vm4, %v5796_v59 }
 0x15e   : > { %4825 = vmatpush3.bf16.msra.mxu1 %v5068_v0 }
 0x15f   : > { %4826 = vmatprep.subr.bf16.mxu1 %v6900_v61 }
 0x162   : > { %4827 = vmatpush3.bf16.msra.mxu1 %v5069_v40 }
 0x163   : > { %4828 = vmatprep.subr.bf16.mxu1 %v6900_v61 }
 0x166   : > { %4829 = vmatpush3.bf16.msra.mxu1 %v5070_v48 }
 0x167   : > { %4830 = vmatprep.subr.bf16.mxu1 %v6900_v61 }
 0x16a   : > { %4831 = vmatpush3.bf16.msra.mxu1 %v2218_v41 }
 0x16d   : > { %4833 = vmatmul.mubr.msk.bf16.vlgmr.msra.gmra.mrb[4].mxu1 %vm2194_vm4, %v5796_v59  ;;  %vm2620_vm4 = vcmask 998400  }
 0x1d9   : > { %v2254_v50 = vpop.f32.mrb[0].mxu0 }
 0x1da   : > { %v2255_v7 = vadd.f32 %v2254_v50, %v1958_v17  ;;  %v2256_v3 = vpop.f32.mrb[1].mxu0 }
 0x1db   : > { %v2257_v52 = vadd.f32 %v2256_v3, %v1958_v17  ;;  %v2258_v43 = vpop.f32.mrb[2].mxu0 }
 0x1dc   : > { %v2383_v31 = vmax.f32 %v2255_v7, 0.0  ;;  %v2259_v28 = vpop.f32.mrb[3].mxu0 }
 0x1dd   : > { %v2384_v62 = vmax.f32 %v2257_v52, 0.0 }
 0x1df   : > { %v4961_v42 = vpack.i.bf16 %v2384_v62, %v2383_v31 }
 0x1e1   : > { %4962 = vrot.lane.b32.xlu1 %v4961_v42, %s6922_s26 }
 0x224   : > { %v2295_v13 = vpop.f32.mrb[0].mxu1 }
 0x225   : > { %v2296_v57 = vadd.f32 %v2295_v13, %v1958_v17  ;;  %v2297_v53 = vpop.f32.mrb[1].mxu1 }
 0x226   : > { %v2298_v23 = vadd.f32 %v2297_v53, %v1958_v17  ;;  %v2299_v24 = vpop.f32.mrb[2].mxu1 }
 0x227   : > { %v2385_v27 = vmax.f32 %v2296_v57, 0.0  ;;  %v2300_v9 = vpop.f32.mrb[3].mxu1 }
 0x228   : > { %v2386_v59 = vmax.f32 %v2298_v23, 0.0 }
 0x22a   : > { %v4966_v16 = vpack.i.bf16 %v2386_v59, %v2385_v27 }
 0x22c   : > { %4967 = vrot.lane.b32.xlu1 %v4966_v16, %s6922_s26 }
 0x22f   : > { %v2336_v63 = vpop.f32.mrb[4].mxu0 }
 0x230   : > { %v2337_v36 = vadd.f32 %v2336_v63, %v1958_v17  ;;  %v2338_v15 = vpop.f32.mrb[5].mxu0 }
 0x231   : > { %v2339_v19 = vadd.f32 %v2338_v15, %v1958_v17  ;;  %v2340_v34 = vpop.f32.mrb[6].mxu0 }
 0x232   : > { %v2387_v55 = vmax.f32 %v2337_v36, 0.0  ;;  %v2341_v12 = vpop.f32.mrb[7].mxu0 }
 0x233   : > { %v2388_v32 = vmax.f32 %v2339_v19, 0.0 }
 0x235   : > { %v4971_v56 = vpack.i.bf16 %v2388_v32, %v2387_v55 }
 0x237   : > { %4972 = vrot.lane.b32.xlu0 %v4971_v56, %s6922_s26 }
 0x240   : > { %v2377_v21 = vpop.f32.mrb[4].mxu1 }
 0x241   : > { %v2378_v46 = vadd.f32 %v2377_v21, %v1958_v17  ;;  %v4834_v33 = vpop.f32.mrb[5].mxu1 }
 0x242   : > { %v2380_v20 = vpop.f32.mrb[6].mxu1 }
 0x243   : > { %v2389_v30 = vmax.f32 %v2378_v46, 0.0  ;;  %v4835_v14 = vpop.f32.mrb[7].mxu1 }
 0x245   : > { %v4976_v60 = vpack.i.bf16 %v6900_v61, %v2389_v30 }
 0x247   : > { %4977 = vrot.lane.b32.xlu1 %v4976_v60, %s6922_s26  ;;  %s5229_s26 = smov 58  }
 0x253   : > { %v4963_v35 = vpop.permute.xlu1 %4962 }
 0x254   : > { %v4965_v2 = vunpack.i.h.bf16 %v4963_v35  ;;  %v4964_v37 = vunpack.i.l.bf16 %v4963_v35 }
 0x256   : > { %v2437_v49 = vsel %vm484_vm2, %v4964_v37, %v4965_v2 }
 0x257   : > { %v2451_v47 = vmax.f32 %v2383_v31, %v2437_v49 }
 0x29e   : > { %v4968_v5 = vpop.permute.xlu1 %4967 }
 0x29f   : > { %v4969_v38 = vunpack.i.l.bf16 %v4968_v5  ;;  %v4970_v8 = vunpack.i.h.bf16 %v4968_v5 }
 0x2a1   : > { %v2438_v11 = vsel %vm484_vm2, %v4965_v2, %v4969_v38  ;;  %v2439_v18 = vsel %vm484_vm2, %v4969_v38, %v4970_v8 }
 0x2a2   : > { %v2452_v54 = vmax.f32 %v2384_v62, %v2438_v11  ;;  %v2453_v6 = vmax.f32 %v2385_v27, %v2439_v18  ;;  %v5231_v11 = vmov 1966171168  }
 0x2a4   : > { %v4981_v58 = vpack.i.bf16 %v2452_v54, %v2451_v47 }
 0x2a6   : > { %4982 = vrot.lane.b32.xlu0 %v4981_v58, %s6907_s12  ;;  %v6201_v58 = vld.sshfl [vmem:[%s6847_s3] sm:$0x11 pattern:$0x75316420] }
 0x2a9   : > { %v4973_v44 = vpop.permute.xlu0 %4972 }
 0x2aa   : > { %v4975_v51 = vunpack.i.h.bf16 %v4973_v44  ;;  %v4974_v45 = vunpack.i.l.bf16 %v4973_v44 }
 0x2ac   : > { %v2440_v39 = vsel %vm484_vm2, %v4970_v8, %v4974_v45  ;;  %v2441_v22 = vsel %vm484_vm2, %v4974_v45, %v4975_v51  ;;  %v3234_v8 = vcombine.high %v6201_v58, %v6201_v58 }
 0x2ad   : > { %v2454_v10 = vmax.f32 %v2386_v59, %v2440_v39  ;;  %v2455_v25 = vmax.f32 %v2387_v55, %v2441_v22 }
 0x2af   : > { %2483 = vrot.lane.b32.xlu0 %v2455_v25, %s6907_s12  ;;  %v4986_v0 = vpack.i.bf16 %v2454_v10, %v2453_v6 }
 0x2b1   : > { %4987 = vrot.lane.b32.xlu1 %v4986_v0, %s6907_s12 }
 0x2b9   : > { %v4978_v40 = vpop.permute.xlu1 %4977 }
 0x2ba   : > { %v4980_v48 = vunpack.i.h.bf16 %v4978_v40  ;;  %v4979_v29 = vunpack.i.l.bf16 %v4978_v40 }
 0x2bc   : > { %v2466_v41 = vmax.f32 %v4980_v48, 0.0  ;;  %v2442_v17 = vsel %vm484_vm2, %v4975_v51, %v4979_v29  ;;  %v2443_v50 = vsel %vm484_vm2, %v4979_v29, %v4980_v48  ;;  %vm3575_vm2 = vcmask 588800  }
 0x2bd   : > { %v2456_v7 = vmax.f32 %v2388_v32, %v2442_v17  ;;  %v2457_v3 = vmax.f32 %v2389_v30, %v2443_v50 }
 0x2be   : > { %2489 = vrot.lane.b32.xlu0 %v2466_v41, %s6907_s12 }
 0x2bf   : > { %v4991_v52 = vpack.i.bf16 %v2457_v3, %v2456_v7 }
 0x2c1   : > { %4992 = vrot.lane.b32.xlu1 %v4991_v52, %s6907_s12  ;;  %s5227_s12 = smov 122  }
 0x318   : > { %v4983_v43 = vpop.permute.xlu0 %4982 }
 0x319   : > { %v4985_v31 = vunpack.i.h.bf16 %v4983_v43  ;;  %v4984_v28 = vunpack.i.l.bf16 %v4983_v43 }
 0x31b   : > { %v2492_v42 = vsel %vm732_vm5, %v4984_v28, %v4985_v31 }
 0x31c   : > { %v2506_v9 = vmax.f32 %v2451_v47, %v2492_v42  ;;  %v3236_v47 = vunpack.c.l.s4 %v5231_v11 }
 0x321   : > { %v2484_v53 = vpop.permute.xlu0 %2483 }
 0x323   : > { %v4988_v62 = vpop.permute.xlu1 %4987 }
 0x324   : > { %v4990_v13 = vunpack.i.h.bf16 %v4988_v62  ;;  %v4989_v57 = vunpack.i.l.bf16 %v4988_v62 }
 0x326   : > { %v2493_v23 = vsel %vm732_vm5, %v4985_v31, %v4989_v57  ;;  %v2494_v24 = vsel %vm732_vm5, %v4989_v57, %v4990_v13  ;;  %v2495_v27 = vsel %vm732_vm5, %v4990_v13, %v2484_v53 }
 0x327   : > { %v2507_v59 = vmax.f32 %v2452_v54, %v2493_v23  ;;  %v2508_v16 = vmax.f32 %v2453_v6, %v2494_v24  ;;  %v2509_v63 = vmax.f32 %v2454_v10, %v2495_v27  ;;  %v3237_v54 = vunpack.c.0.s8 %v3236_v47 }
 0x329   : > { %v6104_v36 = vpack.c.bf16 %v2507_v59, %v2506_v9  ;;  %v6106_v15 = vpack.c.bf16 %v2509_v63, %v2508_v16  ;;  %v6206_v44 = vsub.s32 %v3237_v54, %v5347_v4 }
 0x32b   : > { %2542 = vst [vmem:[#allocation3] sm:$0xff] %v6104_v36  ;;  %2543 = vst [vmem:[#allocation3 + $0x8] sm:$0xff] %v6106_v15  ;;  %2560 = vrot.lane.b32.xlu0 %v6106_v15, %s6921_s23  ;;  %2558 = vrot.lane.b32.xlu1 %v6104_v36, %s6921_s23  ;;  %v6209_v18 = vrot.slane %v3234_v8, %v6206_v44 }
 0x32d   : > { %4674 = vmatprep.mubr.msk.bf16.mxu0 %vm3575_vm2, %v6209_v18  ;;  %4676 = vmatprep.mubr.msk.bf16.mxu1 %vm3575_vm2, %v6209_v18 }
 0x32f   : > { %2586 = vrot.lane.b32.xlu0 %v6106_v15, %s6924_s15  ;;  %2584 = vrot.lane.b32.xlu1 %v6104_v36, %s6924_s15 }
 0x330   : > { %v2490_v32 = vpop.permute.xlu0 %2489 }
 0x332   : > { %v6118_v19 = vld [vmem:[#allocation3 + $0x4] sm:$0xff] }
 0x333   : > { %v4993_v34 = vpop.permute.xlu1 %4992  ;;  %2612 = vrot.lane.b32.xlu0 %v6106_v15, %s5227_s12  ;;  %2610 = vrot.lane.b32.xlu1 %v6104_v36, %s5227_s12 }
 0x334   : > { %v4995_v55 = vunpack.i.h.bf16 %v4993_v34  ;;  %v4994_v12 = vunpack.i.l.bf16 %v4993_v34 }
 0x336   : > { %v2496_v56 = vsel %vm732_vm5, %v2484_v53, %v4994_v12  ;;  %v2497_v21 = vsel %vm732_vm5, %v4994_v12, %v4995_v55  ;;  %v2498_v46 = vsel %vm732_vm5, %v4995_v55, %v2490_v32  ;;  %vm2647_vm5 = vcmask 982016  }
 0x337   : > { %v2510_v33 = vmax.f32 %v2455_v25, %v2496_v56  ;;  %v2511_v20 = vmax.f32 %v2456_v7, %v2497_v21  ;;  %v2512_v30 = vmax.f32 %v2457_v3, %v2498_v46  ;;  %2639 = vrot.lane.b32.xlu0 %v6106_v15, %s5228_s30  ;;  %2637 = vrot.lane.b32.xlu1 %v6104_v36, %s5228_s30 }
 0x339   : > { %v6131_v14 = vpack.c.bf16 %v2511_v20, %v2510_v33  ;;  %v4740_v60 = vpack.c.bf16 %v2512_v30, %v2512_v30 }
 0x33b   : > { %2544 = vst [vmem:[#allocation3 + $0x10] sm:$0xff] %v6131_v14  ;;  %2545 = vst [vmem:[#allocation3 + $0x18] sm:$0xf] %v4740_v60  ;;  %2666 = vrot.lane.b32.xlu0 %v6106_v15, %s6912_s14  ;;  %2664 = vrot.lane.b32.xlu1 %v6104_v36, %s6912_s14 }
 0x33f   : > { %2692 = vrot.lane.b32.xlu0 %v6106_v15, %s6914_s13  ;;  %2690 = vrot.lane.b32.xlu1 %v6104_v36, %s6914_s13 }
 0x342   : > { %v3032_v35 = vld [vmem:[#allocation3 + $0x18] sm:$0xf]  ;;  %v2548_v2 = vld [vmem:[#allocation3 + $0x10] sm:$0xf]  ;;  %v2792_v5 = vld [vmem:[#allocation3 + $0x14] sm:$0xf] }
 0x343   : > { %3035 = vst [vmem:[#allocation6 + $0x1a0] sm:$0xf] %v3032_v35  ;;  %2718 = vrot.lane.b32.xlu0 %v6106_v15, %s6916_s18  ;;  %2716 = vrot.lane.b32.xlu1 %v6104_v36, %s6916_s18  ;;  %v6146_v37 = vld [vmem:[#allocation3 + $0xc] sm:$0xff]  ;;  %2551 = vst [vmem:[#allocation6 + $0x10] sm:$0xf] %v2548_v2  ;;  %v2798_v51 = vld [vmem:[#allocation3 + $0x14] sm:$0xff] }
 0x344   : > { %v6148_v49 = vld [vmem:[#allocation3 + $0x10] sm:$0xff]  ;;  %2795 = vst [vmem:[#allocation6 + $0xd8] sm:$0xf] %v2792_v5  ;;  %v3064_v28 = vld [vmem:[#allocation3 + $0x18] sm:$0xff]  ;;  %v3216_v2 = vld [vmem:[#allocation7] sm:$0x1] }
 0x345   : > { %3034 = vst [vmem:[#allocation6 + $0x198] sm:$0xff] %v6148_v49  ;;  %v2797_v38 = vld [vmem:[#allocation3 + $0xc] sm:$0xff] }
 0x347   : > { %2744 = vrot.lane.b32.xlu0 %v6106_v15, %s5229_s26  ;;  %2742 = vrot.lane.b32.xlu1 %v6104_v36, %s5229_s26 }
 0x34b   : > { %2771 = vrot.lane.b32.xlu0 %v6106_v15, %s5230_s16  ;;  %2769 = vrot.lane.b32.xlu1 %v6104_v36, %s5230_s16 }
 0x34f   : > { %2804 = vrot.lane.b32.xlu0 %v2797_v38, %s6921_s23  ;;  %2802 = vrot.lane.b32.xlu1 %v6118_v19, %s6921_s23 }
 0x353   : > { %2830 = vrot.lane.b32.xlu0 %v2797_v38, %s6924_s15  ;;  %2828 = vrot.lane.b32.xlu1 %v6118_v19, %s6924_s15 }
 0x357   : > { %2856 = vrot.lane.b32.xlu0 %v2797_v38, %s5227_s12  ;;  %2854 = vrot.lane.b32.xlu1 %v6118_v19, %s5227_s12 }
 0x35b   : > { %2882 = vrot.lane.b32.xlu0 %v2797_v38, %s5228_s30  ;;  %2880 = vrot.lane.b32.xlu1 %v6118_v19, %s5228_s30 }
 0x35f   : > { %2908 = vrot.lane.b32.xlu0 %v2797_v38, %s6912_s14  ;;  %2906 = vrot.lane.b32.xlu1 %v6118_v19, %s6912_s14 }
 0x363   : > { %2934 = vrot.lane.b32.xlu0 %v2797_v38, %s6914_s13  ;;  %2932 = vrot.lane.b32.xlu1 %v6118_v19, %s6914_s13 }
 0x367   : > { %2960 = vrot.lane.b32.xlu0 %v2797_v38, %s6916_s18  ;;  %2958 = vrot.lane.b32.xlu1 %v6118_v19, %s6916_s18 }
 0x36b   : > { %2986 = vrot.lane.b32.xlu0 %v2797_v38, %s5229_s26  ;;  %2984 = vrot.lane.b32.xlu1 %v6118_v19, %s5229_s26 }
 0x36f   : > { %3012 = vrot.lane.b32.xlu0 %v2797_v38, %s5230_s16  ;;  %3010 = vrot.lane.b32.xlu1 %v6118_v19, %s5230_s16 }
 0x373   : > { %3044 = vrot.lane.b32.xlu0 %v6131_v14, %s6921_s23  ;;  %3042 = vrot.lane.b32.xlu1 %v6106_v15, %s6921_s23 }
 0x377   : > { %3070 = vrot.lane.b32.xlu0 %v6131_v14, %s6924_s15  ;;  %3068 = vrot.lane.b32.xlu1 %v6106_v15, %s6924_s15 }
 0x37b   : > { %3096 = vrot.lane.b32.xlu0 %v6131_v14, %s5227_s12  ;;  %3094 = vrot.lane.b32.xlu1 %v6106_v15, %s5227_s12 }
 0x37f   : > { %3120 = vrot.lane.b32.xlu0 %v6106_v15, %s5228_s30  ;;  %2562 = vrot.lane.b32.xlu1 %v6131_v14, %s6921_s23 }
 0x383   : > { %2588 = vrot.lane.b32.xlu0 %v6131_v14, %s6924_s15  ;;  %3122 = vrot.lane.b32.xlu1 %v6131_v14, %s5228_s30 }
 0x387   : > { %2641 = vrot.lane.b32.xlu0 %v6131_v14, %s5228_s30  ;;  %2614 = vrot.lane.b32.xlu1 %v6131_v14, %s5227_s12 }
 0x38b   : > { %2694 = vrot.lane.b32.xlu0 %v6131_v14, %s6914_s13  ;;  %2668 = vrot.lane.b32.xlu1 %v6131_v14, %s6912_s14 }
 0x38f   : > { %2746 = vrot.lane.b32.xlu0 %v6131_v14, %s5229_s26  ;;  %2720 = vrot.lane.b32.xlu1 %v6131_v14, %s6916_s18 }
 0x393   : > { %2806 = vrot.lane.b32.xlu0 %v2798_v51, %s6921_s23  ;;  %2773 = vrot.lane.b32.xlu1 %v6131_v14, %s5230_s16 }
 0x397   : > { %2858 = vrot.lane.b32.xlu0 %v2798_v51, %s5227_s12  ;;  %2832 = vrot.lane.b32.xlu1 %v2798_v51, %s6924_s15 }
 0x39b   : > { %2910 = vrot.lane.b32.xlu0 %v2798_v51, %s6912_s14  ;;  %2884 = vrot.lane.b32.xlu1 %v2798_v51, %s5228_s30 }
 0x39d   : > { %v6242_v45 = vpop.permute.xlu0 %2560  ;;  %v2559_v39 = vpop.permute.xlu1 %2558 }
 0x39e   : > { %v2565_v22 = vrot.slane %v6242_v45, 4  ;;  %v2564_v6 = vrot.slane %v2559_v39, 4 }
 0x39f   : > { %2962 = vrot.lane.b32.xlu0 %v2798_v51, %s6916_s18  ;;  %2936 = vrot.lane.b32.xlu1 %v2798_v51, %s6914_s13  ;;  %s4734_s13 = sshll.u32 %s5317_s4, 4 }
 0x3a0   : > { %v2567_v10 = vsel %vm482_vm0, %v2564_v6, %v2565_v22 }
 0x3a1   : > { %v2568_v25 = vsel %vm546_vm1, %v2559_v39, %v2567_v10  ;;  %v6251_v0 = vpop.permute.xlu0 %2586  ;;  %v2585_v40 = vpop.permute.xlu1 %2584 }
 0x3a2   : > { %v2591_v48 = vrot.slane %v6251_v0, 4  ;;  %v2590_v29 = vrot.slane %v2585_v40, 4  ;;  %v4608_v41 = vcombine.low %v6104_v36, %v2568_v25  ;;  %v4609_v17 = vcombine.high %v6104_v36, %v2568_v25 }
 0x3a3   : > { %3014 = vrot.lane.b32.xlu0 %v2798_v51, %s5230_s16  ;;  %2988 = vrot.lane.b32.xlu1 %v2798_v51, %s5229_s26  ;;  %s4467_s26 = scalar_lea.sflag [#allocation9], %s379_s17 }
 0x3a4   : > { %v2593_v50 = vsel %vm482_vm0, %v2590_v29, %v2591_v48  ;;  %3595 = vmatprep.subr.bf16.mxu0 %v4609_v17 }
 0x3a5   : > { %v2594_v7 = vsel %vm670_vm3, %v2585_v40, %v2593_v50  ;;  %v6262_v3 = vpop.permute.xlu0 %2612  ;;  %v2611_v52 = vpop.permute.xlu1 %2610  ;;  %3596 = vmatpush1.bf16.msra.mxu0 %v4608_v41 }
 0x3a6   : > { %v2617_v43 = vrot.slane %v6262_v3, 4  ;;  %v2616_v31 = vrot.slane %v2611_v52, 4 }
 0x3a7   : > { %3072 = vrot.lane.b32.xlu0 %v3064_v28, %s6924_s15  ;;  %3046 = vrot.lane.b32.xlu1 %v3064_v28, %s6921_s23  ;;  %s380_s15 = scalar_lea.vmem [#allocation8], %s379_s17 }
 0x3a8   : > { %v2619_v62 = vsel %vm482_vm0, %v2616_v31, %v2617_v43  ;;  %s4479_s25 = sshll.u32 %s380_s15, 4  ;;  %s6804_s25 = int_to_ptr.vmem [resolvable:$true] %s4479_s25 }
 0x3a9   : > { %v2621_v42 = vsel %vm2620_vm4, %v2611_v52, %v2619_v62  ;;  %v6271_v13 = vpop.permute.xlu0 %2639  ;;  %v2638_v57 = vpop.permute.xlu1 %2637  ;;  %s5140_s4 = scalar_lea.vmem %s6804_s25, 16 }
 0x3aa   : > { %v2644_v53 = vrot.slane %v6271_v13, 4  ;;  %v2643_v23 = vrot.slane %v2638_v57, 4  ;;  %v4613_v24 = vcombine.low %v2594_v7, %v2621_v42  ;;  %v4614_v27 = vcombine.high %v2594_v7, %v2621_v42  ;;  %p5141_p11 = scmp.ne.s32.totalorder %s6804_s25, %s5140_s4 }
 0x3ab   : > { %3124 = vrot.lane.b32.xlu0 %v3064_v28, %s5228_s30  ;;  %3098 = vrot.lane.b32.xlu1 %v3064_v28, %s5227_s12  ;;  %s6802_s30 = scalar_lea.hbm %s6855_s11, %s4734_s13 }
 0x3ac   : > { %v2646_v9 = vsel %vm482_vm0, %v2643_v23, %v2644_v53  ;;  %3597 = vmatprep.subr.bf16.mxu0 %v4614_v27  ;;  %p5142_p12 = pnand %p5141_p11, %p5334_p5 }
 0x3ad   : > { %v2648_v59 = vsel %vm2647_vm5, %v2638_v57, %v2646_v9  ;;  %v6280_v16 = vpop.permute.xlu0 %2666  ;;  %v2665_v63 = vpop.permute.xlu1 %2664  ;;  %3598 = vmatpush1.bf16.msra.mxu0 %v4613_v24 }
 0x3ae   : > { %v2671_v36 = vrot.slane %v6280_v16, 4  ;;  %v2670_v34 = vrot.slane %v2665_v63, 4  ;;  %p5143_p13 = pneg %p5142_p12 }
 0x3af   : > { %3219 = vperm.xlu1 %4996, %v3216_v2  }
 0x3b0   : > { %v2673_v55 = vsel %vm482_vm0, %v2670_v34, %v2671_v36 }
 0x3b1   : > { %v2674_v12 = vsel %vm1042_vm10, %v2665_v63, %v2673_v55  ;;  %v6287_v32 = vpop.permute.xlu0 %2692  ;;  %v2691_v56 = vpop.permute.xlu1 %2690 }
 0x3b2   : > { %v2697_v21 = vrot.slane %v6287_v32, 4  ;;  %v2696_v46 = vrot.slane %v2691_v56, 4  ;;  %v4618_v33 = vcombine.low %v2648_v59, %v2674_v12  ;;  %v4619_v20 = vcombine.high %v2648_v59, %v2674_v12 }
 0x3b4   : > { %v2699_v30 = vsel %vm482_vm0, %v2696_v46, %v2697_v21  ;;  %3599 = vmatprep.subr.bf16.mxu0 %v4619_v20 }
 0x3b5   : > { %v2700_v14 = vsel %vm1166_vm12, %v2691_v56, %v2699_v30  ;;  %v6294_v60 = vpop.permute.xlu0 %2718  ;;  %v2717_v35 = vpop.permute.xlu1 %2716  ;;  %3600 = vmatpush1.bf16.msra.mxu0 %v4618_v33 }
 0x3b6   : > { %v2723_v5 = vrot.slane %v6294_v60, 4  ;;  %v2722_v38 = vrot.slane %v2717_v35, 4 }
 0x3b8   : > { %v2725_v11 = vsel %vm482_vm0, %v2722_v38, %v2723_v5 }
 0x3b9   : > { %v2726_v47 = vsel %vm6941_vm13, %v2717_v35, %v2725_v11  ;;  %v6301_v54 = vpop.permute.xlu0 %2744  ;;  %v2743_v8 = vpop.permute.xlu1 %2742 }
 0x3ba   : > { %v2749_v51 = vrot.slane %v6301_v54, 4  ;;  %v2748_v39 = vrot.slane %v2743_v8, 4  ;;  %v4623_v6 = vcombine.low %v2700_v14, %v2726_v47  ;;  %v4624_v10 = vcombine.high %v2700_v14, %v2726_v47 }
 0x3bc   : > { %v2751_v25 = vsel %vm482_vm0, %v2748_v39, %v2749_v51  ;;  %3601 = vmatprep.subr.bf16.mxu0 %v4624_v10 }
 0x3bd   : > { %v2753_v40 = vsel %vm2752_vm7, %v2743_v8, %v2751_v25  ;;  %v6308_v29 = vpop.permute.xlu0 %2771  ;;  %v2770_v41 = vpop.permute.xlu1 %2769  ;;  %3602 = vmatpush1.bf16.msra.mxu0 %v4623_v6 }
 0x3be   : > { %v2776_v17 = vrot.slane %v6308_v29, 4  ;;  %v2775_v50 = vrot.slane %v2770_v41, 4 }
 0x3c0   : > { %v2778_v7 = vsel %vm482_vm0, %v2775_v50, %v2776_v17 }
 0x3c1   : > { %v2780_v52 = vsel %vm2779_vm8, %v2770_v41, %v2778_v7  ;;  %v6315_v31 = vpop.permute.xlu0 %2804  ;;  %v2803_v28 = vpop.permute.xlu1 %2802 }
 0x3c2   : > { %v2809_v62 = vrot.slane %v6315_v31, 4  ;;  %v2808_v42 = vrot.slane %v2803_v28, 4  ;;  %v4628_v57 = vcombine.low %v2753_v40, %v2780_v52  ;;  %v4629_v23 = vcombine.high %v2753_v40, %v2780_v52 }
 0x3c4   : > { %v2811_v24 = vsel %vm482_vm0, %v2808_v42, %v2809_v62  ;;  %3603 = vmatprep.subr.bf16.mxu0 %v4629_v23 }
 0x3c5   : > { %v2812_v27 = vsel %vm546_vm1, %v2803_v28, %v2811_v24  ;;  %v6322_v9 = vpop.permute.xlu0 %2830  ;;  %v2829_v59 = vpop.permute.xlu1 %2828  ;;  %3604 = vmatpush1.bf16.msra.mxu0 %v4628_v57 }
 0x3c6   : > { %v2835_v63 = vrot.slane %v6322_v9, 4  ;;  %v2834_v34 = vrot.slane %v2829_v59, 4  ;;  %v4633_v55 = vcombine.low %v6118_v19, %v2812_v27  ;;  %v4634_v12 = vcombine.high %v6118_v19, %v2812_v27 }
 0x3c8   : > { %v2837_v56 = vsel %vm482_vm0, %v2834_v34, %v2835_v63  ;;  %3605 = vmatprep.subr.bf16.mxu0 %v4634_v12 }
 0x3c9   : > { %v2838_v46 = vsel %vm670_vm3, %v2829_v59, %v2837_v56  ;;  %v6331_v33 = vpop.permute.xlu0 %2856  ;;  %v2855_v20 = vpop.permute.xlu1 %2854  ;;  %3606 = vmatpush1.bf16.msra.mxu0 %v4633_v55 }
 0x3ca   : > { %v2861_v30 = vrot.slane %v6331_v33, 4  ;;  %v2860_v14 = vrot.slane %v2855_v20, 4 }
 0x3cc   : > { %v2863_v35 = vsel %vm482_vm0, %v2860_v14, %v2861_v30 }
 0x3cd   : > { %v2864_v19 = vsel %vm2620_vm4, %v2855_v20, %v2863_v35  ;;  %v6338_v2 = vpop.permute.xlu0 %2882  ;;  %v2881_v38 = vpop.permute.xlu1 %2880 }
 0x3ce   : > { %v2887_v11 = vrot.slane %v6338_v2, 4  ;;  %v2886_v47 = vrot.slane %v2881_v38, 4  ;;  %v4638_v8 = vcombine.low %v2838_v46, %v2864_v19  ;;  %v4639_v39 = vcombine.high %v2838_v46, %v2864_v19 }
 0x3d0   : > { %v2889_v6 = vsel %vm482_vm0, %v2886_v47, %v2887_v11  ;;  %3607 = vmatprep.subr.bf16.mxu0 %v4639_v39 }
 0x3d1   : > { %v2890_v10 = vsel %vm2647_vm5, %v2881_v38, %v2889_v6  ;;  %v6345_v25 = vpop.permute.xlu0 %2908  ;;  %v2907_v40 = vpop.permute.xlu1 %2906  ;;  %3608 = vmatpush1.bf16.msra.mxu0 %v4638_v8 }
 0x3d2   : > { %v2913_v41 = vrot.slane %v6345_v25, 4  ;;  %v2912_v50 = vrot.slane %v2907_v40, 4 }
 0x3d4   : > { %v2915_v7 = vsel %vm482_vm0, %v2912_v50, %v2913_v41 }
 0x3d5   : > { %v2916_v52 = vsel %vm1042_vm10, %v2907_v40, %v2915_v7  ;;  %v6352_v28 = vpop.permute.xlu0 %2934  ;;  %v2933_v42 = vpop.permute.xlu1 %2932 }
 0x3d6   : > { %v2939_v57 = vrot.slane %v6352_v28, 4  ;;  %v2938_v23 = vrot.slane %v2933_v42, 4  ;;  %v4643_v24 = vcombine.low %v2890_v10, %v2916_v52  ;;  %v4644_v27 = vcombine.high %v2890_v10, %v2916_v52 }
 0x3d8   : > { %v2941_v59 = vsel %vm482_vm0, %v2938_v23, %v2939_v57  ;;  %3609 = vmatprep.subr.bf16.mxu0 %v4644_v27 }
 0x3d9   : > { %v2942_v34 = vsel %vm1166_vm12, %v2933_v42, %v2941_v59  ;;  %v6359_v55 = vpop.permute.xlu0 %2960  ;;  %v2959_v12 = vpop.permute.xlu1 %2958  ;;  %3610 = vmatpush1.bf16.msra.mxu0 %v4643_v24 }
 0x3da   : > { %v2965_v56 = vrot.slane %v6359_v55, 4  ;;  %v2964_v46 = vrot.slane %v2959_v12, 4 }
 0x3dc   : > { %v2967_v20 = vsel %vm482_vm0, %v2964_v46, %v2965_v56 }
 0x3dd   : > { %v2968_v14 = vsel %vm6942_vm9, %v2959_v12, %v2967_v20  ;;  %v6366_v35 = vpop.permute.xlu0 %2986  ;;  %v2985_v19 = vpop.permute.xlu1 %2984 }
 0x3de   : > { %v2991_v38 = vrot.slane %v6366_v35, 4  ;;  %v2990_v47 = vrot.slane %v2985_v19, 4  ;;  %v4648_v8 = vcombine.low %v2942_v34, %v2968_v14  ;;  %v4649_v39 = vcombine.high %v2942_v34, %v2968_v14 }
 0x3e0   : > { %v2993_v6 = vsel %vm482_vm0, %v2990_v47, %v2991_v38  ;;  %3611 = vmatprep.subr.bf16.mxu0 %v4649_v39 }
 0x3e1   : > { %v2994_v10 = vsel %vm2752_vm7, %v2985_v19, %v2993_v6  ;;  %v6373_v40 = vpop.permute.xlu0 %3012  ;;  %v3011_v50 = vpop.permute.xlu1 %3010  ;;  %3612 = vmatpush1.bf16.msra.mxu0 %v4648_v8 }
 0x3e2   : > { %v3017_v7 = vrot.slane %v6373_v40, 4  ;;  %v3016_v52 = vrot.slane %v3011_v50, 4 }
 0x3e4   : > { %v3019_v42 = vsel %vm482_vm0, %v3016_v52, %v3017_v7 }
 0x3e5   : > { %v3020_v23 = vsel %vm2779_vm8, %v3011_v50, %v3019_v42  ;;  %v6380_v24 = vpop.permute.xlu0 %3044  ;;  %v3043_v27 = vpop.permute.xlu1 %3042 }
 0x3e6   : > { %v3049_v59 = vrot.slane %v6380_v24, 4  ;;  %v3048_v34 = vrot.slane %v3043_v27, 4  ;;  %v4653_v12 = vcombine.low %v2994_v10, %v3020_v23  ;;  %v4654_v46 = vcombine.high %v2994_v10, %v3020_v23 }
 0x3e8   : > { %v3051_v20 = vsel %vm482_vm0, %v3048_v34, %v3049_v59  ;;  %3613 = vmatprep.subr.bf16.mxu0 %v4654_v46 }
 0x3e9   : > { %v3052_v14 = vsel %vm546_vm1, %v3043_v27, %v3051_v20  ;;  %v6387_v19 = vpop.permute.xlu0 %3070  ;;  %v3069_v47 = vpop.permute.xlu1 %3068  ;;  %3614 = vmatpush1.bf16.msra.mxu0 %v4653_v12 }
 0x3ea   : > { %v3075_v8 = vrot.slane %v6387_v19, 4  ;;  %v3074_v39 = vrot.slane %v3069_v47, 4  ;;  %v4658_v6 = vcombine.low %v6106_v15, %v3052_v14  ;;  %v4659_v50 = vcombine.high %v6106_v15, %v3052_v14 }
 0x3ec   : > { %v3077_v10 = vsel %vm482_vm0, %v3074_v39, %v3075_v8  ;;  %3615 = vmatprep.subr.bf16.mxu0 %v4659_v50 }
 0x3ed   : > { %v3078_v52 = vsel %vm670_vm3, %v3069_v47, %v3077_v10  ;;  %v6396_v42 = vpop.permute.xlu0 %3096  ;;  %v3095_v23 = vpop.permute.xlu1 %3094  ;;  %3616 = vmatpush1.bf16.msra.mxu0 %v4658_v6 }
 0x3ee   : > { %v6902_v27 = vrot.slane %v6396_v42, 4  ;;  %v3100_v34 = vrot.slane %v3095_v23, 4 }
 0x3f0   : > { %v3103_v12 = vsel %vm482_vm0, %v3100_v34, %v6902_v27 }
 0x3f1   : > { %v3104_v46 = vsel %vm2620_vm4, %v3095_v23, %v3103_v12  ;;  %v3121_v20 = vpop.permute.xlu0 %3120  ;;  %v2563_v14 = vpop.permute.xlu1 %2562 }
 0x3f2   : > { %v2566_v1 = vrot.slane %v2563_v14, 4  ;;  %v4663_v39 = vcombine.low %v3078_v52, %v3104_v46  ;;  %v4664_v50 = vcombine.high %v3078_v52, %v3104_v46  ;;  %v3126_v10 = vrot.slane %v3121_v20, 4 }
 0x3f4   : > { %v2569_v47 = vsel %vm482_vm0, %v2565_v22, %v2566_v1  ;;  %v2571_v6 = vsel %vm546_vm1, %v2563_v14, %v2566_v1  ;;  %3617 = vmatprep.subr.bf16.mxu0 %v4664_v50 }
 0x3f5   : > { %v2570_v61 = vsel %vm546_vm1, %v6242_v45, %v2569_v47  ;;  %2577 = vst [vmem:[#allocation6 + $0x24] sm:$0xf] %v2571_v6  ;;  %v2589_v34 = vpop.permute.xlu0 %2588  ;;  %v6409_v27 = vpop.permute.xlu1 %3122  ;;  %3618 = vmatpush1.bf16.msra.mxu0 %v4663_v39 }
 0x3f6   : > { %v2592_v23 = vrot.slane %v2589_v34, 4  ;;  %v3127_v12 = vrot.slane %v6409_v27, 4  ;;  %v4610_v52 = vcombine.low %v6106_v15, %v2570_v61  ;;  %v4611_v46 = vcombine.high %v6106_v15, %v2570_v61 }
 0x3f8   : > { %v2595_v1 = vsel %vm482_vm0, %v2591_v48, %v2592_v23  ;;  %v2597_v22 = vsel %vm670_vm3, %v2589_v34, %v2592_v23  ;;  %v3129_v45 = vsel %vm482_vm0, %v3126_v10, %v3127_v12  ;;  %3636 = vmatprep.subr.bf16.mxu1 %v4611_v46 }
 0x3f9   : > { %v2596_v14 = vsel %vm670_vm3, %v6251_v0, %v2595_v1  ;;  %2603 = vst [vmem:[#allocation6 + $0x38] sm:$0xf] %v2597_v22  ;;  %v3130_v39 = vsel %vm2647_vm5, %v3121_v20, %v3129_v45  ;;  %v2642_v50 = vpop.permute.xlu0 %2641  ;;  %v2615_v47 = vpop.permute.xlu1 %2614  ;;  %3637 = vmatpush1.bf16.msra.mxu1 %v4610_v52  ;;  %v6440_v22 = vrot.slane %v6201_v58, %v6206_v44 }
 0x3fa   : > { %v2645_v61 = vrot.slane %v2642_v50, 4  ;;  %v2618_v15 = vrot.slane %v2615_v47, 4  ;;  %v4669_v6 = vcombine.high %v3130_v39, %v3130_v39  ;;  %v4668_v48 = vcombine.low %v3130_v39, %v3130_v39 }
 0x3fc   : > { %v2649_v34 = vsel %vm482_vm0, %v2644_v53, %v2645_v61  ;;  %v2651_v10 = vsel %vm2647_vm5, %v2642_v50, %v2645_v61  ;;  %v2622_v0 = vsel %vm482_vm0, %v2617_v43, %v2618_v15  ;;  %v2624_v23 = vsel %vm2620_vm4, %v2615_v47, %v2618_v15  ;;  %4673 = vmatprep.subr.msk.bf16.mxu0 %vm482_vm0, %v4669_v6  ;;  %v5072_v61 = vld [vmem:[#allocation6 + $0x10] ss:$20 sps:$4 sm:$0xff]  }
 0x3fd   : > { %v2650_v20 = vsel %vm2647_vm5, %v6271_v13, %v2649_v34  ;;  %2657 = vst [vmem:[#allocation6 + $0x60] sm:$0xf] %v2651_v10  ;;  %v2623_v52 = vsel %vm2620_vm4, %v6262_v3, %v2622_v0  ;;  %2630 = vst [vmem:[#allocation6 + $0x4c] sm:$0xf] %v2624_v23  ;;  %v2695_v46 = vpop.permute.xlu0 %2694  ;;  %v2669_v53 = vpop.permute.xlu1 %2668  ;;  %v3581_v1 = vsel %vm482_vm0, %v4668_v48, 0 }
 0x3fe   : > { %v2698_v43 = vrot.slane %v2695_v46, 4  ;;  %v2672_v45 = vrot.slane %v2669_v53, 4  ;;  %3620 = vmatpush1.bf16.msra.mxu0 %v3581_v1  ;;  %v4615_v39 = vcombine.low %v2596_v14, %v2623_v52  ;;  %v4616_v50 = vcombine.high %v2596_v14, %v2623_v52 }
 0x3ff   : > { %3677 = vmatprep.subr.bf16.mxu0 %v5224_v26 }
 0x400   : > { %v2701_v3 = vsel %vm482_vm0, %v2697_v21, %v2698_v43  ;;  %v2703_v13 = vsel %vm1166_vm12, %v2695_v46, %v2698_v43  ;;  %v2675_v47 = vsel %vm482_vm0, %v2671_v36, %v2672_v45  ;;  %v2677_v58 = vsel %vm1042_vm10, %v2669_v53, %v2672_v45  ;;  %3638 = vmatprep.subr.bf16.mxu1 %v4616_v50 }
 0x401   : > { %v2702_v15 = vsel %vm1166_vm12, %v6287_v32, %v2701_v3  ;;  %2709 = vst [vmem:[#allocation6 + $0x88] sm:$0xf] %v2703_v13  ;;  %v2676_v14 = vsel %vm1042_vm10, %v6280_v16, %v2675_v47  ;;  %2683 = vst [vmem:[#allocation6 + $0x74] sm:$0xf] %v2677_v58  ;;  %v2747_v6 = vpop.permute.xlu0 %2746  ;;  %v2721_v21 = vpop.permute.xlu1 %2720  ;;  %3628 = vmatmul.mubr.bf16.vlgmr.msra.gmra.mrb[8].mxu0 %v6440_v22  ;;  %3639 = vmatpush1.bf16.msra.mxu1 %v4615_v39 }
 0x402   : > { %v2750_v48 = vrot.slane %v2747_v6, 4  ;;  %v2724_v34 = vrot.slane %v2721_v21, 4  ;;  %3678 = vmatpush1.bf16.msra.mxu0 %v5072_v61  ;;  %v4620_v36 = vcombine.low %v2650_v20, %v2676_v14  ;;  %v4621_v10 = vcombine.high %v2650_v20, %v2676_v14  ;;  %4677 = vmatprep.mubr.msk.bf16.mxu0 %vm3575_vm2, %v6209_v18  ;;  %vm6945_vm2 = vmmov %vm6942_vm9 }
 0x403   : > { %3679 = vmatprep.subr.bf16.mxu0 %v5224_v26  ;;  %vm6946_vm13 = vmmov %vm6945_vm2 }
 0x404   : > { %v2754_v16 = vsel %vm482_vm0, %v2749_v51, %v2750_v48  ;;  %v2756_v32 = vsel %vm2752_vm7, %v2747_v6, %v2750_v48  ;;  %v2727_v0 = vsel %vm482_vm0, %v2723_v5, %v2724_v34  ;;  %v2729_v23 = vsel %vm6943_vm15, %v2721_v21, %v2724_v34  ;;  %3640 = vmatprep.subr.bf16.mxu1 %v4621_v10  ;;  %v5073_v52 = vld [vmem:[#allocation6 + $0x38] ss:$20 sps:$4 sm:$0xff]  }
 0x405   : > { %v2755_v20 = vsel %vm2752_vm7, %v6301_v54, %v2754_v16  ;;  %2762 = vst [vmem:[#allocation6 + $0xb0] sm:$0xf] %v2756_v32  ;;  %v2728_v18 = vsel %vm6944_vm11, %v6294_v60, %v2727_v0  ;;  %2735 = vst [vmem:[#allocation6 + $0x9c] sm:$0xf] %v2729_v23  ;;  %v2807_v46 = vpop.permute.xlu0 %2806  ;;  %v2774_v51 = vpop.permute.xlu1 %2773  ;;  %3641 = vmatpush1.bf16.msra.mxu1 %v4620_v36 }
 0x406   : > { %v2810_v53 = vrot.slane %v2807_v46, 4  ;;  %v2777_v1 = vrot.slane %v2774_v51, 4  ;;  %3680 = vmatpush1.bf16.msra.mxu0 %v5073_v52  ;;  %v4625_v43 = vcombine.low %v2702_v15, %v2728_v18  ;;  %v4626_v5 = vcombine.high %v2702_v15, %v2728_v18 }
 0x407   : > { %3681 = vmatprep.subr.bf16.mxu0 %v5224_v26 }
 0x408   : > { %v2813_v45 = vsel %vm482_vm0, %v2809_v62, %v2810_v53  ;;  %v2815_v54 = vsel %vm546_vm1, %v2807_v46, %v2810_v53  ;;  %v2781_v60 = vsel %vm482_vm0, %v2776_v17, %v2777_v1  ;;  %v2783_v39 = vsel %vm2779_vm8, %v2774_v51, %v2777_v1  ;;  %3642 = vmatprep.subr.bf16.mxu1 %v4626_v5  ;;  %v5074_v50 = vld [vmem:[#allocation6 + $0x60] ss:$20 sps:$4 sm:$0xff]  }
 0x409   : > { %v2814_v3 = vsel %vm546_vm1, %v6315_v31, %v2813_v45  ;;  %2821 = vst [vmem:[#allocation6 + $0xec] sm:$0xf] %v2815_v54  ;;  %v2782_v13 = vsel %vm2779_vm8, %v6308_v29, %v2781_v60  ;;  %2789 = vst [vmem:[#allocation6 + $0xc4] sm:$0xf] %v2783_v39  ;;  %v2859_v47 = vpop.permute.xlu0 %2858  ;;  %v2833_v62 = vpop.permute.xlu1 %2832  ;;  %3643 = vmatpush1.bf16.msra.mxu1 %v4625_v43 }
 0x40a   : > { %v2862_v58 = vrot.slane %v2859_v47, 4  ;;  %v2836_v61 = vrot.slane %v2833_v62, 4  ;;  %3682 = vmatpush1.bf16.msra.mxu0 %v5074_v50  ;;  %v4630_v15 = vcombine.low %v2755_v20, %v2782_v13  ;;  %v4631_v17 = vcombine.high %v2755_v20, %v2782_v13 }
 0x40b   : > { %3683 = vmatprep.subr.bf16.mxu0 %v5224_v26  ;;  %v4636_v14 = vcombine.high %v6146_v37, %v2814_v3 }
 0x40c   : > { %v2865_v31 = vsel %vm482_vm0, %v2861_v30, %v2862_v58  ;;  %v2867_v6 = vsel %vm2620_vm4, %v2859_v47, %v2862_v58  ;;  %v2839_v29 = vsel %vm482_vm0, %v2835_v63, %v2836_v61  ;;  %v2841_v21 = vsel %vm670_vm3, %v2833_v62, %v2836_v61  ;;  %3644 = vmatprep.subr.bf16.mxu1 %v4631_v17  ;;  %v5075_v48 = vld [vmem:[#allocation6 + $0x88] ss:$20 sps:$4 sm:$0xff]  }
 0x40d   : > { %v2866_v34 = vsel %vm2620_vm4, %v6331_v33, %v2865_v31  ;;  %2873 = vst [vmem:[#allocation6 + $0x114] sm:$0xf] %v2867_v6  ;;  %v2840_v36 = vsel %vm670_vm3, %v6322_v9, %v2839_v29  ;;  %2847 = vst [vmem:[#allocation6 + $0x100] sm:$0xf] %v2841_v21  ;;  %v2911_v10 = vpop.permute.xlu0 %2910  ;;  %v2885_v30 = vpop.permute.xlu1 %2884  ;;  %3645 = vmatpush1.bf16.msra.mxu1 %v4630_v15  ;;  %v4635_v63 = vcombine.low %v6146_v37, %v2814_v3 }
 0x40e   : > { %v2914_v16 = vrot.slane %v2911_v10, 4  ;;  %v2888_v32 = vrot.slane %v2885_v30, 4  ;;  %3684 = vmatpush1.bf16.msra.mxu0 %v5075_v48  ;;  %3646 = vmatprep.subr.bf16.mxu1 %v4636_v14  ;;  %v4641_v0 = vcombine.high %v2840_v36, %v2866_v34  ;;  %v4640_v1 = vcombine.low %v2840_v36, %v2866_v34 }
 0x40f   : > { %3685 = vmatprep.subr.bf16.mxu0 %v5224_v26 }
 0x410   : > { %v2917_v33 = vsel %vm482_vm0, %v2913_v41, %v2914_v16  ;;  %v2919_v23 = vsel %vm1042_vm10, %v2911_v10, %v2914_v16  ;;  %v2891_v9 = vsel %vm482_vm0, %v2887_v11, %v2888_v32  ;;  %v2893_v52 = vsel %vm2647_vm5, %v2885_v30, %v2888_v32  ;;  %v5076_v20 = vld [vmem:[#allocation6 + $0xb0] ss:$20 sps:$4 sm:$0xff]   ;;  %v5077_v45 = vld [vmem:[#allocation6 + $0xd8] ss:$20 sps:$4 sm:$0xff]  }
 0x411   : > { %v2918_v18 = vsel %vm1042_vm10, %v6345_v25, %v2917_v33  ;;  %2925 = vst [vmem:[#allocation6 + $0x13c] sm:$0xf] %v2919_v23  ;;  %v2892_v37 = vsel %vm2647_vm5, %v6338_v2, %v2891_v9  ;;  %2899 = vst [vmem:[#allocation6 + $0x128] sm:$0xf] %v2893_v52  ;;  %v2963_v46 = vpop.permute.xlu0 %2962  ;;  %v2937_v51 = vpop.permute.xlu1 %2936  ;;  %3647 = vmatpush1.bf16.msra.mxu1 %v4635_v63 }
 0x412   : > { %v2966_v41 = vrot.slane %v2963_v46, 4  ;;  %v2940_v53 = vrot.slane %v2937_v51, 4  ;;  %3686 = vmatpush1.bf16.msra.mxu0 %v5076_v20  ;;  %3648 = vmatprep.subr.bf16.mxu1 %v4641_v0  ;;  %v4646_v11 = vcombine.high %v2892_v37, %v2918_v18  ;;  %v4645_v13 = vcombine.low %v2892_v37, %v2918_v18 }
 0x413   : > { %3687 = vmatprep.subr.bf16.mxu0 %v5224_v26 }
 0x414   : > { %v2969_v25 = vsel %vm482_vm0, %v2965_v56, %v2966_v41  ;;  %v2971_v43 = vsel %vm6945_vm2, %v2963_v46, %v2966_v41  ;;  %v2943_v2 = vsel %vm482_vm0, %v2939_v57, %v2940_v53  ;;  %v2945_v5 = vsel %vm1166_vm12, %v2937_v51, %v2940_v53  ;;  %v5078_v58 = vld [vmem:[#allocation6 + $0x100] ss:$20 sps:$4 sm:$0xff]  }
 0x415   : > { %v2970_v54 = vsel %vm6946_vm13, %v6359_v55, %v2969_v25  ;;  %2977 = vst [vmem:[#allocation6 + $0x164] sm:$0xf] %v2971_v43  ;;  %v2944_v60 = vsel %vm1166_vm12, %v6352_v28, %v2943_v2  ;;  %2951 = vst [vmem:[#allocation6 + $0x150] sm:$0xf] %v2945_v5  ;;  %v3015_v39 = vpop.permute.xlu0 %3014  ;;  %v2989_v50 = vpop.permute.xlu1 %2988  ;;  %3649 = vmatpush1.bf16.msra.mxu1 %v4640_v1  ;;  %v6949_v25 = vlaneseq  ;;  %v3224_v43 = vsub.s32 0, %v5347_v4 }
 0x416   : > { %v3018_v56 = vrot.slane %v3015_v39, 4  ;;  %v2992_v3 = vrot.slane %v2989_v50, 4  ;;  %3688 = vmatpush1.bf16.msra.mxu0 %v5077_v45  ;;  %3650 = vmatprep.subr.bf16.mxu1 %v4646_v11  ;;  %v4651_v57 = vcombine.high %v2944_v60, %v2970_v54  ;;  %v4650_v6 = vcombine.low %v2944_v60, %v2970_v54 }
 0x417   : > { %3689 = vmatprep.subr.bf16.mxu0 %v5224_v26  ;;  %v6948_v11 = vmov 0.0   ;;  %vm3767_vm12 = vcmp.lt.s32.totalorder %v6949_v25, 640 }
 0x418   : > { %v3021_v55 = vsel %vm482_vm0, %v3017_v7, %v3018_v56  ;;  %v3023_v47 = vsel %vm2779_vm8, %v3015_v39, %v3018_v56  ;;  %v2995_v28 = vsel %vm482_vm0, %v2991_v38, %v2992_v3  ;;  %v2997_v62 = vsel %vm2752_vm7, %v2989_v50, %v2992_v3  ;;  %v5079_v48 = vld [vmem:[#allocation6 + $0x128] ss:$20 sps:$4 sm:$0xff]  }
 0x419   : > { %v3022_v61 = vsel %vm2779_vm8, %v6373_v40, %v3021_v55  ;;  %3029 = vst [vmem:[#allocation6 + $0x18c] sm:$0xf] %v3023_v47  ;;  %v2996_v15 = vsel %vm2752_vm7, %v6366_v35, %v2995_v28  ;;  %3003 = vst [vmem:[#allocation6 + $0x178] sm:$0xf] %v2997_v62  ;;  %v3073_v17 = vpop.permute.xlu0 %3072  ;;  %v3047_v14 = vpop.permute.xlu1 %3046  ;;  %3651 = vmatpush1.bf16.msra.mxu1 %v4645_v13 }
 0x41a   : > { %v3076_v7 = vrot.slane %v3073_v17, 4  ;;  %v3050_v31 = vrot.slane %v3047_v14, 4  ;;  %3690 = vmatpush1.bf16.msra.mxu0 %v5078_v58  ;;  %3652 = vmatprep.subr.bf16.mxu1 %v4651_v57  ;;  %v4656_v38 = vcombine.high %v2996_v15, %v3022_v61  ;;  %v4655_v32 = vcombine.low %v2996_v15, %v3022_v61 }
 0x41b   : > { %3691 = vmatprep.subr.bf16.mxu0 %v5224_v26 }
 0x41c   : > { %v3079_v40 = vsel %vm482_vm0, %v3075_v8, %v3076_v7  ;;  %v3081_v29 = vsel %vm670_vm3, %v3073_v17, %v3076_v7  ;;  %v3053_v35 = vsel %vm482_vm0, %v3049_v59, %v3050_v31  ;;  %v3055_v21 = vsel %vm546_vm1, %v3047_v14, %v3050_v31  ;;  %v5080_v23 = vld [vmem:[#allocation6 + $0x150] ss:$20 sps:$4 sm:$0xff]  }
 0x41d   : > { %v3080_v34 = vsel %vm670_vm3, %v6387_v19, %v3079_v40  ;;  %3087 = vst [vmem:[#allocation6 + $0x1c8] sm:$0xf] %v3081_v29  ;;  %v3054_v36 = vsel %vm546_vm1, %v6380_v24, %v3053_v35  ;;  %3061 = vst [vmem:[#allocation6 + $0x1b4] sm:$0xf] %v3055_v21  ;;  %v3125_v10 = vpop.permute.xlu0 %3124  ;;  %v3099_v30 = vpop.permute.xlu1 %3098  ;;  %3653 = vmatpush1.bf16.msra.mxu1 %v4650_v6  ;;  %v6947_v24 = vrot.slane %v6396_v42, 4  ;;  %vm391_vm3 = vcmp.lt.s32.totalorder %v6949_v25, 128 }
 0x41e   : > { %v3128_v8 = vrot.slane %v3125_v10, 4  ;;  %v3102_v16 = vrot.slane %v3099_v30, 4  ;;  %3692 = vmatpush1.bf16.msra.mxu0 %v5079_v48  ;;  %3654 = vmatprep.subr.bf16.mxu1 %v4656_v38  ;;  %v4661_v59 = vcombine.high %v6148_v49, %v3054_v36  ;;  %393 = vst.msk [vmem:[#allocation4 + $0x5] sm:$0x1] %vm391_vm3, %v6948_v11  ;;  %v5109_v25 = vld [vmem:[%s6849_s5 + $0xc0] sm:$0xff]  }
 0x41f   : > { %3693 = vmatprep.subr.bf16.mxu0 %v5224_v26 }
 0x420   : > { %v3131_v19 = vsel %vm482_vm0, %v3127_v12, %v3128_v8  ;;  %v3133_v63 = vsel %vm2647_vm5, %v3125_v10, %v3128_v8  ;;  %v3105_v0 = vsel %vm482_vm0, %v6947_v24, %v3102_v16  ;;  %v3107_v33 = vsel %vm2620_vm4, %v3099_v30, %v3102_v16  ;;  %v5139_v12 = vld [vmem:[#allocation6 + $0x198] sm:$0xff]  ;;  %v5085_v10 = vld [vmem:[%s6849_s5 + $0x40] sm:$0xff]  }
 0x421   : > { %v3132_v9 = vsel %vm2647_vm5, %v6409_v27, %v3131_v19  ;;  %3139 = vst [vmem:[#allocation6 + $0x1f0] sm:$0xf] %v3133_v63  ;;  %v3106_v49 = vsel %vm2620_vm4, %v6396_v42, %v3105_v0  ;;  %3113 = vst [vmem:[#allocation6 + $0x1dc] sm:$0xf] %v3107_v33  ;;  %3655 = vmatpush1.bf16.msra.mxu1 %v4655_v32  ;;  %v4660_v52 = vcombine.low %v5139_v12, %v3054_v36  ;;  %v5081_v20 = vld [vmem:[#allocation6 + $0x178] ss:$20 sps:$4 sm:$0xff]  }
 0x422   : > { %3694 = vmatpush1.bf16.msra.mxu0 %v5080_v23  ;;  %3656 = vmatprep.subr.bf16.mxu1 %v4661_v59  ;;  %v4666_v18 = vcombine.high %v3080_v34, %v3106_v49  ;;  %v4665_v37 = vcombine.low %v3080_v34, %v3106_v49  ;;  %v4671_v46 = vcombine.high %v3132_v9, %v3132_v9  ;;  %v5086_v30 = vld [vmem:[%s6849_s5] sm:$0xff]   ;;  %v5090_v16 = vld [vmem:[%s6849_s5 + $0x108] sm:$0xff]   ;;  %v5091_v59 = vld [vmem:[%s6849_s5 + $0x50] sm:$0xff]  }
 0x423   : > { %3695 = vmatprep.subr.bf16.mxu0 %v5224_v26  ;;  %v4670_v51 = vcombine.low %v3132_v9, %v3132_v9  ;;  %v5087_v8 = vld [vmem:[%s6849_s5 + $0x100] sm:$0xff]   ;;  %v5089_v32 = vld [vmem:[%s6849_s5 + $0x8] sm:$0xff]   ;;  %v5093_v19 = vld [vmem:[%s6849_s5 + $0x110] sm:$0xff]  }
 0x424   : > { %v5082_v27 = vld [vmem:[#allocation6 + $0x1a0] ss:$20 sps:$4 sm:$0xff]   ;;  %v5094_v0 = vld [vmem:[%s6849_s5 + $0x58] sm:$0xff]  }
 0x425   : > { %3657 = vmatpush1.bf16.msra.mxu1 %v4660_v52  ;;  %v3587_v42 = vsel %vm482_vm0, %v4670_v51, 0  ;;  %v5092_v24 = vld [vmem:[%s6849_s5 + $0x10] sm:$0xff]   ;;  %v5096_v33 = vld [vmem:[%s6849_s5 + $0x118] sm:$0xff]   ;;  %v5097_v9 = vld [vmem:[%s6849_s5 + $0x60] sm:$0xff]  }
 0x426   : > { %3696 = vmatpush1.bf16.msra.mxu0 %v5081_v20  ;;  %3658 = vmatprep.subr.bf16.mxu1 %v4666_v18  ;;  %v5095_v23 = vld [vmem:[%s6849_s5 + $0x18] sm:$0xff]   ;;  %v5099_v49 = vld [vmem:[%s6849_s5 + $0x120] sm:$0xff]   ;;  %v5100_v52 = vld [vmem:[%s6849_s5 + $0x68] sm:$0xff]  }
 0x427   : > { %3697 = vmatprep.subr.bf16.mxu0 %v5224_v26  ;;  %v5098_v12 = vld [vmem:[%s6849_s5 + $0x20] sm:$0xff]   ;;  %v5102_v20 = vld [vmem:[%s6849_s5 + $0x128] sm:$0xff]   ;;  %v5106_v51 = vld [vmem:[%s6849_s5 + $0x78] sm:$0xff]  }
 0x428   : > { %v5083_v41 = vld [vmem:[#allocation6 + $0x1c8] ss:$20 sps:$4 sm:$0xff]   ;;  %v5084_v53 = vld [vmem:[#allocation6 + $0x1f0] ss:$0 sps:$4 sm:$0xff]  }
 0x429   : > { %3659 = vmatpush1.bf16.msra.mxu1 %v4665_v37  ;;  %v3593_v1 = vsel %vm482_vm0, %v5084_v53, 0  ;;  %v5101_v18 = vld [vmem:[%s6849_s5 + $0x28] sm:$0xff]   ;;  %v5103_v37 = vld [vmem:[%s6849_s5 + $0x70] sm:$0xff]  }
 0x42a   : > { %3698 = vmatpush1.bf16.msra.mxu0 %v5082_v27  ;;  %4675 = vmatprep.subr.msk.bf16.mxu1 %vm482_vm0, %v4671_v46  ;;  %v5104_v27 = vld [vmem:[%s6849_s5 + $0x30] sm:$0xff]  }
 0x42b   : > { %3699 = vmatprep.subr.bf16.mxu0 %v5224_v26  ;;  %v5105_v46 = vld [vmem:[%s6849_s5 + $0x130] sm:$0xff]  }
 0x42d   : > { %3661 = vmatpush1.bf16.msra.mxu1 %v3587_v42  ;;  %v5107_v42 = vld [vmem:[%s6849_s5 + $0x38] sm:$0xff]  }
 0x42e   : > { %3700 = vmatpush1.bf16.msra.mxu0 %v5083_v41  ;;  %v3220_v2 = vpop.permute.xlu1 %3219  ;;  %4749 = vmatprep.subr.bf16.mxu1 %v5085_v10  ;;  %v5108_v41 = vld [vmem:[%s6849_s5 + $0x138] sm:$0xff]  }
 0x42f   : > { %3701 = vmatprep.subr.bf16.mxu0 %v5224_v26  ;;  %v3225_v26 = vrot.slane %v3220_v2, %v3224_v43  ;;  %v5124_v10 = vld [vmem:[%s6849_s5 + $0xb8] sm:$0xff]  }
 0x430   : > { %3669 = vmatmul.mubr.bf16.vlgmr.msra.gmra.mrb[8].mxu1 %v6440_v22 }
 0x431   : > { %4750 = vmatpush3.bf16.msra.mxu1 %v5086_v30 }
 0x432   : > { %3702 = vmatpush1.bf16.msra.mxu0 %v3593_v1 }
 0x433   : > { %4836 = vmatprep.subr.bf16.mxu0 %v6948_v11 }
 0x435   : > { %3710 = vmatmul.mubr.bf16.vlgmr.msra.gmra.mrb[12].mxu0 %v6440_v22 }
 0x436   : > { %4852 = vmatprep.mubr.msk.bf16.mxu0 %vm5226_vm6, %v6948_v11  ;;  %4837 = vmatpush3.bf16.msra.mxu0 %v5087_v8 }
 0x437   : > { %4838 = vmatprep.subr.bf16.mxu0 %v6948_v11 }
 0x43a   : > { %4839 = vmatpush3.bf16.msra.mxu0 %v5090_v16  ;;  %v5127_v16 = vld [vmem:[%s6851_s7 + $0x10] sm:$0xff]  }
 0x43b   : > { %4840 = vmatprep.subr.bf16.mxu0 %v6948_v11 }
 0x43e   : > { %4841 = vmatpush3.bf16.msra.mxu0 %v5093_v19  ;;  %v5130_v19 = vld [vmem:[%s6851_s7 + $0x28] sm:$0xff]  }
 0x43f   : > { %4842 = vmatprep.subr.bf16.mxu0 %v6948_v11 }
 0x442   : > { %4843 = vmatpush3.bf16.msra.mxu0 %v5096_v33  ;;  %v5133_v33 = vld [vmem:[%s6853_s9] sm:$0xff]  }
 0x443   : > { %4844 = vmatprep.subr.bf16.mxu0 %v6948_v11 }
 0x446   : > { %4845 = vmatpush3.bf16.msra.mxu0 %v5099_v49  ;;  %v5136_v49 = vld [vmem:[%s6853_s9 + $0x18] sm:$0xff]  }
 0x447   : > { %4846 = vmatprep.subr.bf16.mxu0 %v6948_v11 }
 0x44a   : > { %4847 = vmatpush3.bf16.msra.mxu0 %v5102_v20 }
 0x44b   : > { %4848 = vmatprep.subr.bf16.mxu0 %v6948_v11 }
 0x44e   : > { %4849 = vmatpush3.bf16.msra.mxu0 %v5105_v46 }
 0x44f   : > { %4850 = vmatprep.subr.bf16.mxu0 %v6948_v11 }
 0x452   : > { %4851 = vmatpush3.bf16.msra.mxu0 %v5108_v41  ;;  %v3900_v41 = vld [vmem:[%s6850_s6] sm:$0x1] }
 0x453   : > { %4876 = vmatprep.subr.bf16.mxu0 %v6948_v11 }
 0x4d4   : > { %v3629_v5 = vpop.f32.mrb[8].mxu0 }
 0x4d5   : > { %v3630_v45 = vadd.f32 %v3629_v5, %v3225_v26  ;;  %v3631_v54 = vpop.f32.mrb[9].mxu0 }
 0x4d6   : > { %v3632_v60 = vadd.f32 %v3631_v54, %v3225_v26  ;;  %v3633_v39 = vpop.f32.mrb[10].mxu0 }
 0x4d7   : > { %v3717_v50 = vmax.f32 %v3630_v45, 0.0  ;;  %v3634_v22 = vpop.f32.mrb[11].mxu0  ;;  %v3796_v39 = vsub.s32 1, %v5347_v4 }
 0x4d8   : > { %v3718_v56 = vmax.f32 %v3632_v60, 0.0  ;;  %v3804_v22 = vsub.s32 3, %v5347_v4 }
 0x4da   : > { %v3727_v3 = vcombine.low %v3717_v50, %v3718_v56  ;;  %v3808_v50 = vsub.s32 4, %v5347_v4 }
 0x4dc   : > { %v3735_v6 = vrot.slane %v3727_v3, %v6206_v44 }
 0x503   : > { %v3670_v13 = vpop.f32.mrb[8].mxu1 }
 0x504   : > { %v3671_v57 = vadd.f32 %v3670_v13, %v3225_v26  ;;  %v3672_v55 = vpop.f32.mrb[9].mxu1 }
 0x505   : > { %v3673_v47 = vadd.f32 %v3672_v55, %v3225_v26  ;;  %v3674_v28 = vpop.f32.mrb[10].mxu1 }
 0x506   : > { %v3719_v62 = vmax.f32 %v3671_v57, 0.0  ;;  %v3675_v58 = vpop.f32.mrb[11].mxu1 }
 0x507   : > { %v3720_v61 = vmax.f32 %v3673_v47, 0.0 }
 0x508   : > { %v3711_v15 = vpop.f32.mrb[12].mxu0 }
 0x509   : > { %v3728_v17 = vcombine.low %v3719_v62, %v3720_v61  ;;  %v3712_v14 = vadd.f32 %v3711_v15, %v3225_v26  ;;  %v3713_v7 = vpop.f32.mrb[13].mxu0  ;;  %v5110_v61 = vld [vmem:[%s6849_s5 + $0x80] sm:$0xff]   ;;  %v5111_v15 = vld [vmem:[%s6849_s5 + $0xc8] sm:$0xff]  }
 0x50a   : > { %v3714_v31 = vpop.f32.mrb[14].mxu0  ;;  %v5114_v7 = vld [vmem:[%s6849_s5 + $0x90] sm:$0xff]  }
 0x50b   : > { %v3742_v38 = vrot.slane %v3728_v17, %v6206_v44  ;;  %v3721_v40 = vmax.f32 %v3712_v14, 0.0  ;;  %v3715_v29 = vpop.f32.mrb[15].mxu0  ;;  %v5113_v14 = vld [vmem:[%s6849_s5 + $0xd0] sm:$0xff]   ;;  %v5115_v31 = vld [vmem:[%s6849_s5 + $0xd8] sm:$0xff]  }
 0x50c   : > { %v5119_v29 = vld [vmem:[%s6849_s5 + $0xe8] sm:$0xff]  }
 0x50d   : > { %v3750_v35 = vcombine.low %v3735_v6, %v3742_v38  ;;  %v3749_v21 = vrot.slane %v3721_v40, %v6206_v44  ;;  %v5116_v6 = vld [vmem:[%s6849_s5 + $0x98] sm:$0xff]   ;;  %v5117_v38 = vld [vmem:[%s6849_s5 + $0xe0] sm:$0xff]  }
 0x50e   : > { %v5118_v40 = vld [vmem:[%s6849_s5 + $0xa0] sm:$0xff]  }
 0x50f   : > { %v3757_v48 = vrot.slane %v3750_v35, %v6206_v44  ;;  %v3764_v34 = vrot.slane %v3749_v21, %v6206_v44  ;;  %v5088_v44 = vld [vmem:[%s6849_s5 + $0x48] sm:$0xff]   ;;  %v5121_v21 = vld [vmem:[%s6849_s5 + $0xf0] sm:$0xff]  }
 0x510   : > { %4751 = vmatprep.subr.bf16.mxu1 %v5088_v44  ;;  %v5120_v35 = vld [vmem:[%s6849_s5 + $0xa8] sm:$0xff]   ;;  %v5125_v44 = vld [vmem:[%s6851_s7] sm:$0xff]  }
 0x511   : > { %v3765_v36 = vcombine.low %v3757_v48, %v3764_v34  ;;  %4752 = vmatpush3.bf16.msra.mxu1 %v5089_v32  ;;  %v5122_v48 = vld [vmem:[%s6849_s5 + $0xb0] sm:$0xff]   ;;  %v5123_v34 = vld [vmem:[%s6849_s5 + $0xf8] sm:$0xff]  }
 0x512   : > { %4753 = vmatprep.subr.bf16.mxu1 %v5091_v59  ;;  %v5128_v32 = vld [vmem:[%s6851_s7 + $0x18] sm:$0xff]   ;;  %v5129_v59 = vld [vmem:[%s6851_s7 + $0x20] sm:$0xff]  }
 0x513   : > { %3769 = vst.msk [vmem:[#allocation4] sm:$0x1f] %vm3767_vm12, %v3765_v36  ;;  %v3800_v36 = vsub.s32 2, %v5347_v4  ;;  %v5126_v4 = vld [vmem:[%s6851_s7 + $0x8] sm:$0xff]  }
 0x515   : > { %4754 = vmatpush3.bf16.msra.mxu1 %v5092_v24  ;;  %v5132_v24 = vld [vmem:[%s6851_s7 + $0x38] ss:$0 sps:$4 sm:$0xff]  }
 0x516   : > { %4755 = vmatprep.subr.bf16.mxu1 %v5094_v0  ;;  %v4329_v0 = vsel %vm482_vm0, %v5132_v24, 0  ;;  %vm4418_vm0 = vcmask 687104  }
 0x519   : > { %4756 = vmatpush3.bf16.msra.mxu1 %v5095_v23  ;;  %v5134_v23 = vld [vmem:[%s6853_s9 + $0x8] sm:$0xff]  }
 0x51a   : > { %v3771_v63 = vld [vmem:[#allocation4] sm:$0x3f]  ;;  %4757 = vmatprep.subr.bf16.mxu1 %v5097_v9  ;;  %v5135_v9 = vld [vmem:[%s6853_s9 + $0x10] sm:$0xff]  }
 0x51b   : > { %3773 = vrot.lane.b32.xlu0 %v3771_v63, %s6921_s23  ;;  %v3770_v45 = vld [vmem:[#allocation4] sm:$0x1f] }
 0x51d   : > { %4758 = vmatpush3.bf16.msra.mxu1 %v5098_v12 }
 0x51e   : > { %4759 = vmatprep.subr.bf16.mxu1 %v5100_v52 }
 0x521   : > { %4760 = vmatpush3.bf16.msra.mxu1 %v5101_v18 }
 0x522   : > { %4761 = vmatprep.subr.bf16.mxu1 %v5103_v37 }
 0x525   : > { %4762 = vmatpush3.bf16.msra.mxu1 %v5104_v27 }
 0x526   : > { %4763 = vmatprep.subr.bf16.mxu1 %v5106_v51 }
 0x529   : > { %4764 = vmatpush3.bf16.msra.mxu1 %v5107_v42 }
 0x52a   : > { %4771 = vmatprep.subr.bf16.mxu1 %v5109_v25 }
 0x58d   : > { %v3774_v53 = vpop.permute.xlu0 %3773 }
 0x58e   : > { %v3775_v1 = vrot.slane %v3774_v53, 1 }
 0x590   : > { %v3777_v2 = vsel %vm546_vm1, %v3774_v53, %v3775_v1 }
 0x591   : > { %v3780_v26 = vmax.f32 %v3771_v63, %v3777_v2  ;;  %v3779_v60 = vmax.f32 %v3770_v45, %v3777_v2  ;;  %v5131_v63 = vld [vmem:[%s6851_s7 + $0x30] sm:$0xff]  }
 0x593   : > { %3782 = vrot.lane.b32.xlu1 %v3780_v26, %s6912_s14  ;;  %s5232_s14 = smov [#allocation8]  }
 0x594   : > { %s5144_s16 = sshll.u32 %s5232_s14, 4  ;;  %s5145_s16 = int_to_ptr.vmem [resolvable:$false] %s5144_s16 }
 0x595   : > { %s5146_s0 = scalar_lea.vmem %s5145_s16, 32  ;;  %p5147_p0 = scmp.lt.s32.totalorder %s6804_s25, %s5145_s16 }
 0x596   : > { %p5148_p1 = scmp.lt.s32.totalorder %s5146_s0, %s5140_s4 }
 0x598   : > { %p5149_p2 = por %p5148_p1, %p5147_p0 }
 0x59a   : > { %p5150_p3 = pnand %p5149_p2, %p5143_p13 }
 0x605   : > { %v3783_v5 = vpop.permute.xlu1 %3782 }
 0x606   : > { %v3784_v54 = vrot.slane %v3783_v5, 1 }
 0x608   : > { %v3786_v56 = vsel %vm1042_vm10, %v3783_v5, %v3784_v54 }
 0x609   : > { %v3788_v3 = vmax.f32 %v3779_v60, %v3786_v56 }
 0x60b   : > { %v3797_v13 = vrot.slane %v3788_v3, %v3796_v39  ;;  %v3809_v57 = vrot.slane %v3788_v3, %v3808_v50  ;;  %v3793_v55 = vrot.slane %v3788_v3, %v3224_v43  ;;  %v3805_v47 = vrot.slane %v3788_v3, %v3804_v22  ;;  %v5112_v43 = vld [vmem:[%s6849_s5 + $0x88] sm:$0xff]   ;;  %v5137_v50 = vld [vmem:[%s6853_s9 + $0x20] sm:$0xff]  }
 0x60c   : > { %v3801_v30 = vrot.slane %v3788_v3, %v3800_v36  ;;  %v5138_v22 = vld [vmem:[%s6853_s9 + $0x28] ss:$0 sps:$4 sm:$0x33]   ;;  %v4278_v3 = vld [vmem:[%s6852_s8] sm:$0x1] }
 0x60d   : > { %v3816_v28 = vpack.c.bf16 %v3797_v13, %v3797_v13  ;;  %v3819_v62 = vpack.c.bf16 %v3809_v57, %v3809_v57  ;;  %v3815_v58 = vpack.c.bf16 %v3793_v55, %v3793_v55  ;;  %v3818_v17 = vpack.c.bf16 %v3805_v47, %v3805_v47 }
 0x60e   : > { %v3817_v8 = vpack.c.bf16 %v3801_v30, %v3801_v30  ;;  %v4423_v56 = vsel %vm2198_vm14, %v5138_v22, 0 }
 0x60f   : > { %4173 = vmatprep.mubr.bf16.mxu1 %v3816_v28  ;;  %4853 = vmatmul.mubr.bf16.vlgmr.msra.gmra.mrb[16].mxu0 %v3819_v62 }
 0x610   : > { %4174 = vmatmul.mubr.bf16.vlgmr.msra.gmra.mrb[12].mxu1 %v3815_v58  ;;  %4888 = vmatprep.mubr.msk.bf16.mxu0 %vm5226_vm6, %v6948_v11  ;;  %v4384_v58 = vld [vmem:[%s6854_s10] sm:$0x1] }
 0x611   : > { %4772 = vmatpush3.bf16.msra.mxu1 %v5110_v61  ;;  %4213 = vmatprep.mubr.bf16.mxu1 %v3818_v17 }
 0x612   : > { %4773 = vmatprep.subr.bf16.mxu1 %v5111_v15  ;;  %4877 = vmatpush3.bf16.msra.mxu0 %v5133_v33 }
 0x613   : > { %4878 = vmatprep.subr.bf16.mxu0 %v6948_v11 }
 0x615   : > { %4774 = vmatpush3.bf16.msra.mxu1 %v5112_v43 }
 0x616   : > { %4775 = vmatprep.subr.bf16.mxu1 %v5113_v14  ;;  %4879 = vmatpush3.bf16.msra.mxu0 %v5134_v23 }
 0x617   : > { %4880 = vmatprep.subr.bf16.mxu0 %v6948_v11 }
 0x619   : > { %4776 = vmatpush3.bf16.msra.mxu1 %v5114_v7 }
 0x61a   : > { %4777 = vmatprep.subr.bf16.mxu1 %v5115_v31  ;;  %4881 = vmatpush3.bf16.msra.mxu0 %v5135_v9 }
 0x61b   : > { %4882 = vmatprep.subr.bf16.mxu0 %v6948_v11 }
 0x61d   : > { %4778 = vmatpush3.bf16.msra.mxu1 %v5116_v6 }
 0x61e   : > { %4779 = vmatprep.subr.bf16.mxu1 %v5117_v38  ;;  %4883 = vmatpush3.bf16.msra.mxu0 %v5136_v49 }
 0x61f   : > { %4884 = vmatprep.subr.bf16.mxu0 %v6948_v11 }
 0x621   : > { %4780 = vmatpush3.bf16.msra.mxu1 %v5118_v40 }
 0x622   : > { %4781 = vmatprep.subr.bf16.mxu1 %v5119_v29  ;;  %4885 = vmatpush3.bf16.msra.mxu0 %v5137_v50 }
 0x623   : > { %4886 = vmatprep.subr.bf16.mxu0 %v6948_v11 }
 0x625   : > { %4782 = vmatpush3.bf16.msra.mxu1 %v5120_v35 }
 0x626   : > { %4783 = vmatprep.subr.bf16.mxu1 %v5121_v21  ;;  %4887 = vmatpush3.bf16.msra.mxu0 %v4423_v56 }
 0x629   : > { %4784 = vmatpush3.bf16.msra.mxu1 %v5122_v48 }
 0x62a   : > { %4785 = vmatprep.subr.bf16.mxu1 %v5123_v34 }
 0x62d   : > { %4786 = vmatpush3.bf16.msra.mxu1 %v5124_v10 }
 0x62e   : > { %4856 = vmatprep.subr.bf16.mxu1 %v6948_v11 }
 0x630   : > { %4214 = vmatmul.mubr.bf16.vlgmr.msra.gmra.mrb[16].mxu1 %v3817_v8 }
 0x631   : > { %4872 = vmatprep.mubr.msk.bf16.mxu1 %vm5226_vm6, %v6948_v11  ;;  %4857 = vmatpush3.bf16.msra.mxu1 %v5125_v44 }
 0x632   : > { %4858 = vmatprep.subr.bf16.mxu1 %v6948_v11 }
 0x635   : > { %4859 = vmatpush3.bf16.msra.mxu1 %v5126_v4 }
 0x636   : > { %4860 = vmatprep.subr.bf16.mxu1 %v6948_v11 }
 0x639   : > { %4861 = vmatpush3.bf16.msra.mxu1 %v5127_v16 }
 0x63a   : > { %4862 = vmatprep.subr.bf16.mxu1 %v6948_v11 }
 0x63d   : > { %4863 = vmatpush3.bf16.msra.mxu1 %v5128_v32 }
 0x63e   : > { %4864 = vmatprep.subr.bf16.mxu1 %v6948_v11 }
 0x641   : > { %4865 = vmatpush3.bf16.msra.mxu1 %v5129_v59 }
 0x642   : > { %4866 = vmatprep.subr.bf16.mxu1 %v6948_v11 }
 0x645   : > { %4867 = vmatpush3.bf16.msra.mxu1 %v5130_v19 }
 0x646   : > { %4868 = vmatprep.subr.bf16.mxu1 %v6948_v11 }
 0x649   : > { %4869 = vmatpush3.bf16.msra.mxu1 %v5131_v63 }
 0x64a   : > { %4870 = vmatprep.subr.bf16.mxu1 %v6948_v11 }
 0x64d   : > { %4871 = vmatpush3.bf16.msra.mxu1 %v4329_v0 }
 0x6e2   : > { %v4255_v12 = vpop.f32.mrb[16].mxu0 }
 0x6e3   : > { %v4765_v52 = vpop.f32.mrb[12].mxu1  ;;  %v4854_v20 = vpop.f32.mrb[17].mxu0 }
 0x6e4   : > { %v4766_v18 = vpop.f32.mrb[13].mxu1  ;;  %v4258_v37 = vpop.f32.mrb[18].mxu0 }
 0x6e5   : > { %v4767_v27 = vadd.f32 %v4766_v18, %v4765_v52  ;;  %v4768_v46 = vpop.f32.mrb[14].mxu1  ;;  %v4855_v51 = vpop.f32.mrb[19].mxu0 }
 0x6e6   : > { %v4769_v42 = vpop.f32.mrb[15].mxu1 }
 0x6e7   : > { %v4176_v25 = vadd.f32 %v4767_v27, %v3900_v41 }
 0x703   : > { %v4787_v53 = vpop.f32.mrb[16].mxu1 }
 0x704   : > { %v4788_v1 = vpop.f32.mrb[17].mxu1 }
 0x705   : > { %v4789_v2 = vadd.f32 %v4788_v1, %v4787_v53  ;;  %v4790_v26 = vpop.f32.mrb[18].mxu1 }
 0x706   : > { %v4791_v5 = vpop.f32.mrb[19].mxu1 }
 0x707   : > { %v4216_v45 = vadd.f32 %v4789_v2, %v4176_v25 }
 0x709   : > { %v4256_v54 = vadd.f32 %v4255_v12, %v4216_v45 }
 0x70b   : > { %v4261_v60 = vmax.f32 %v4256_v54, 0.0 }
 0x70d   : > { %v4262_v39 = vpack.c.bf16 %v4261_v60, %v4261_v60 }
 0x70f   : > { %4873 = vmatmul.mubr.msk.bf16.vlgmr.msra.gmra.mrb[20].mxu1 %vm2647_vm5, %v4262_v39 }
 0x7e2   : > { %v4365_v13 = vpop.f32.mrb[20].mxu1 }
 0x7e3   : > { %v4366_v57 = vadd.f32 %v4365_v13, %v4278_v3  ;;  %v4874_v55 = vpop.f32.mrb[21].mxu1 }
 0x7e4   : > { %v4368_v47 = vpop.f32.mrb[22].mxu1 }
 0x7e5   : > { %v4371_v28 = vmax.f32 %v4366_v57, 0.0  ;;  %v4875_v62 = vpop.f32.mrb[23].mxu1 }
 0x7e7   : > { %v4372_v11 = vpack.c.bf16 %v4371_v28, %v4371_v28 }
 0x7e9   : > { %4889 = vmatmul.mubr.msk.bf16.vlgmr.msra.gmra.mrb[20].mxu0 %vm4418_vm0, %v4372_v11 }
 0x8bc   : > { %v4459_v61 = vpop.f32.mrb[20].mxu0 }
 0x8bd   : > { %v4460_v15 = vadd.f32 %v4459_v61, %v4384_v58  ;;  %v4890_v17 = vpop.f32.mrb[21].mxu0 }
 0x8be   : > { %v4462_v43 = vpop.f32.mrb[22].mxu0 }
 0x8bf   : > { %4465 = vst [vmem:[%s380_s15] sm:$0x1] %v4460_v15  ;;  %v4891_v14 = vpop.f32.mrb[23].mxu0 }
 0x8c0   : > { %5153 = shalt.err (!%p5150_p3)
}
 0x8c1   : > { %s5154_s17 = scalar_lea.hbm %s6802_s30, 16  ;;  %s5158_s15 = scalar_lea.hbm %s6855_s11, 32 }
 0x8c2   : > { %p5155_p4 = scmp.ne.s32.totalorder %s6802_s30, %s5154_s17  ;;  %p5159_p9 = scmp.lt.u32.totalorder %s6802_s30, %s6855_s11 }
 0x8c3   : > { %p5160_p10 = scmp.lt.u32.totalorder %s5158_s15, %s5154_s17  ;;  %p5162_p12 = scmp.lt.u32.totalorder %s5154_s17, %s6802_s30 }
 0x8c4   : > { %p5156_p7 = pnand %p5155_p4, %p5334_p5 }
 0x8c5   : > { %p5161_p11 = por %p5160_p10, %p5159_p9 }
 0x8c6   : > { %p5157_p8 = pneg %p5156_p7 }
 0x8c7   : > { %p5163_p13 = por %p5162_p12, %p5161_p11 }
 0x8c9   : > { %p5164_p0 = pnand %p5163_p13, %p5157_p8 }
 0x8cb   : > { %5167 = shalt.err (!%p5164_p0)
}
 0x8cc   : > { %4893 = dma.vmem_to_hbm [thread:$0]  (%p5334_p5), %s6804_s25, 16, %s6802_s30, %s4467_s26  }
 0x8cd PF: > { %p4899_p1 = scmp.ge.s32.totalorder %s5202_s22, 2  ;;  %s4491_s4 = sand.u32 1, %s5190_s19  }
 0x8ce   : > { %s4492_s14 = scalar_lea.sflag [#allocation9], %s4491_s4 }
 0x8cf   : > { %p4896_p2 = pnand %p4899_p1, %p5338_p6 }
 0x8d1   : > { %5185 = dma.done.wait (!%p4896_p2), %s4492_s14, 16  }
 0x8d2   : > { %5187 = vsyncadd (!%p4896_p2), %s4492_s14, 4294967280  ;;  %p23_p3 = scmp.ge.s32.totalorder %s5321_s24, 4   ;;  %s6950_s19 = smov %s5194_s20 }
 0x8d3   : > { %s6951_s20 = smov %s5198_s21  ;;  %s6952_s21 = smov %s5332_s27 }
 0x8d4   : > { %s6953_s22 = smov %s5321_s24  ;;  %25 = sbr.rel (!%p23_p3) target bundleno = 6 (0x6), region = 99 }
 0x8db   :  { %4496 = vsyncpa [#allocation9], 1 }
 0x8dc   :  { %4498 = vsyncpa [#allocation9 + $0x1], 1 }

</bundles_post_ra>
